<compile_context>
chip_gen: v5e
topology: v5e:2x2
jax: 0.10.0
libtpu: 0.0.40
codegen_flags: <defaults>
</compile_context>

<pallas_src>
import functools
import math

import jax
import jax.numpy as jnp
from jax import lax
from jax.experimental import pallas as pl
from jax.experimental.pallas import tpu as pltpu

# ----------------------------- config (scaled-down RoBERTa) -----------------------------
B = 2            # batch
S = 8            # sequence length
H = 128          # hidden size            (768 in roberta-base) -- lane-dense
NH = 2           # attention heads        (12)
HD = H // NH     # head dim = 64          (64, same as roberta-base)
FF = 256         # intermediate size      (3072) -- lane-dense
LAYERS = 2       # encoder layers         (12)
ATT_HID = 128    # pooling-head hidden    (512)  -- lane-dense
VOCAB = 100
PAD_ID = 1
MAX_POS = S + PAD_ID + 2
LN_EPS = 1e-7    # config.layer_norm_eps = 1e-07


def _spec(shape):
    zeros = (0,) * len(shape)
    return pl.BlockSpec(shape, lambda i, z=zeros: z)


def _layer_norm(x, gamma, beta, eps):
    mu = jnp.mean(x, axis=-1, keepdims=True)
    var = jnp.mean((x - mu) * (x - mu), axis=-1, keepdims=True)
    return (x - mu) * lax.rsqrt(var + eps) * gamma + beta


def _gelu(x):
    # TODO(synk): RoBERTa uses exact (erf) GELU; tanh approximation kept for Mosaic lowering.
    return 0.5 * x * (1.0 + jnp.tanh(0.7978845608028654 * (x + 0.044715 * x * x * x)))


# ------------------------------ single fused forward kernel -----------------------------
def _fused_kernel(emb_ref, bias_ref, embg_ref, embb_ref,
                  wqkv_ref, bqkv_ref, wo_ref, bo_ref, ln1g_ref, ln1b_ref,
                  wff1_ref, bff1_ref, wff2_ref, bff2_ref, ln2g_ref, ln2b_ref,
                  aw1_ref, ab1_ref, aw2_ref, ab2_ref, rw_ref, rb_ref,
                  o_ref, *, scale, eps):
    emb = emb_ref[...]                                                 # (B*S, H)
    bias = bias_ref[...]                                               # (B, S) additive key mask
    emb_g = embg_ref[...]
    emb_b = embb_ref[...]

    # Embedding LayerNorm; hidden state stays resident (vregs/VMEM) for the whole forward.
    hs = [_layer_norm(emb[b * S:(b + 1) * S, :], emb_g, emb_b, eps) for b in range(B)]

    for l in range(LAYERS):                 # static unroll; at real scale use grid=(LAYERS,)
        wqkv = wqkv_ref[l]                  # (H, 3H)   [Wq | Wk | Wv]
        bqkv = bqkv_ref[l]                  # (1, 3H)
        wo = wo_ref[l]                      # (H, H)
        bo = bo_ref[l]                      # (1, H)
        g1 = ln1g_ref[l]; be1 = ln1b_ref[l]
        wff1 = wff1_ref[l]; bf1 = bff1_ref[l]
        wff2 = wff2_ref[l]; bf2 = bff2_ref[l]
        g2 = ln2g_ref[l]; be2 = ln2b_ref[l]

        for b in range(B):                                             # static unroll over batch
            x = hs[b]                                                  # (S, H)
            # Fused QKV projection, kept as a value (no scratch round trip).
            qkv = jnp.dot(x, wqkv, preferred_element_type=jnp.float32) + bqkv   # (S, 3H)
            bias_b = bias[b:b + 1, :]                                  # (1, S)
            acc = bo                                                   # broadcasts to (S, H)
            for n in range(NH):                                        # static unroll over heads
                c0 = n * HD
                q = qkv[:, c0:c0 + HD]                                 # (S, HD)
                k = qkv[:, H + c0:H + c0 + HD]                         # (S, HD)
                v = qkv[:, 2 * H + c0:2 * H + c0 + HD]                 # (S, HD)
                # q @ k^T without an explicit transpose: contract last dims on the MXU.
                s = lax.dot_general(q, k, (((1,), (1,)), ((), ())),
                                    preferred_element_type=jnp.float32) * scale + bias_b
                s = s - jnp.max(s, axis=-1, keepdims=True)
                p = jnp.exp(s)
                p = p * pl.reciprocal(jnp.sum(p, axis=-1, keepdims=True), approx=True)
                ctx = jnp.dot(p, v, preferred_element_type=jnp.float32)          # (S, HD)
                # Per-head block of the output projection (merge into one (S,H)@(H,H) dot
                # once head count is large at roberta-base scale).
                acc = acc + jnp.dot(ctx, wo[c0:c0 + HD, :],
                                    preferred_element_type=jnp.float32)          # (S, H)
            x = _layer_norm(acc + x, g1, be1, eps)                     # residual + LN

            # FFN block: FF1 + GELU + FF2 + residual + LN (fp32 elementwise math for v5e).
            m = jnp.dot(x, wff1, preferred_element_type=jnp.float32) + bf1
            m = _gelu(m)
            y = jnp.dot(m, wff2, preferred_element_type=jnp.float32) + bf2
            hs[b] = _layer_norm(y + x, g2, be2, eps)

    # Pooling head (Linear+Tanh, Linear, softmax over seq, weighted sum) + regressor.
    # NOTE: the reference LitModel applies softmax over ALL positions (no attention_mask),
    # so padded positions intentionally receive nonzero pooling weight here too.
    aw1 = aw1_ref[...]                                                 # (H, ATT_HID)
    ab1 = ab1_ref[...]                                                 # (1, ATT_HID)
    aw2 = aw2_ref[...]                                                 # (1, ATT_HID)  (w2 row)
    ab2 = ab2_ref[...]                                                 # (1, 1)
    rw = rw_ref[...]                                                   # (H, 1)
    rb = rb_ref[...]                                                   # (1, 1)
    for b in range(B):
        h_b = hs[b]                                                    # (S, H)
        a = jnp.tanh(jnp.dot(h_b, aw1, preferred_element_type=jnp.float32) + ab1)  # (S, ATT_HID)
        sc = jnp.sum(a * aw2, axis=-1, keepdims=True) + ab2            # (S, 1) scores
        sc = sc - jnp.max(sc, axis=0, keepdims=True)                   # softmax over seq (dim=1)
        p = jnp.exp(sc)
        p = p * pl.reciprocal(jnp.sum(p, axis=0, keepdims=True), approx=True)      # (S, 1)
        ctx = jnp.sum(p * h_b, axis=0, keepdims=True)                  # (1, H) weighted sum
        o_ref[b:b + 1, :] = jnp.dot(ctx, rw, preferred_element_type=jnp.float32) + rb


def pallas_forward(emb2d, bias, p):
    args = (
        emb2d, bias,
        p["emb_ln_g"].reshape(1, H), p["emb_ln_b"].reshape(1, H),
        p["wqkv"], p["bqkv"].reshape(LAYERS, 1, 3 * H),
        p["wo"], p["bo"].reshape(LAYERS, 1, H),
        p["ln1_g"].reshape(LAYERS, 1, H), p["ln1_b"].reshape(LAYERS, 1, H),
        p["wff1"], p["bff1"].reshape(LAYERS, 1, FF),
        p["wff2"], p["bff2"].reshape(LAYERS, 1, H),
        p["ln2_g"].reshape(LAYERS, 1, H), p["ln2_b"].reshape(LAYERS, 1, H),
        p["att_w1"], p["att_b1"].reshape(1, ATT_HID),
        p["att_w2"].reshape(1, ATT_HID), p["att_b2"].reshape(1, 1),
        p["reg_w"], p["reg_b"].reshape(1, 1),
    )
    return pl.pallas_call(
        functools.partial(_fused_kernel, scale=1.0 / math.sqrt(HD), eps=LN_EPS),
        grid=(1,),
        out_shape=jax.ShapeDtypeStruct((B, 1), jnp.float32),
        in_specs=[_spec(a.shape) for a in args],
        out_specs=_spec((B, 1)),
        compiler_params=pltpu.CompilerParams(dimension_semantics=("arbitrary",)),
    )(*args)


# --------------------------------- parameter init (deterministic) -----------------------
def _dense_params(key, k_in, n_out):
    return (jax.random.normal(key, (k_in, n_out), jnp.float32) * 0.02,
            jnp.zeros((n_out,), jnp.float32))


def init_params(key):
    keys = iter(jax.random.split(key, 64))
    p = {
        "word_emb": jax.random.normal(next(keys), (VOCAB, H), jnp.float32) * 0.02,
        "pos_emb": jax.random.normal(next(keys), (MAX_POS, H), jnp.float32) * 0.02,
        "type_emb": jax.random.normal(next(keys), (1, H), jnp.float32) * 0.02,
        "emb_ln_g": jnp.ones((H,), jnp.float32),
        "emb_ln_b": jnp.zeros((H,), jnp.float32),
    }
    names = ["wqkv", "bqkv", "wo", "bo", "ln1_g", "ln1_b",
             "wff1", "bff1", "wff2", "bff2", "ln2_g", "ln2_b"]
    stacks = {k: [] for k in names}
    for _ in range(LAYERS):
        wqkv, bqkv = _dense_params(next(keys), H, 3 * H)   # [Wq | Wk | Wv]
        wo, bo = _dense_params(next(keys), H, H)
        wff1, bff1 = _dense_params(next(keys), H, FF)
        wff2, bff2 = _dense_params(next(keys), FF, H)
        vals = dict(wqkv=wqkv, bqkv=bqkv, wo=wo, bo=bo,
                    ln1_g=jnp.ones((H,), jnp.float32), ln1_b=jnp.zeros((H,), jnp.float32),
                    wff1=wff1, bff1=bff1, wff2=wff2, bff2=bff2,
                    ln2_g=jnp.ones((H,), jnp.float32), ln2_b=jnp.zeros((H,), jnp.float32))
        for k in names:
            stacks[k].append(vals[k])
    for k in names:
        p[k] = jnp.stack(stacks[k], axis=0)                # stacked per-layer weights (L, ...)
    p["att_w1"], p["att_b1"] = _dense_params(next(keys), H, ATT_HID)
    p["att_w2"], p["att_b2"] = _dense_params(next(keys), ATT_HID, 1)
    p["reg_w"], p["reg_b"] = _dense_params(next(keys), H, 1)
    return p


# --------------------------------------- forward ----------------------------------------
@jax.jit
def forward(params, input_ids, attention_mask):
    mask_f = attention_mask.astype(jnp.float32)                        # (B, S)
    # RoBERTa position ids: cumsum over non-pad tokens, offset by padding_idx.
    pos_ids = jnp.cumsum(attention_mask, axis=1) * attention_mask + PAD_ID
    emb = (jnp.take(params["word_emb"], input_ids, axis=0)
           + jnp.take(params["pos_emb"], pos_ids, axis=0)
           + params["type_emb"][0][None, None, :])                     # (B, S, H)
    bias = (1.0 - mask_f) * -1e9                                       # (B, S) additive key mask
    # One fused pallas_call for the whole forward (embedding-LN -> encoder -> head).
    return pallas_forward(emb.reshape(B * S, H), bias, params)          # (B, 1)


# ----------------------------------------- main ------------------------------------------
if __name__ == "__main__":
    root = jax.random.PRNGKey(0)
    k_param, k_ids = jax.random.split(root)

    params = init_params(k_param)

    input_ids = jax.random.randint(k_ids, (B, S), 2, VOCAB, dtype=jnp.int32)
    attention_mask = jnp.ones((B, S), dtype=jnp.int32)
    # second example has 2 padding positions at the end
    attention_mask = attention_mask.at[1, -2:].set(0)
    input_ids = input_ids.at[1, -2:].set(PAD_ID)

    out = forward(params, input_ids, attention_mask)
    out = jax.block_until_ready(out)
    assert out.shape == (B, 1) and out.dtype == jnp.float32
    print("KERNEL_OK")
</pallas_src>

<mosaic_0001>
module attributes {stable_mosaic.version = 11 : i64} {
  func.func @_fused_kernel(%arg0: i32, %arg1: memref<16x128xf32, #tpu.memory_space<vmem>>, %arg2: memref<2x8xf32, #tpu.memory_space<vmem>>, %arg3: memref<1x128xf32, #tpu.memory_space<vmem>>, %arg4: memref<1x128xf32, #tpu.memory_space<vmem>>, %arg5: memref<2x128x384xf32, #tpu.memory_space<vmem>>, %arg6: memref<2x1x384xf32, #tpu.memory_space<vmem>>, %arg7: memref<2x128x128xf32, #tpu.memory_space<vmem>>, %arg8: memref<2x1x128xf32, #tpu.memory_space<vmem>>, %arg9: memref<2x1x128xf32, #tpu.memory_space<vmem>>, %arg10: memref<2x1x128xf32, #tpu.memory_space<vmem>>, %arg11: memref<2x128x256xf32, #tpu.memory_space<vmem>>, %arg12: memref<2x1x256xf32, #tpu.memory_space<vmem>>, %arg13: memref<2x256x128xf32, #tpu.memory_space<vmem>>, %arg14: memref<2x1x128xf32, #tpu.memory_space<vmem>>, %arg15: memref<2x1x128xf32, #tpu.memory_space<vmem>>, %arg16: memref<2x1x128xf32, #tpu.memory_space<vmem>>, %arg17: memref<128x128xf32, #tpu.memory_space<vmem>>, %arg18: memref<1x128xf32, #tpu.memory_space<vmem>>, %arg19: memref<1x128xf32, #tpu.memory_space<vmem>>, %arg20: memref<1x1xf32, #tpu.memory_space<vmem>>, %arg21: memref<128x1xf32, #tpu.memory_space<vmem>>, %arg22: memref<1x1xf32, #tpu.memory_space<vmem>>, %arg23: memref<2x1xf32, #tpu.memory_space<vmem>>) attributes {dimension_semantics = [#tpu.dimension_semantics<arbitrary>], iteration_bounds = array<i64: 1>, scalar_prefetch = 0 : i64, scratch_operands = 0 : i64, tpu.core_type = #tpu.core_type<tc>, window_params = [{pipeline_mode = #tpu.pipeline_mode<synchronous>, transform_indices = @transform_0, window_bounds = array<i64: 16, 128>}, {pipeline_mode = #tpu.pipeline_mode<synchronous>, transform_indices = @transform_1, window_bounds = array<i64: 2, 8>}, {pipeline_mode = #tpu.pipeline_mode<synchronous>, transform_indices = @transform_2, window_bounds = array<i64: 1, 128>}, {pipeline_mode = #tpu.pipeline_mode<synchronous>, transform_indices = @transform_3, window_bounds = array<i64: 1, 128>}, {pipeline_mode = #tpu.pipeline_mode<synchronous>, transform_indices = @transform_4, window_bounds = array<i64: 2, 128, 384>}, {pipeline_mode = #tpu.pipeline_mode<synchronous>, transform_indices = @transform_5, window_bounds = array<i64: 2, 1, 384>}, {pipeline_mode = #tpu.pipeline_mode<synchronous>, transform_indices = @transform_6, window_bounds = array<i64: 2, 128, 128>}, {pipeline_mode = #tpu.pipeline_mode<synchronous>, transform_indices = @transform_7, window_bounds = array<i64: 2, 1, 128>}, {pipeline_mode = #tpu.pipeline_mode<synchronous>, transform_indices = @transform_8, window_bounds = array<i64: 2, 1, 128>}, {pipeline_mode = #tpu.pipeline_mode<synchronous>, transform_indices = @transform_9, window_bounds = array<i64: 2, 1, 128>}, {pipeline_mode = #tpu.pipeline_mode<synchronous>, transform_indices = @transform_10, window_bounds = array<i64: 2, 128, 256>}, {pipeline_mode = #tpu.pipeline_mode<synchronous>, transform_indices = @transform_11, window_bounds = array<i64: 2, 1, 256>}, {pipeline_mode = #tpu.pipeline_mode<synchronous>, transform_indices = @transform_12, window_bounds = array<i64: 2, 256, 128>}, {pipeline_mode = #tpu.pipeline_mode<synchronous>, transform_indices = @transform_13, window_bounds = array<i64: 2, 1, 128>}, {pipeline_mode = #tpu.pipeline_mode<synchronous>, transform_indices = @transform_14, window_bounds = array<i64: 2, 1, 128>}, {pipeline_mode = #tpu.pipeline_mode<synchronous>, transform_indices = @transform_15, window_bounds = array<i64: 2, 1, 128>}, {pipeline_mode = #tpu.pipeline_mode<synchronous>, transform_indices = @transform_16, window_bounds = array<i64: 128, 128>}, {pipeline_mode = #tpu.pipeline_mode<synchronous>, transform_indices = @transform_17, window_bounds = array<i64: 1, 128>}, {pipeline_mode = #tpu.pipeline_mode<synchronous>, transform_indices = @transform_18, window_bounds = array<i64: 1, 128>}, {pipeline_mode = #tpu.pipeline_mode<synchronous>, transform_indices = @transform_19, window_bounds = array<i64: 1, 1>}, {pipeline_mode = #tpu.pipeline_mode<synchronous>, transform_indices = @transform_20, window_bounds = array<i64: 128, 1>}, {pipeline_mode = #tpu.pipeline_mode<synchronous>, transform_indices = @transform_21, window_bounds = array<i64: 1, 1>}, {pipeline_mode = #tpu.pipeline_mode<synchronous>, transform_indices = @transform_22, window_bounds = array<i64: 2, 1>}]} {
    %c0 = arith.constant 0 : index
    %c0_0 = arith.constant 0 : index
    %0 = vector.load %arg1[%c0, %c0_0] : memref<16x128xf32, #tpu.memory_space<vmem>>, vector<16x128xf32>
    %c0_1 = arith.constant 0 : index
    %c0_2 = arith.constant 0 : index
    %1 = vector.load %arg2[%c0_1, %c0_2] : memref<2x8xf32, #tpu.memory_space<vmem>>, vector<2x8xf32>
    %c0_3 = arith.constant 0 : index
    %c0_4 = arith.constant 0 : index
    %2 = vector.load %arg3[%c0_3, %c0_4] : memref<1x128xf32, #tpu.memory_space<vmem>>, vector<1x128xf32>
    %c0_5 = arith.constant 0 : index
    %c0_6 = arith.constant 0 : index
    %3 = vector.load %arg4[%c0_5, %c0_6] : memref<1x128xf32, #tpu.memory_space<vmem>>, vector<1x128xf32>
    %4 = vector.extract_strided_slice %0 {offsets = [0, 0], sizes = [8, 128], strides = [1, 1]} : vector<16x128xf32> to vector<8x128xf32>
    %cst = arith.constant dense<0.000000e+00> : vector<8xf32>
    %5 = vector.multi_reduction <add>, %4, %cst [1] : vector<8x128xf32> to vector<8xf32>
    %6 = vector.shape_cast %5 : vector<8xf32> to vector<8x1xf32>
    %cst_7 = arith.constant 1.280000e+02 : f32
    %7 = vector.broadcast %cst_7 : f32 to vector<8x1xf32>
    %8 = arith.divf %6, %7 : vector<8x1xf32>
    %9 = vector.broadcast %8 : vector<8x1xf32> to vector<8x128xf32>
    %10 = arith.subf %4, %9 : vector<8x128xf32>
    %11 = vector.broadcast %8 : vector<8x1xf32> to vector<8x128xf32>
    %12 = arith.subf %4, %11 : vector<8x128xf32>
    %13 = arith.mulf %10, %12 : vector<8x128xf32>
    %cst_8 = arith.constant dense<0.000000e+00> : vector<8xf32>
    %14 = vector.multi_reduction <add>, %13, %cst_8 [1] : vector<8x128xf32> to vector<8xf32>
    %15 = vector.shape_cast %14 : vector<8xf32> to vector<8x1xf32>
    %cst_9 = arith.constant 1.280000e+02 : f32
    %16 = vector.broadcast %cst_9 : f32 to vector<8x1xf32>
    %17 = arith.divf %15, %16 : vector<8x1xf32>
    %18 = vector.broadcast %8 : vector<8x1xf32> to vector<8x128xf32>
    %19 = arith.subf %4, %18 : vector<8x128xf32>
    %cst_10 = arith.constant 1.000000e-07 : f32
    %20 = vector.broadcast %cst_10 : f32 to vector<8x1xf32>
    %21 = arith.addf %17, %20 : vector<8x1xf32>
    %22 = math.rsqrt %21 : vector<8x1xf32>
    %23 = vector.broadcast %22 : vector<8x1xf32> to vector<8x128xf32>
    %24 = arith.mulf %19, %23 : vector<8x128xf32>
    %25 = vector.broadcast %2 : vector<1x128xf32> to vector<8x128xf32>
    %26 = arith.mulf %24, %25 : vector<8x128xf32>
    %27 = vector.broadcast %3 : vector<1x128xf32> to vector<8x128xf32>
    %28 = arith.addf %26, %27 : vector<8x128xf32>
    %29 = vector.extract_strided_slice %0 {offsets = [8, 0], sizes = [8, 128], strides = [1, 1]} : vector<16x128xf32> to vector<8x128xf32>
    %cst_11 = arith.constant dense<0.000000e+00> : vector<8xf32>
    %30 = vector.multi_reduction <add>, %29, %cst_11 [1] : vector<8x128xf32> to vector<8xf32>
    %31 = vector.shape_cast %30 : vector<8xf32> to vector<8x1xf32>
    %cst_12 = arith.constant 1.280000e+02 : f32
    %32 = vector.broadcast %cst_12 : f32 to vector<8x1xf32>
    %33 = arith.divf %31, %32 : vector<8x1xf32>
    %34 = vector.broadcast %33 : vector<8x1xf32> to vector<8x128xf32>
    %35 = arith.subf %29, %34 : vector<8x128xf32>
    %36 = vector.broadcast %33 : vector<8x1xf32> to vector<8x128xf32>
    %37 = arith.subf %29, %36 : vector<8x128xf32>
    %38 = arith.mulf %35, %37 : vector<8x128xf32>
    %cst_13 = arith.constant dense<0.000000e+00> : vector<8xf32>
    %39 = vector.multi_reduction <add>, %38, %cst_13 [1] : vector<8x128xf32> to vector<8xf32>
    %40 = vector.shape_cast %39 : vector<8xf32> to vector<8x1xf32>
    %cst_14 = arith.constant 1.280000e+02 : f32
    %41 = vector.broadcast %cst_14 : f32 to vector<8x1xf32>
    %42 = arith.divf %40, %41 : vector<8x1xf32>
    %43 = vector.broadcast %33 : vector<8x1xf32> to vector<8x128xf32>
    %44 = arith.subf %29, %43 : vector<8x128xf32>
    %cst_15 = arith.constant 1.000000e-07 : f32
    %45 = vector.broadcast %cst_15 : f32 to vector<8x1xf32>
    %46 = arith.addf %42, %45 : vector<8x1xf32>
    %47 = math.rsqrt %46 : vector<8x1xf32>
    %48 = vector.broadcast %47 : vector<8x1xf32> to vector<8x128xf32>
    %49 = arith.mulf %44, %48 : vector<8x128xf32>
    %50 = vector.broadcast %2 : vector<1x128xf32> to vector<8x128xf32>
    %51 = arith.mulf %49, %50 : vector<8x128xf32>
    %52 = vector.broadcast %3 : vector<1x128xf32> to vector<8x128xf32>
    %53 = arith.addf %51, %52 : vector<8x128xf32>
    %c0_16 = arith.constant 0 : index
    %c0_17 = arith.constant 0 : index
    %c0_18 = arith.constant 0 : index
    %54 = vector.load %arg5[%c0_16, %c0_17, %c0_18] : memref<2x128x384xf32, #tpu.memory_space<vmem>>, vector<1x128x384xf32>
    %55 = vector.shape_cast %54 : vector<1x128x384xf32> to vector<128x384xf32>
    %c0_19 = arith.constant 0 : index
    %c0_20 = arith.constant 0 : index
    %c0_21 = arith.constant 0 : index
    %56 = vector.load %arg6[%c0_19, %c0_20, %c0_21] : memref<2x1x384xf32, #tpu.memory_space<vmem>>, vector<1x1x384xf32>
    %57 = vector.shape_cast %56 : vector<1x1x384xf32> to vector<1x384xf32>
    %c0_22 = arith.constant 0 : index
    %c0_23 = arith.constant 0 : index
    %c0_24 = arith.constant 0 : index
    %58 = vector.load %arg7[%c0_22, %c0_23, %c0_24] : memref<2x128x128xf32, #tpu.memory_space<vmem>>, vector<1x128x128xf32>
    %59 = vector.shape_cast %58 : vector<1x128x128xf32> to vector<128x128xf32>
    %c0_25 = arith.constant 0 : index
    %c0_26 = arith.constant 0 : index
    %c0_27 = arith.constant 0 : index
    %60 = vector.load %arg8[%c0_25, %c0_26, %c0_27] : memref<2x1x128xf32, #tpu.memory_space<vmem>>, vector<1x1x128xf32>
    %61 = vector.shape_cast %60 : vector<1x1x128xf32> to vector<1x128xf32>
    %c0_28 = arith.constant 0 : index
    %c0_29 = arith.constant 0 : index
    %c0_30 = arith.constant 0 : index
    %62 = vector.load %arg9[%c0_28, %c0_29, %c0_30] : memref<2x1x128xf32, #tpu.memory_space<vmem>>, vector<1x1x128xf32>
    %63 = vector.shape_cast %62 : vector<1x1x128xf32> to vector<1x128xf32>
    %c0_31 = arith.constant 0 : index
    %c0_32 = arith.constant 0 : index
    %c0_33 = arith.constant 0 : index
    %64 = vector.load %arg10[%c0_31, %c0_32, %c0_33] : memref<2x1x128xf32, #tpu.memory_space<vmem>>, vector<1x1x128xf32>
    %65 = vector.shape_cast %64 : vector<1x1x128xf32> to vector<1x128xf32>
    %c0_34 = arith.constant 0 : index
    %c0_35 = arith.constant 0 : index
    %c0_36 = arith.constant 0 : index
    %66 = vector.load %arg11[%c0_34, %c0_35, %c0_36] : memref<2x128x256xf32, #tpu.memory_space<vmem>>, vector<1x128x256xf32>
    %67 = vector.shape_cast %66 : vector<1x128x256xf32> to vector<128x256xf32>
    %c0_37 = arith.constant 0 : index
    %c0_38 = arith.constant 0 : index
    %c0_39 = arith.constant 0 : index
    %68 = vector.load %arg12[%c0_37, %c0_38, %c0_39] : memref<2x1x256xf32, #tpu.memory_space<vmem>>, vector<1x1x256xf32>
    %69 = vector.shape_cast %68 : vector<1x1x256xf32> to vector<1x256xf32>
    %c0_40 = arith.constant 0 : index
    %c0_41 = arith.constant 0 : index
    %c0_42 = arith.constant 0 : index
    %70 = vector.load %arg13[%c0_40, %c0_41, %c0_42] : memref<2x256x128xf32, #tpu.memory_space<vmem>>, vector<1x256x128xf32>
    %71 = vector.shape_cast %70 : vector<1x256x128xf32> to vector<256x128xf32>
    %c0_43 = arith.constant 0 : index
    %c0_44 = arith.constant 0 : index
    %c0_45 = arith.constant 0 : index
    %72 = vector.load %arg14[%c0_43, %c0_44, %c0_45] : memref<2x1x128xf32, #tpu.memory_space<vmem>>, vector<1x1x128xf32>
    %73 = vector.shape_cast %72 : vector<1x1x128xf32> to vector<1x128xf32>
    %c0_46 = arith.constant 0 : index
    %c0_47 = arith.constant 0 : index
    %c0_48 = arith.constant 0 : index
    %74 = vector.load %arg15[%c0_46, %c0_47, %c0_48] : memref<2x1x128xf32, #tpu.memory_space<vmem>>, vector<1x1x128xf32>
    %75 = vector.shape_cast %74 : vector<1x1x128xf32> to vector<1x128xf32>
    %c0_49 = arith.constant 0 : index
    %c0_50 = arith.constant 0 : index
    %c0_51 = arith.constant 0 : index
    %76 = vector.load %arg16[%c0_49, %c0_50, %c0_51] : memref<2x1x128xf32, #tpu.memory_space<vmem>>, vector<1x1x128xf32>
    %77 = vector.shape_cast %76 : vector<1x1x128xf32> to vector<1x128xf32>
    %cst_52 = arith.constant dense<0.000000e+00> : vector<8x384xf32>
    %78 = tpu.matmul %28, %55, %cst_52 {dimension_numbers = #tpu.dot_dimension_numbers<[1], [0], [0], [1], [0, 0, 1, 1], [], []>} : vector<8x128xf32>, vector<128x384xf32>, vector<8x384xf32> -> vector<8x384xf32>
    %79 = vector.broadcast %57 : vector<1x384xf32> to vector<8x384xf32>
    %80 = arith.addf %78, %79 : vector<8x384xf32>
    %81 = vector.extract_strided_slice %1 {offsets = [0, 0], sizes = [1, 8], strides = [1, 1]} : vector<2x8xf32> to vector<1x8xf32>
    %82 = vector.extract_strided_slice %80 {offsets = [0, 0], sizes = [8, 64], strides = [1, 1]} : vector<8x384xf32> to vector<8x64xf32>
    %83 = vector.extract_strided_slice %80 {offsets = [0, 128], sizes = [8, 64], strides = [1, 1]} : vector<8x384xf32> to vector<8x64xf32>
    %84 = vector.extract_strided_slice %80 {offsets = [0, 256], sizes = [8, 64], strides = [1, 1]} : vector<8x384xf32> to vector<8x64xf32>
    %cst_53 = arith.constant dense<0.000000e+00> : vector<8x8xf32>
    %85 = tpu.matmul %82, %83, %cst_53 {dimension_numbers = #tpu.dot_dimension_numbers<[1], [1], [0], [0], [0, 0, 1, 0], [], []>} : vector<8x64xf32>, vector<8x64xf32>, vector<8x8xf32> -> vector<8x8xf32>
    %cst_54 = arith.constant 1.250000e-01 : f32
    %86 = vector.broadcast %cst_54 : f32 to vector<8x8xf32>
    %87 = arith.mulf %85, %86 : vector<8x8xf32>
    %88 = vector.broadcast %81 : vector<1x8xf32> to vector<8x8xf32>
    %89 = arith.addf %87, %88 : vector<8x8xf32>
    %cst_55 = arith.constant dense<0xFF800000> : vector<8xf32>
    %90 = vector.multi_reduction <maximumf>, %89, %cst_55 [1] : vector<8x8xf32> to vector<8xf32>
    %91 = vector.shape_cast %90 : vector<8xf32> to vector<8x1xf32>
    %92 = vector.broadcast %91 : vector<8x1xf32> to vector<8x8xf32>
    %93 = arith.subf %89, %92 : vector<8x8xf32>
    %94 = math.exp %93 : vector<8x8xf32>
    %cst_56 = arith.constant dense<0.000000e+00> : vector<8xf32>
    %95 = vector.multi_reduction <add>, %94, %cst_56 [1] : vector<8x8xf32> to vector<8xf32>
    %96 = vector.shape_cast %95 : vector<8xf32> to vector<8x1xf32>
    %97 = tpu.reciprocal %96 {approx = true} : vector<8x1xf32> -> vector<8x1xf32>
    %98 = vector.broadcast %97 : vector<8x1xf32> to vector<8x8xf32>
    %99 = arith.mulf %94, %98 : vector<8x8xf32>
    %cst_57 = arith.constant dense<0.000000e+00> : vector<8x64xf32>
    %100 = tpu.matmul %99, %84, %cst_57 {dimension_numbers = #tpu.dot_dimension_numbers<[1], [0], [0], [1], [0, 0, 1, 1], [], []>} : vector<8x8xf32>, vector<8x64xf32>, vector<8x64xf32> -> vector<8x64xf32>
    %101 = vector.extract_strided_slice %59 {offsets = [0, 0], sizes = [64, 128], strides = [1, 1]} : vector<128x128xf32> to vector<64x128xf32>
    %cst_58 = arith.constant dense<0.000000e+00> : vector<8x128xf32>
    %102 = tpu.matmul %100, %101, %cst_58 {dimension_numbers = #tpu.dot_dimension_numbers<[1], [0], [0], [1], [0, 0, 1, 1], [], []>} : vector<8x64xf32>, vector<64x128xf32>, vector<8x128xf32> -> vector<8x128xf32>
    %103 = vector.broadcast %61 : vector<1x128xf32> to vector<8x128xf32>
    %104 = arith.addf %103, %102 : vector<8x128xf32>
    %105 = vector.extract_strided_slice %80 {offsets = [0, 64], sizes = [8, 64], strides = [1, 1]} : vector<8x384xf32> to vector<8x64xf32>
    %106 = vector.extract_strided_slice %80 {offsets = [0, 192], sizes = [8, 64], strides = [1, 1]} : vector<8x384xf32> to vector<8x64xf32>
    %107 = vector.extract_strided_slice %80 {offsets = [0, 320], sizes = [8, 64], strides = [1, 1]} : vector<8x384xf32> to vector<8x64xf32>
    %cst_59 = arith.constant dense<0.000000e+00> : vector<8x8xf32>
    %108 = tpu.matmul %105, %106, %cst_59 {dimension_numbers = #tpu.dot_dimension_numbers<[1], [1], [0], [0], [0, 0, 1, 0], [], []>} : vector<8x64xf32>, vector<8x64xf32>, vector<8x8xf32> -> vector<8x8xf32>
    %cst_60 = arith.constant 1.250000e-01 : f32
    %109 = vector.broadcast %cst_60 : f32 to vector<8x8xf32>
    %110 = arith.mulf %108, %109 : vector<8x8xf32>
    %111 = vector.broadcast %81 : vector<1x8xf32> to vector<8x8xf32>
    %112 = arith.addf %110, %111 : vector<8x8xf32>
    %cst_61 = arith.constant dense<0xFF800000> : vector<8xf32>
    %113 = vector.multi_reduction <maximumf>, %112, %cst_61 [1] : vector<8x8xf32> to vector<8xf32>
    %114 = vector.shape_cast %113 : vector<8xf32> to vector<8x1xf32>
    %115 = vector.broadcast %114 : vector<8x1xf32> to vector<8x8xf32>
    %116 = arith.subf %112, %115 : vector<8x8xf32>
    %117 = math.exp %116 : vector<8x8xf32>
    %cst_62 = arith.constant dense<0.000000e+00> : vector<8xf32>
    %118 = vector.multi_reduction <add>, %117, %cst_62 [1] : vector<8x8xf32> to vector<8xf32>
    %119 = vector.shape_cast %118 : vector<8xf32> to vector<8x1xf32>
    %120 = tpu.reciprocal %119 {approx = true} : vector<8x1xf32> -> vector<8x1xf32>
    %121 = vector.broadcast %120 : vector<8x1xf32> to vector<8x8xf32>
    %122 = arith.mulf %117, %121 : vector<8x8xf32>
    %cst_63 = arith.constant dense<0.000000e+00> : vector<8x64xf32>
    %123 = tpu.matmul %122, %107, %cst_63 {dimension_numbers = #tpu.dot_dimension_numbers<[1], [0], [0], [1], [0, 0, 1, 1], [], []>} : vector<8x8xf32>, vector<8x64xf32>, vector<8x64xf32> -> vector<8x64xf32>
    %124 = vector.extract_strided_slice %59 {offsets = [64, 0], sizes = [64, 128], strides = [1, 1]} : vector<128x128xf32> to vector<64x128xf32>
    %cst_64 = arith.constant dense<0.000000e+00> : vector<8x128xf32>
    %125 = tpu.matmul %123, %124, %cst_64 {dimension_numbers = #tpu.dot_dimension_numbers<[1], [0], [0], [1], [0, 0, 1, 1], [], []>} : vector<8x64xf32>, vector<64x128xf32>, vector<8x128xf32> -> vector<8x128xf32>
    %126 = arith.addf %104, %125 : vector<8x128xf32>
    %127 = arith.addf %126, %28 : vector<8x128xf32>
    %cst_65 = arith.constant dense<0.000000e+00> : vector<8xf32>
    %128 = vector.multi_reduction <add>, %127, %cst_65 [1] : vector<8x128xf32> to vector<8xf32>
    %129 = vector.shape_cast %128 : vector<8xf32> to vector<8x1xf32>
    %cst_66 = arith.constant 1.280000e+02 : f32
    %130 = vector.broadcast %cst_66 : f32 to vector<8x1xf32>
    %131 = arith.divf %129, %130 : vector<8x1xf32>
    %132 = vector.broadcast %131 : vector<8x1xf32> to vector<8x128xf32>
    %133 = arith.subf %127, %132 : vector<8x128xf32>
    %134 = vector.broadcast %131 : vector<8x1xf32> to vector<8x128xf32>
    %135 = arith.subf %127, %134 : vector<8x128xf32>
    %136 = arith.mulf %133, %135 : vector<8x128xf32>
    %cst_67 = arith.constant dense<0.000000e+00> : vector<8xf32>
    %137 = vector.multi_reduction <add>, %136, %cst_67 [1] : vector<8x128xf32> to vector<8xf32>
    %138 = vector.shape_cast %137 : vector<8xf32> to vector<8x1xf32>
    %cst_68 = arith.constant 1.280000e+02 : f32
    %139 = vector.broadcast %cst_68 : f32 to vector<8x1xf32>
    %140 = arith.divf %138, %139 : vector<8x1xf32>
    %141 = vector.broadcast %131 : vector<8x1xf32> to vector<8x128xf32>
    %142 = arith.subf %127, %141 : vector<8x128xf32>
    %cst_69 = arith.constant 1.000000e-07 : f32
    %143 = vector.broadcast %cst_69 : f32 to vector<8x1xf32>
    %144 = arith.addf %140, %143 : vector<8x1xf32>
    %145 = math.rsqrt %144 : vector<8x1xf32>
    %146 = vector.broadcast %145 : vector<8x1xf32> to vector<8x128xf32>
    %147 = arith.mulf %142, %146 : vector<8x128xf32>
    %148 = vector.broadcast %63 : vector<1x128xf32> to vector<8x128xf32>
    %149 = arith.mulf %147, %148 : vector<8x128xf32>
    %150 = vector.broadcast %65 : vector<1x128xf32> to vector<8x128xf32>
    %151 = arith.addf %149, %150 : vector<8x128xf32>
    %cst_70 = arith.constant dense<0.000000e+00> : vector<8x256xf32>
    %152 = tpu.matmul %151, %67, %cst_70 {dimension_numbers = #tpu.dot_dimension_numbers<[1], [0], [0], [1], [0, 0, 1, 1], [], []>} : vector<8x128xf32>, vector<128x256xf32>, vector<8x256xf32> -> vector<8x256xf32>
    %153 = vector.broadcast %69 : vector<1x256xf32> to vector<8x256xf32>
    %154 = arith.addf %152, %153 : vector<8x256xf32>
    %cst_71 = arith.constant 5.000000e-01 : f32
    %155 = vector.broadcast %cst_71 : f32 to vector<8x256xf32>
    %156 = arith.mulf %155, %154 : vector<8x256xf32>
    %cst_72 = arith.constant 4.471500e-02 : f32
    %157 = vector.broadcast %cst_72 : f32 to vector<8x256xf32>
    %158 = arith.mulf %157, %154 : vector<8x256xf32>
    %159 = arith.mulf %158, %154 : vector<8x256xf32>
    %160 = arith.mulf %159, %154 : vector<8x256xf32>
    %161 = arith.addf %154, %160 : vector<8x256xf32>
    %cst_73 = arith.constant 0.797884583 : f32
    %162 = vector.broadcast %cst_73 : f32 to vector<8x256xf32>
    %163 = arith.mulf %162, %161 : vector<8x256xf32>
    %164 = math.tanh %163 : vector<8x256xf32>
    %cst_74 = arith.constant 1.000000e+00 : f32
    %165 = vector.broadcast %cst_74 : f32 to vector<8x256xf32>
    %166 = arith.addf %165, %164 : vector<8x256xf32>
    %167 = arith.mulf %156, %166 : vector<8x256xf32>
    %cst_75 = arith.constant dense<0.000000e+00> : vector<8x128xf32>
    %168 = tpu.matmul %167, %71, %cst_75 {dimension_numbers = #tpu.dot_dimension_numbers<[1], [0], [0], [1], [0, 0, 1, 1], [], []>} : vector<8x256xf32>, vector<256x128xf32>, vector<8x128xf32> -> vector<8x128xf32>
    %169 = vector.broadcast %73 : vector<1x128xf32> to vector<8x128xf32>
    %170 = arith.addf %168, %169 : vector<8x128xf32>
    %171 = arith.addf %170, %151 : vector<8x128xf32>
    %cst_76 = arith.constant dense<0.000000e+00> : vector<8xf32>
    %172 = vector.multi_reduction <add>, %171, %cst_76 [1] : vector<8x128xf32> to vector<8xf32>
    %173 = vector.shape_cast %172 : vector<8xf32> to vector<8x1xf32>
    %cst_77 = arith.constant 1.280000e+02 : f32
    %174 = vector.broadcast %cst_77 : f32 to vector<8x1xf32>
    %175 = arith.divf %173, %174 : vector<8x1xf32>
    %176 = vector.broadcast %175 : vector<8x1xf32> to vector<8x128xf32>
    %177 = arith.subf %171, %176 : vector<8x128xf32>
    %178 = vector.broadcast %175 : vector<8x1xf32> to vector<8x128xf32>
    %179 = arith.subf %171, %178 : vector<8x128xf32>
    %180 = arith.mulf %177, %179 : vector<8x128xf32>
    %cst_78 = arith.constant dense<0.000000e+00> : vector<8xf32>
    %181 = vector.multi_reduction <add>, %180, %cst_78 [1] : vector<8x128xf32> to vector<8xf32>
    %182 = vector.shape_cast %181 : vector<8xf32> to vector<8x1xf32>
    %cst_79 = arith.constant 1.280000e+02 : f32
    %183 = vector.broadcast %cst_79 : f32 to vector<8x1xf32>
    %184 = arith.divf %182, %183 : vector<8x1xf32>
    %185 = vector.broadcast %175 : vector<8x1xf32> to vector<8x128xf32>
    %186 = arith.subf %171, %185 : vector<8x128xf32>
    %cst_80 = arith.constant 1.000000e-07 : f32
    %187 = vector.broadcast %cst_80 : f32 to vector<8x1xf32>
    %188 = arith.addf %184, %187 : vector<8x1xf32>
    %189 = math.rsqrt %188 : vector<8x1xf32>
    %190 = vector.broadcast %189 : vector<8x1xf32> to vector<8x128xf32>
    %191 = arith.mulf %186, %190 : vector<8x128xf32>
    %192 = vector.broadcast %75 : vector<1x128xf32> to vector<8x128xf32>
    %193 = arith.mulf %191, %192 : vector<8x128xf32>
    %194 = vector.broadcast %77 : vector<1x128xf32> to vector<8x128xf32>
    %195 = arith.addf %193, %194 : vector<8x128xf32>
    %cst_81 = arith.constant dense<0.000000e+00> : vector<8x384xf32>
    %196 = tpu.matmul %53, %55, %cst_81 {dimension_numbers = #tpu.dot_dimension_numbers<[1], [0], [0], [1], [0, 0, 1, 1], [], []>} : vector<8x128xf32>, vector<128x384xf32>, vector<8x384xf32> -> vector<8x384xf32>
    %197 = vector.broadcast %57 : vector<1x384xf32> to vector<8x384xf32>
    %198 = arith.addf %196, %197 : vector<8x384xf32>
    %199 = vector.extract_strided_slice %1 {offsets = [1, 0], sizes = [1, 8], strides = [1, 1]} : vector<2x8xf32> to vector<1x8xf32>
    %200 = vector.extract_strided_slice %198 {offsets = [0, 0], sizes = [8, 64], strides = [1, 1]} : vector<8x384xf32> to vector<8x64xf32>
    %201 = vector.extract_strided_slice %198 {offsets = [0, 128], sizes = [8, 64], strides = [1, 1]} : vector<8x384xf32> to vector<8x64xf32>
    %202 = vector.extract_strided_slice %198 {offsets = [0, 256], sizes = [8, 64], strides = [1, 1]} : vector<8x384xf32> to vector<8x64xf32>
    %cst_82 = arith.constant dense<0.000000e+00> : vector<8x8xf32>
    %203 = tpu.matmul %200, %201, %cst_82 {dimension_numbers = #tpu.dot_dimension_numbers<[1], [1], [0], [0], [0, 0, 1, 0], [], []>} : vector<8x64xf32>, vector<8x64xf32>, vector<8x8xf32> -> vector<8x8xf32>
    %cst_83 = arith.constant 1.250000e-01 : f32
    %204 = vector.broadcast %cst_83 : f32 to vector<8x8xf32>
    %205 = arith.mulf %203, %204 : vector<8x8xf32>
    %206 = vector.broadcast %199 : vector<1x8xf32> to vector<8x8xf32>
    %207 = arith.addf %205, %206 : vector<8x8xf32>
    %cst_84 = arith.constant dense<0xFF800000> : vector<8xf32>
    %208 = vector.multi_reduction <maximumf>, %207, %cst_84 [1] : vector<8x8xf32> to vector<8xf32>
    %209 = vector.shape_cast %208 : vector<8xf32> to vector<8x1xf32>
    %210 = vector.broadcast %209 : vector<8x1xf32> to vector<8x8xf32>
    %211 = arith.subf %207, %210 : vector<8x8xf32>
    %212 = math.exp %211 : vector<8x8xf32>
    %cst_85 = arith.constant dense<0.000000e+00> : vector<8xf32>
    %213 = vector.multi_reduction <add>, %212, %cst_85 [1] : vector<8x8xf32> to vector<8xf32>
    %214 = vector.shape_cast %213 : vector<8xf32> to vector<8x1xf32>
    %215 = tpu.reciprocal %214 {approx = true} : vector<8x1xf32> -> vector<8x1xf32>
    %216 = vector.broadcast %215 : vector<8x1xf32> to vector<8x8xf32>
    %217 = arith.mulf %212, %216 : vector<8x8xf32>
    %cst_86 = arith.constant dense<0.000000e+00> : vector<8x64xf32>
    %218 = tpu.matmul %217, %202, %cst_86 {dimension_numbers = #tpu.dot_dimension_numbers<[1], [0], [0], [1], [0, 0, 1, 1], [], []>} : vector<8x8xf32>, vector<8x64xf32>, vector<8x64xf32> -> vector<8x64xf32>
    %219 = vector.extract_strided_slice %59 {offsets = [0, 0], sizes = [64, 128], strides = [1, 1]} : vector<128x128xf32> to vector<64x128xf32>
    %cst_87 = arith.constant dense<0.000000e+00> : vector<8x128xf32>
    %220 = tpu.matmul %218, %219, %cst_87 {dimension_numbers = #tpu.dot_dimension_numbers<[1], [0], [0], [1], [0, 0, 1, 1], [], []>} : vector<8x64xf32>, vector<64x128xf32>, vector<8x128xf32> -> vector<8x128xf32>
    %221 = vector.broadcast %61 : vector<1x128xf32> to vector<8x128xf32>
    %222 = arith.addf %221, %220 : vector<8x128xf32>
    %223 = vector.extract_strided_slice %198 {offsets = [0, 64], sizes = [8, 64], strides = [1, 1]} : vector<8x384xf32> to vector<8x64xf32>
    %224 = vector.extract_strided_slice %198 {offsets = [0, 192], sizes = [8, 64], strides = [1, 1]} : vector<8x384xf32> to vector<8x64xf32>
    %225 = vector.extract_strided_slice %198 {offsets = [0, 320], sizes = [8, 64], strides = [1, 1]} : vector<8x384xf32> to vector<8x64xf32>
    %cst_88 = arith.constant dense<0.000000e+00> : vector<8x8xf32>
    %226 = tpu.matmul %223, %224, %cst_88 {dimension_numbers = #tpu.dot_dimension_numbers<[1], [1], [0], [0], [0, 0, 1, 0], [], []>} : vector<8x64xf32>, vector<8x64xf32>, vector<8x8xf32> -> vector<8x8xf32>
    %cst_89 = arith.constant 1.250000e-01 : f32
    %227 = vector.broadcast %cst_89 : f32 to vector<8x8xf32>
    %228 = arith.mulf %226, %227 : vector<8x8xf32>
    %229 = vector.broadcast %199 : vector<1x8xf32> to vector<8x8xf32>
    %230 = arith.addf %228, %229 : vector<8x8xf32>
    %cst_90 = arith.constant dense<0xFF800000> : vector<8xf32>
    %231 = vector.multi_reduction <maximumf>, %230, %cst_90 [1] : vector<8x8xf32> to vector<8xf32>
    %232 = vector.shape_cast %231 : vector<8xf32> to vector<8x1xf32>
    %233 = vector.broadcast %232 : vector<8x1xf32> to vector<8x8xf32>
    %234 = arith.subf %230, %233 : vector<8x8xf32>
    %235 = math.exp %234 : vector<8x8xf32>
    %cst_91 = arith.constant dense<0.000000e+00> : vector<8xf32>
    %236 = vector.multi_reduction <add>, %235, %cst_91 [1] : vector<8x8xf32> to vector<8xf32>
    %237 = vector.shape_cast %236 : vector<8xf32> to vector<8x1xf32>
    %238 = tpu.reciprocal %237 {approx = true} : vector<8x1xf32> -> vector<8x1xf32>
    %239 = vector.broadcast %238 : vector<8x1xf32> to vector<8x8xf32>
    %240 = arith.mulf %235, %239 : vector<8x8xf32>
    %cst_92 = arith.constant dense<0.000000e+00> : vector<8x64xf32>
    %241 = tpu.matmul %240, %225, %cst_92 {dimension_numbers = #tpu.dot_dimension_numbers<[1], [0], [0], [1], [0, 0, 1, 1], [], []>} : vector<8x8xf32>, vector<8x64xf32>, vector<8x64xf32> -> vector<8x64xf32>
    %242 = vector.extract_strided_slice %59 {offsets = [64, 0], sizes = [64, 128], strides = [1, 1]} : vector<128x128xf32> to vector<64x128xf32>
    %cst_93 = arith.constant dense<0.000000e+00> : vector<8x128xf32>
    %243 = tpu.matmul %241, %242, %cst_93 {dimension_numbers = #tpu.dot_dimension_numbers<[1], [0], [0], [1], [0, 0, 1, 1], [], []>} : vector<8x64xf32>, vector<64x128xf32>, vector<8x128xf32> -> vector<8x128xf32>
    %244 = arith.addf %222, %243 : vector<8x128xf32>
    %245 = arith.addf %244, %53 : vector<8x128xf32>
    %cst_94 = arith.constant dense<0.000000e+00> : vector<8xf32>
    %246 = vector.multi_reduction <add>, %245, %cst_94 [1] : vector<8x128xf32> to vector<8xf32>
    %247 = vector.shape_cast %246 : vector<8xf32> to vector<8x1xf32>
    %cst_95 = arith.constant 1.280000e+02 : f32
    %248 = vector.broadcast %cst_95 : f32 to vector<8x1xf32>
    %249 = arith.divf %247, %248 : vector<8x1xf32>
    %250 = vector.broadcast %249 : vector<8x1xf32> to vector<8x128xf32>
    %251 = arith.subf %245, %250 : vector<8x128xf32>
    %252 = vector.broadcast %249 : vector<8x1xf32> to vector<8x128xf32>
    %253 = arith.subf %245, %252 : vector<8x128xf32>
    %254 = arith.mulf %251, %253 : vector<8x128xf32>
    %cst_96 = arith.constant dense<0.000000e+00> : vector<8xf32>
    %255 = vector.multi_reduction <add>, %254, %cst_96 [1] : vector<8x128xf32> to vector<8xf32>
    %256 = vector.shape_cast %255 : vector<8xf32> to vector<8x1xf32>
    %cst_97 = arith.constant 1.280000e+02 : f32
    %257 = vector.broadcast %cst_97 : f32 to vector<8x1xf32>
    %258 = arith.divf %256, %257 : vector<8x1xf32>
    %259 = vector.broadcast %249 : vector<8x1xf32> to vector<8x128xf32>
    %260 = arith.subf %245, %259 : vector<8x128xf32>
    %cst_98 = arith.constant 1.000000e-07 : f32
    %261 = vector.broadcast %cst_98 : f32 to vector<8x1xf32>
    %262 = arith.addf %258, %261 : vector<8x1xf32>
    %263 = math.rsqrt %262 : vector<8x1xf32>
    %264 = vector.broadcast %263 : vector<8x1xf32> to vector<8x128xf32>
    %265 = arith.mulf %260, %264 : vector<8x128xf32>
    %266 = vector.broadcast %63 : vector<1x128xf32> to vector<8x128xf32>
    %267 = arith.mulf %265, %266 : vector<8x128xf32>
    %268 = vector.broadcast %65 : vector<1x128xf32> to vector<8x128xf32>
    %269 = arith.addf %267, %268 : vector<8x128xf32>
    %cst_99 = arith.constant dense<0.000000e+00> : vector<8x256xf32>
    %270 = tpu.matmul %269, %67, %cst_99 {dimension_numbers = #tpu.dot_dimension_numbers<[1], [0], [0], [1], [0, 0, 1, 1], [], []>} : vector<8x128xf32>, vector<128x256xf32>, vector<8x256xf32> -> vector<8x256xf32>
    %271 = vector.broadcast %69 : vector<1x256xf32> to vector<8x256xf32>
    %272 = arith.addf %270, %271 : vector<8x256xf32>
    %cst_100 = arith.constant 5.000000e-01 : f32
    %273 = vector.broadcast %cst_100 : f32 to vector<8x256xf32>
    %274 = arith.mulf %273, %272 : vector<8x256xf32>
    %cst_101 = arith.constant 4.471500e-02 : f32
    %275 = vector.broadcast %cst_101 : f32 to vector<8x256xf32>
    %276 = arith.mulf %275, %272 : vector<8x256xf32>
    %277 = arith.mulf %276, %272 : vector<8x256xf32>
    %278 = arith.mulf %277, %272 : vector<8x256xf32>
    %279 = arith.addf %272, %278 : vector<8x256xf32>
    %cst_102 = arith.constant 0.797884583 : f32
    %280 = vector.broadcast %cst_102 : f32 to vector<8x256xf32>
    %281 = arith.mulf %280, %279 : vector<8x256xf32>
    %282 = math.tanh %281 : vector<8x256xf32>
    %cst_103 = arith.constant 1.000000e+00 : f32
    %283 = vector.broadcast %cst_103 : f32 to vector<8x256xf32>
    %284 = arith.addf %283, %282 : vector<8x256xf32>
    %285 = arith.mulf %274, %284 : vector<8x256xf32>
    %cst_104 = arith.constant dense<0.000000e+00> : vector<8x128xf32>
    %286 = tpu.matmul %285, %71, %cst_104 {dimension_numbers = #tpu.dot_dimension_numbers<[1], [0], [0], [1], [0, 0, 1, 1], [], []>} : vector<8x256xf32>, vector<256x128xf32>, vector<8x128xf32> -> vector<8x128xf32>
    %287 = vector.broadcast %73 : vector<1x128xf32> to vector<8x128xf32>
    %288 = arith.addf %286, %287 : vector<8x128xf32>
    %289 = arith.addf %288, %269 : vector<8x128xf32>
    %cst_105 = arith.constant dense<0.000000e+00> : vector<8xf32>
    %290 = vector.multi_reduction <add>, %289, %cst_105 [1] : vector<8x128xf32> to vector<8xf32>
    %291 = vector.shape_cast %290 : vector<8xf32> to vector<8x1xf32>
    %cst_106 = arith.constant 1.280000e+02 : f32
    %292 = vector.broadcast %cst_106 : f32 to vector<8x1xf32>
    %293 = arith.divf %291, %292 : vector<8x1xf32>
    %294 = vector.broadcast %293 : vector<8x1xf32> to vector<8x128xf32>
    %295 = arith.subf %289, %294 : vector<8x128xf32>
    %296 = vector.broadcast %293 : vector<8x1xf32> to vector<8x128xf32>
    %297 = arith.subf %289, %296 : vector<8x128xf32>
    %298 = arith.mulf %295, %297 : vector<8x128xf32>
    %cst_107 = arith.constant dense<0.000000e+00> : vector<8xf32>
    %299 = vector.multi_reduction <add>, %298, %cst_107 [1] : vector<8x128xf32> to vector<8xf32>
    %300 = vector.shape_cast %299 : vector<8xf32> to vector<8x1xf32>
    %cst_108 = arith.constant 1.280000e+02 : f32
    %301 = vector.broadcast %cst_108 : f32 to vector<8x1xf32>
    %302 = arith.divf %300, %301 : vector<8x1xf32>
    %303 = vector.broadcast %293 : vector<8x1xf32> to vector<8x128xf32>
    %304 = arith.subf %289, %303 : vector<8x128xf32>
    %cst_109 = arith.constant 1.000000e-07 : f32
    %305 = vector.broadcast %cst_109 : f32 to vector<8x1xf32>
    %306 = arith.addf %302, %305 : vector<8x1xf32>
    %307 = math.rsqrt %306 : vector<8x1xf32>
    %308 = vector.broadcast %307 : vector<8x1xf32> to vector<8x128xf32>
    %309 = arith.mulf %304, %308 : vector<8x128xf32>
    %310 = vector.broadcast %75 : vector<1x128xf32> to vector<8x128xf32>
    %311 = arith.mulf %309, %310 : vector<8x128xf32>
    %312 = vector.broadcast %77 : vector<1x128xf32> to vector<8x128xf32>
    %313 = arith.addf %311, %312 : vector<8x128xf32>
    %c1 = arith.constant 1 : index
    %c0_110 = arith.constant 0 : index
    %c0_111 = arith.constant 0 : index
    %314 = vector.load %arg5[%c1, %c0_110, %c0_111] : memref<2x128x384xf32, #tpu.memory_space<vmem>>, vector<1x128x384xf32>
    %315 = vector.shape_cast %314 : vector<1x128x384xf32> to vector<128x384xf32>
    %c1_112 = arith.constant 1 : index
    %c0_113 = arith.constant 0 : index
    %c0_114 = arith.constant 0 : index
    %316 = vector.load %arg6[%c1_112, %c0_113, %c0_114] : memref<2x1x384xf32, #tpu.memory_space<vmem>>, vector<1x1x384xf32>
    %317 = vector.shape_cast %316 : vector<1x1x384xf32> to vector<1x384xf32>
    %c1_115 = arith.constant 1 : index
    %c0_116 = arith.constant 0 : index
    %c0_117 = arith.constant 0 : index
    %318 = vector.load %arg7[%c1_115, %c0_116, %c0_117] : memref<2x128x128xf32, #tpu.memory_space<vmem>>, vector<1x128x128xf32>
    %319 = vector.shape_cast %318 : vector<1x128x128xf32> to vector<128x128xf32>
    %c1_118 = arith.constant 1 : index
    %c0_119 = arith.constant 0 : index
    %c0_120 = arith.constant 0 : index
    %320 = vector.load %arg8[%c1_118, %c0_119, %c0_120] : memref<2x1x128xf32, #tpu.memory_space<vmem>>, vector<1x1x128xf32>
    %321 = vector.shape_cast %320 : vector<1x1x128xf32> to vector<1x128xf32>
    %c1_121 = arith.constant 1 : index
    %c0_122 = arith.constant 0 : index
    %c0_123 = arith.constant 0 : index
    %322 = vector.load %arg9[%c1_121, %c0_122, %c0_123] : memref<2x1x128xf32, #tpu.memory_space<vmem>>, vector<1x1x128xf32>
    %323 = vector.shape_cast %322 : vector<1x1x128xf32> to vector<1x128xf32>
    %c1_124 = arith.constant 1 : index
    %c0_125 = arith.constant 0 : index
    %c0_126 = arith.constant 0 : index
    %324 = vector.load %arg10[%c1_124, %c0_125, %c0_126] : memref<2x1x128xf32, #tpu.memory_space<vmem>>, vector<1x1x128xf32>
    %325 = vector.shape_cast %324 : vector<1x1x128xf32> to vector<1x128xf32>
    %c1_127 = arith.constant 1 : index
    %c0_128 = arith.constant 0 : index
    %c0_129 = arith.constant 0 : index
    %326 = vector.load %arg11[%c1_127, %c0_128, %c0_129] : memref<2x128x256xf32, #tpu.memory_space<vmem>>, vector<1x128x256xf32>
    %327 = vector.shape_cast %326 : vector<1x128x256xf32> to vector<128x256xf32>
    %c1_130 = arith.constant 1 : index
    %c0_131 = arith.constant 0 : index
    %c0_132 = arith.constant 0 : index
    %328 = vector.load %arg12[%c1_130, %c0_131, %c0_132] : memref<2x1x256xf32, #tpu.memory_space<vmem>>, vector<1x1x256xf32>
    %329 = vector.shape_cast %328 : vector<1x1x256xf32> to vector<1x256xf32>
    %c1_133 = arith.constant 1 : index
    %c0_134 = arith.constant 0 : index
    %c0_135 = arith.constant 0 : index
    %330 = vector.load %arg13[%c1_133, %c0_134, %c0_135] : memref<2x256x128xf32, #tpu.memory_space<vmem>>, vector<1x256x128xf32>
    %331 = vector.shape_cast %330 : vector<1x256x128xf32> to vector<256x128xf32>
    %c1_136 = arith.constant 1 : index
    %c0_137 = arith.constant 0 : index
    %c0_138 = arith.constant 0 : index
    %332 = vector.load %arg14[%c1_136, %c0_137, %c0_138] : memref<2x1x128xf32, #tpu.memory_space<vmem>>, vector<1x1x128xf32>
    %333 = vector.shape_cast %332 : vector<1x1x128xf32> to vector<1x128xf32>
    %c1_139 = arith.constant 1 : index
    %c0_140 = arith.constant 0 : index
    %c0_141 = arith.constant 0 : index
    %334 = vector.load %arg15[%c1_139, %c0_140, %c0_141] : memref<2x1x128xf32, #tpu.memory_space<vmem>>, vector<1x1x128xf32>
    %335 = vector.shape_cast %334 : vector<1x1x128xf32> to vector<1x128xf32>
    %c1_142 = arith.constant 1 : index
    %c0_143 = arith.constant 0 : index
    %c0_144 = arith.constant 0 : index
    %336 = vector.load %arg16[%c1_142, %c0_143, %c0_144] : memref<2x1x128xf32, #tpu.memory_space<vmem>>, vector<1x1x128xf32>
    %337 = vector.shape_cast %336 : vector<1x1x128xf32> to vector<1x128xf32>
    %cst_145 = arith.constant dense<0.000000e+00> : vector<8x384xf32>
    %338 = tpu.matmul %195, %315, %cst_145 {dimension_numbers = #tpu.dot_dimension_numbers<[1], [0], [0], [1], [0, 0, 1, 1], [], []>} : vector<8x128xf32>, vector<128x384xf32>, vector<8x384xf32> -> vector<8x384xf32>
    %339 = vector.broadcast %317 : vector<1x384xf32> to vector<8x384xf32>
    %340 = arith.addf %338, %339 : vector<8x384xf32>
    %341 = vector.extract_strided_slice %1 {offsets = [0, 0], sizes = [1, 8], strides = [1, 1]} : vector<2x8xf32> to vector<1x8xf32>
    %342 = vector.extract_strided_slice %340 {offsets = [0, 0], sizes = [8, 64], strides = [1, 1]} : vector<8x384xf32> to vector<8x64xf32>
    %343 = vector.extract_strided_slice %340 {offsets = [0, 128], sizes = [8, 64], strides = [1, 1]} : vector<8x384xf32> to vector<8x64xf32>
    %344 = vector.extract_strided_slice %340 {offsets = [0, 256], sizes = [8, 64], strides = [1, 1]} : vector<8x384xf32> to vector<8x64xf32>
    %cst_146 = arith.constant dense<0.000000e+00> : vector<8x8xf32>
    %345 = tpu.matmul %342, %343, %cst_146 {dimension_numbers = #tpu.dot_dimension_numbers<[1], [1], [0], [0], [0, 0, 1, 0], [], []>} : vector<8x64xf32>, vector<8x64xf32>, vector<8x8xf32> -> vector<8x8xf32>
    %cst_147 = arith.constant 1.250000e-01 : f32
    %346 = vector.broadcast %cst_147 : f32 to vector<8x8xf32>
    %347 = arith.mulf %345, %346 : vector<8x8xf32>
    %348 = vector.broadcast %341 : vector<1x8xf32> to vector<8x8xf32>
    %349 = arith.addf %347, %348 : vector<8x8xf32>
    %cst_148 = arith.constant dense<0xFF800000> : vector<8xf32>
    %350 = vector.multi_reduction <maximumf>, %349, %cst_148 [1] : vector<8x8xf32> to vector<8xf32>
    %351 = vector.shape_cast %350 : vector<8xf32> to vector<8x1xf32>
    %352 = vector.broadcast %351 : vector<8x1xf32> to vector<8x8xf32>
    %353 = arith.subf %349, %352 : vector<8x8xf32>
    %354 = math.exp %353 : vector<8x8xf32>
    %cst_149 = arith.constant dense<0.000000e+00> : vector<8xf32>
    %355 = vector.multi_reduction <add>, %354, %cst_149 [1] : vector<8x8xf32> to vector<8xf32>
    %356 = vector.shape_cast %355 : vector<8xf32> to vector<8x1xf32>
    %357 = tpu.reciprocal %356 {approx = true} : vector<8x1xf32> -> vector<8x1xf32>
    %358 = vector.broadcast %357 : vector<8x1xf32> to vector<8x8xf32>
    %359 = arith.mulf %354, %358 : vector<8x8xf32>
    %cst_150 = arith.constant dense<0.000000e+00> : vector<8x64xf32>
    %360 = tpu.matmul %359, %344, %cst_150 {dimension_numbers = #tpu.dot_dimension_numbers<[1], [0], [0], [1], [0, 0, 1, 1], [], []>} : vector<8x8xf32>, vector<8x64xf32>, vector<8x64xf32> -> vector<8x64xf32>
    %361 = vector.extract_strided_slice %319 {offsets = [0, 0], sizes = [64, 128], strides = [1, 1]} : vector<128x128xf32> to vector<64x128xf32>
    %cst_151 = arith.constant dense<0.000000e+00> : vector<8x128xf32>
    %362 = tpu.matmul %360, %361, %cst_151 {dimension_numbers = #tpu.dot_dimension_numbers<[1], [0], [0], [1], [0, 0, 1, 1], [], []>} : vector<8x64xf32>, vector<64x128xf32>, vector<8x128xf32> -> vector<8x128xf32>
    %363 = vector.broadcast %321 : vector<1x128xf32> to vector<8x128xf32>
    %364 = arith.addf %363, %362 : vector<8x128xf32>
    %365 = vector.extract_strided_slice %340 {offsets = [0, 64], sizes = [8, 64], strides = [1, 1]} : vector<8x384xf32> to vector<8x64xf32>
    %366 = vector.extract_strided_slice %340 {offsets = [0, 192], sizes = [8, 64], strides = [1, 1]} : vector<8x384xf32> to vector<8x64xf32>
    %367 = vector.extract_strided_slice %340 {offsets = [0, 320], sizes = [8, 64], strides = [1, 1]} : vector<8x384xf32> to vector<8x64xf32>
    %cst_152 = arith.constant dense<0.000000e+00> : vector<8x8xf32>
    %368 = tpu.matmul %365, %366, %cst_152 {dimension_numbers = #tpu.dot_dimension_numbers<[1], [1], [0], [0], [0, 0, 1, 0], [], []>} : vector<8x64xf32>, vector<8x64xf32>, vector<8x8xf32> -> vector<8x8xf32>
    %cst_153 = arith.constant 1.250000e-01 : f32
    %369 = vector.broadcast %cst_153 : f32 to vector<8x8xf32>
    %370 = arith.mulf %368, %369 : vector<8x8xf32>
    %371 = vector.broadcast %341 : vector<1x8xf32> to vector<8x8xf32>
    %372 = arith.addf %370, %371 : vector<8x8xf32>
    %cst_154 = arith.constant dense<0xFF800000> : vector<8xf32>
    %373 = vector.multi_reduction <maximumf>, %372, %cst_154 [1] : vector<8x8xf32> to vector<8xf32>
    %374 = vector.shape_cast %373 : vector<8xf32> to vector<8x1xf32>
    %375 = vector.broadcast %374 : vector<8x1xf32> to vector<8x8xf32>
    %376 = arith.subf %372, %375 : vector<8x8xf32>
    %377 = math.exp %376 : vector<8x8xf32>
    %cst_155 = arith.constant dense<0.000000e+00> : vector<8xf32>
    %378 = vector.multi_reduction <add>, %377, %cst_155 [1] : vector<8x8xf32> to vector<8xf32>
    %379 = vector.shape_cast %378 : vector<8xf32> to vector<8x1xf32>
    %380 = tpu.reciprocal %379 {approx = true} : vector<8x1xf32> -> vector<8x1xf32>
    %381 = vector.broadcast %380 : vector<8x1xf32> to vector<8x8xf32>
    %382 = arith.mulf %377, %381 : vector<8x8xf32>
    %cst_156 = arith.constant dense<0.000000e+00> : vector<8x64xf32>
    %383 = tpu.matmul %382, %367, %cst_156 {dimension_numbers = #tpu.dot_dimension_numbers<[1], [0], [0], [1], [0, 0, 1, 1], [], []>} : vector<8x8xf32>, vector<8x64xf32>, vector<8x64xf32> -> vector<8x64xf32>
    %384 = vector.extract_strided_slice %319 {offsets = [64, 0], sizes = [64, 128], strides = [1, 1]} : vector<128x128xf32> to vector<64x128xf32>
    %cst_157 = arith.constant dense<0.000000e+00> : vector<8x128xf32>
    %385 = tpu.matmul %383, %384, %cst_157 {dimension_numbers = #tpu.dot_dimension_numbers<[1], [0], [0], [1], [0, 0, 1, 1], [], []>} : vector<8x64xf32>, vector<64x128xf32>, vector<8x128xf32> -> vector<8x128xf32>
    %386 = arith.addf %364, %385 : vector<8x128xf32>
    %387 = arith.addf %386, %195 : vector<8x128xf32>
    %cst_158 = arith.constant dense<0.000000e+00> : vector<8xf32>
    %388 = vector.multi_reduction <add>, %387, %cst_158 [1] : vector<8x128xf32> to vector<8xf32>
    %389 = vector.shape_cast %388 : vector<8xf32> to vector<8x1xf32>
    %cst_159 = arith.constant 1.280000e+02 : f32
    %390 = vector.broadcast %cst_159 : f32 to vector<8x1xf32>
    %391 = arith.divf %389, %390 : vector<8x1xf32>
    %392 = vector.broadcast %391 : vector<8x1xf32> to vector<8x128xf32>
    %393 = arith.subf %387, %392 : vector<8x128xf32>
    %394 = vector.broadcast %391 : vector<8x1xf32> to vector<8x128xf32>
    %395 = arith.subf %387, %394 : vector<8x128xf32>
    %396 = arith.mulf %393, %395 : vector<8x128xf32>
    %cst_160 = arith.constant dense<0.000000e+00> : vector<8xf32>
    %397 = vector.multi_reduction <add>, %396, %cst_160 [1] : vector<8x128xf32> to vector<8xf32>
    %398 = vector.shape_cast %397 : vector<8xf32> to vector<8x1xf32>
    %cst_161 = arith.constant 1.280000e+02 : f32
    %399 = vector.broadcast %cst_161 : f32 to vector<8x1xf32>
    %400 = arith.divf %398, %399 : vector<8x1xf32>
    %401 = vector.broadcast %391 : vector<8x1xf32> to vector<8x128xf32>
    %402 = arith.subf %387, %401 : vector<8x128xf32>
    %cst_162 = arith.constant 1.000000e-07 : f32
    %403 = vector.broadcast %cst_162 : f32 to vector<8x1xf32>
    %404 = arith.addf %400, %403 : vector<8x1xf32>
    %405 = math.rsqrt %404 : vector<8x1xf32>
    %406 = vector.broadcast %405 : vector<8x1xf32> to vector<8x128xf32>
    %407 = arith.mulf %402, %406 : vector<8x128xf32>
    %408 = vector.broadcast %323 : vector<1x128xf32> to vector<8x128xf32>
    %409 = arith.mulf %407, %408 : vector<8x128xf32>
    %410 = vector.broadcast %325 : vector<1x128xf32> to vector<8x128xf32>
    %411 = arith.addf %409, %410 : vector<8x128xf32>
    %cst_163 = arith.constant dense<0.000000e+00> : vector<8x256xf32>
    %412 = tpu.matmul %411, %327, %cst_163 {dimension_numbers = #tpu.dot_dimension_numbers<[1], [0], [0], [1], [0, 0, 1, 1], [], []>} : vector<8x128xf32>, vector<128x256xf32>, vector<8x256xf32> -> vector<8x256xf32>
    %413 = vector.broadcast %329 : vector<1x256xf32> to vector<8x256xf32>
    %414 = arith.addf %412, %413 : vector<8x256xf32>
    %cst_164 = arith.constant 5.000000e-01 : f32
    %415 = vector.broadcast %cst_164 : f32 to vector<8x256xf32>
    %416 = arith.mulf %415, %414 : vector<8x256xf32>
    %cst_165 = arith.constant 4.471500e-02 : f32
    %417 = vector.broadcast %cst_165 : f32 to vector<8x256xf32>
    %418 = arith.mulf %417, %414 : vector<8x256xf32>
    %419 = arith.mulf %418, %414 : vector<8x256xf32>
    %420 = arith.mulf %419, %414 : vector<8x256xf32>
    %421 = arith.addf %414, %420 : vector<8x256xf32>
    %cst_166 = arith.constant 0.797884583 : f32
    %422 = vector.broadcast %cst_166 : f32 to vector<8x256xf32>
    %423 = arith.mulf %422, %421 : vector<8x256xf32>
    %424 = math.tanh %423 : vector<8x256xf32>
    %cst_167 = arith.constant 1.000000e+00 : f32
    %425 = vector.broadcast %cst_167 : f32 to vector<8x256xf32>
    %426 = arith.addf %425, %424 : vector<8x256xf32>
    %427 = arith.mulf %416, %426 : vector<8x256xf32>
    %cst_168 = arith.constant dense<0.000000e+00> : vector<8x128xf32>
    %428 = tpu.matmul %427, %331, %cst_168 {dimension_numbers = #tpu.dot_dimension_numbers<[1], [0], [0], [1], [0, 0, 1, 1], [], []>} : vector<8x256xf32>, vector<256x128xf32>, vector<8x128xf32> -> vector<8x128xf32>
    %429 = vector.broadcast %333 : vector<1x128xf32> to vector<8x128xf32>
    %430 = arith.addf %428, %429 : vector<8x128xf32>
    %431 = arith.addf %430, %411 : vector<8x128xf32>
    %cst_169 = arith.constant dense<0.000000e+00> : vector<8xf32>
    %432 = vector.multi_reduction <add>, %431, %cst_169 [1] : vector<8x128xf32> to vector<8xf32>
    %433 = vector.shape_cast %432 : vector<8xf32> to vector<8x1xf32>
    %cst_170 = arith.constant 1.280000e+02 : f32
    %434 = vector.broadcast %cst_170 : f32 to vector<8x1xf32>
    %435 = arith.divf %433, %434 : vector<8x1xf32>
    %436 = vector.broadcast %435 : vector<8x1xf32> to vector<8x128xf32>
    %437 = arith.subf %431, %436 : vector<8x128xf32>
    %438 = vector.broadcast %435 : vector<8x1xf32> to vector<8x128xf32>
    %439 = arith.subf %431, %438 : vector<8x128xf32>
    %440 = arith.mulf %437, %439 : vector<8x128xf32>
    %cst_171 = arith.constant dense<0.000000e+00> : vector<8xf32>
    %441 = vector.multi_reduction <add>, %440, %cst_171 [1] : vector<8x128xf32> to vector<8xf32>
    %442 = vector.shape_cast %441 : vector<8xf32> to vector<8x1xf32>
    %cst_172 = arith.constant 1.280000e+02 : f32
    %443 = vector.broadcast %cst_172 : f32 to vector<8x1xf32>
    %444 = arith.divf %442, %443 : vector<8x1xf32>
    %445 = vector.broadcast %435 : vector<8x1xf32> to vector<8x128xf32>
    %446 = arith.subf %431, %445 : vector<8x128xf32>
    %cst_173 = arith.constant 1.000000e-07 : f32
    %447 = vector.broadcast %cst_173 : f32 to vector<8x1xf32>
    %448 = arith.addf %444, %447 : vector<8x1xf32>
    %449 = math.rsqrt %448 : vector<8x1xf32>
    %450 = vector.broadcast %449 : vector<8x1xf32> to vector<8x128xf32>
    %451 = arith.mulf %446, %450 : vector<8x128xf32>
    %452 = vector.broadcast %335 : vector<1x128xf32> to vector<8x128xf32>
    %453 = arith.mulf %451, %452 : vector<8x128xf32>
    %454 = vector.broadcast %337 : vector<1x128xf32> to vector<8x128xf32>
    %455 = arith.addf %453, %454 : vector<8x128xf32>
    %cst_174 = arith.constant dense<0.000000e+00> : vector<8x384xf32>
    %456 = tpu.matmul %313, %315, %cst_174 {dimension_numbers = #tpu.dot_dimension_numbers<[1], [0], [0], [1], [0, 0, 1, 1], [], []>} : vector<8x128xf32>, vector<128x384xf32>, vector<8x384xf32> -> vector<8x384xf32>
    %457 = vector.broadcast %317 : vector<1x384xf32> to vector<8x384xf32>
    %458 = arith.addf %456, %457 : vector<8x384xf32>
    %459 = vector.extract_strided_slice %1 {offsets = [1, 0], sizes = [1, 8], strides = [1, 1]} : vector<2x8xf32> to vector<1x8xf32>
    %460 = vector.extract_strided_slice %458 {offsets = [0, 0], sizes = [8, 64], strides = [1, 1]} : vector<8x384xf32> to vector<8x64xf32>
    %461 = vector.extract_strided_slice %458 {offsets = [0, 128], sizes = [8, 64], strides = [1, 1]} : vector<8x384xf32> to vector<8x64xf32>
    %462 = vector.extract_strided_slice %458 {offsets = [0, 256], sizes = [8, 64], strides = [1, 1]} : vector<8x384xf32> to vector<8x64xf32>
    %cst_175 = arith.constant dense<0.000000e+00> : vector<8x8xf32>
    %463 = tpu.matmul %460, %461, %cst_175 {dimension_numbers = #tpu.dot_dimension_numbers<[1], [1], [0], [0], [0, 0, 1, 0], [], []>} : vector<8x64xf32>, vector<8x64xf32>, vector<8x8xf32> -> vector<8x8xf32>
    %cst_176 = arith.constant 1.250000e-01 : f32
    %464 = vector.broadcast %cst_176 : f32 to vector<8x8xf32>
    %465 = arith.mulf %463, %464 : vector<8x8xf32>
    %466 = vector.broadcast %459 : vector<1x8xf32> to vector<8x8xf32>
    %467 = arith.addf %465, %466 : vector<8x8xf32>
    %cst_177 = arith.constant dense<0xFF800000> : vector<8xf32>
    %468 = vector.multi_reduction <maximumf>, %467, %cst_177 [1] : vector<8x8xf32> to vector<8xf32>
    %469 = vector.shape_cast %468 : vector<8xf32> to vector<8x1xf32>
    %470 = vector.broadcast %469 : vector<8x1xf32> to vector<8x8xf32>
    %471 = arith.subf %467, %470 : vector<8x8xf32>
    %472 = math.exp %471 : vector<8x8xf32>
    %cst_178 = arith.constant dense<0.000000e+00> : vector<8xf32>
    %473 = vector.multi_reduction <add>, %472, %cst_178 [1] : vector<8x8xf32> to vector<8xf32>
    %474 = vector.shape_cast %473 : vector<8xf32> to vector<8x1xf32>
    %475 = tpu.reciprocal %474 {approx = true} : vector<8x1xf32> -> vector<8x1xf32>
    %476 = vector.broadcast %475 : vector<8x1xf32> to vector<8x8xf32>
    %477 = arith.mulf %472, %476 : vector<8x8xf32>
    %cst_179 = arith.constant dense<0.000000e+00> : vector<8x64xf32>
    %478 = tpu.matmul %477, %462, %cst_179 {dimension_numbers = #tpu.dot_dimension_numbers<[1], [0], [0], [1], [0, 0, 1, 1], [], []>} : vector<8x8xf32>, vector<8x64xf32>, vector<8x64xf32> -> vector<8x64xf32>
    %479 = vector.extract_strided_slice %319 {offsets = [0, 0], sizes = [64, 128], strides = [1, 1]} : vector<128x128xf32> to vector<64x128xf32>
    %cst_180 = arith.constant dense<0.000000e+00> : vector<8x128xf32>
    %480 = tpu.matmul %478, %479, %cst_180 {dimension_numbers = #tpu.dot_dimension_numbers<[1], [0], [0], [1], [0, 0, 1, 1], [], []>} : vector<8x64xf32>, vector<64x128xf32>, vector<8x128xf32> -> vector<8x128xf32>
    %481 = vector.broadcast %321 : vector<1x128xf32> to vector<8x128xf32>
    %482 = arith.addf %481, %480 : vector<8x128xf32>
    %483 = vector.extract_strided_slice %458 {offsets = [0, 64], sizes = [8, 64], strides = [1, 1]} : vector<8x384xf32> to vector<8x64xf32>
    %484 = vector.extract_strided_slice %458 {offsets = [0, 192], sizes = [8, 64], strides = [1, 1]} : vector<8x384xf32> to vector<8x64xf32>
    %485 = vector.extract_strided_slice %458 {offsets = [0, 320], sizes = [8, 64], strides = [1, 1]} : vector<8x384xf32> to vector<8x64xf32>
    %cst_181 = arith.constant dense<0.000000e+00> : vector<8x8xf32>
    %486 = tpu.matmul %483, %484, %cst_181 {dimension_numbers = #tpu.dot_dimension_numbers<[1], [1], [0], [0], [0, 0, 1, 0], [], []>} : vector<8x64xf32>, vector<8x64xf32>, vector<8x8xf32> -> vector<8x8xf32>
    %cst_182 = arith.constant 1.250000e-01 : f32
    %487 = vector.broadcast %cst_182 : f32 to vector<8x8xf32>
    %488 = arith.mulf %486, %487 : vector<8x8xf32>
    %489 = vector.broadcast %459 : vector<1x8xf32> to vector<8x8xf32>
    %490 = arith.addf %488, %489 : vector<8x8xf32>
    %cst_183 = arith.constant dense<0xFF800000> : vector<8xf32>
    %491 = vector.multi_reduction <maximumf>, %490, %cst_183 [1] : vector<8x8xf32> to vector<8xf32>
    %492 = vector.shape_cast %491 : vector<8xf32> to vector<8x1xf32>
    %493 = vector.broadcast %492 : vector<8x1xf32> to vector<8x8xf32>
    %494 = arith.subf %490, %493 : vector<8x8xf32>
    %495 = math.exp %494 : vector<8x8xf32>
    %cst_184 = arith.constant dense<0.000000e+00> : vector<8xf32>
    %496 = vector.multi_reduction <add>, %495, %cst_184 [1] : vector<8x8xf32> to vector<8xf32>
    %497 = vector.shape_cast %496 : vector<8xf32> to vector<8x1xf32>
    %498 = tpu.reciprocal %497 {approx = true} : vector<8x1xf32> -> vector<8x1xf32>
    %499 = vector.broadcast %498 : vector<8x1xf32> to vector<8x8xf32>
    %500 = arith.mulf %495, %499 : vector<8x8xf32>
    %cst_185 = arith.constant dense<0.000000e+00> : vector<8x64xf32>
    %501 = tpu.matmul %500, %485, %cst_185 {dimension_numbers = #tpu.dot_dimension_numbers<[1], [0], [0], [1], [0, 0, 1, 1], [], []>} : vector<8x8xf32>, vector<8x64xf32>, vector<8x64xf32> -> vector<8x64xf32>
    %502 = vector.extract_strided_slice %319 {offsets = [64, 0], sizes = [64, 128], strides = [1, 1]} : vector<128x128xf32> to vector<64x128xf32>
    %cst_186 = arith.constant dense<0.000000e+00> : vector<8x128xf32>
    %503 = tpu.matmul %501, %502, %cst_186 {dimension_numbers = #tpu.dot_dimension_numbers<[1], [0], [0], [1], [0, 0, 1, 1], [], []>} : vector<8x64xf32>, vector<64x128xf32>, vector<8x128xf32> -> vector<8x128xf32>
    %504 = arith.addf %482, %503 : vector<8x128xf32>
    %505 = arith.addf %504, %313 : vector<8x128xf32>
    %cst_187 = arith.constant dense<0.000000e+00> : vector<8xf32>
    %506 = vector.multi_reduction <add>, %505, %cst_187 [1] : vector<8x128xf32> to vector<8xf32>
    %507 = vector.shape_cast %506 : vector<8xf32> to vector<8x1xf32>
    %cst_188 = arith.constant 1.280000e+02 : f32
    %508 = vector.broadcast %cst_188 : f32 to vector<8x1xf32>
    %509 = arith.divf %507, %508 : vector<8x1xf32>
    %510 = vector.broadcast %509 : vector<8x1xf32> to vector<8x128xf32>
    %511 = arith.subf %505, %510 : vector<8x128xf32>
    %512 = vector.broadcast %509 : vector<8x1xf32> to vector<8x128xf32>
    %513 = arith.subf %505, %512 : vector<8x128xf32>
    %514 = arith.mulf %511, %513 : vector<8x128xf32>
    %cst_189 = arith.constant dense<0.000000e+00> : vector<8xf32>
    %515 = vector.multi_reduction <add>, %514, %cst_189 [1] : vector<8x128xf32> to vector<8xf32>
    %516 = vector.shape_cast %515 : vector<8xf32> to vector<8x1xf32>
    %cst_190 = arith.constant 1.280000e+02 : f32
    %517 = vector.broadcast %cst_190 : f32 to vector<8x1xf32>
    %518 = arith.divf %516, %517 : vector<8x1xf32>
    %519 = vector.broadcast %509 : vector<8x1xf32> to vector<8x128xf32>
    %520 = arith.subf %505, %519 : vector<8x128xf32>
    %cst_191 = arith.constant 1.000000e-07 : f32
    %521 = vector.broadcast %cst_191 : f32 to vector<8x1xf32>
    %522 = arith.addf %518, %521 : vector<8x1xf32>
    %523 = math.rsqrt %522 : vector<8x1xf32>
    %524 = vector.broadcast %523 : vector<8x1xf32> to vector<8x128xf32>
    %525 = arith.mulf %520, %524 : vector<8x128xf32>
    %526 = vector.broadcast %323 : vector<1x128xf32> to vector<8x128xf32>
    %527 = arith.mulf %525, %526 : vector<8x128xf32>
    %528 = vector.broadcast %325 : vector<1x128xf32> to vector<8x128xf32>
    %529 = arith.addf %527, %528 : vector<8x128xf32>
    %cst_192 = arith.constant dense<0.000000e+00> : vector<8x256xf32>
    %530 = tpu.matmul %529, %327, %cst_192 {dimension_numbers = #tpu.dot_dimension_numbers<[1], [0], [0], [1], [0, 0, 1, 1], [], []>} : vector<8x128xf32>, vector<128x256xf32>, vector<8x256xf32> -> vector<8x256xf32>
    %531 = vector.broadcast %329 : vector<1x256xf32> to vector<8x256xf32>
    %532 = arith.addf %530, %531 : vector<8x256xf32>
    %cst_193 = arith.constant 5.000000e-01 : f32
    %533 = vector.broadcast %cst_193 : f32 to vector<8x256xf32>
    %534 = arith.mulf %533, %532 : vector<8x256xf32>
    %cst_194 = arith.constant 4.471500e-02 : f32
    %535 = vector.broadcast %cst_194 : f32 to vector<8x256xf32>
    %536 = arith.mulf %535, %532 : vector<8x256xf32>
    %537 = arith.mulf %536, %532 : vector<8x256xf32>
    %538 = arith.mulf %537, %532 : vector<8x256xf32>
    %539 = arith.addf %532, %538 : vector<8x256xf32>
    %cst_195 = arith.constant 0.797884583 : f32
    %540 = vector.broadcast %cst_195 : f32 to vector<8x256xf32>
    %541 = arith.mulf %540, %539 : vector<8x256xf32>
    %542 = math.tanh %541 : vector<8x256xf32>
    %cst_196 = arith.constant 1.000000e+00 : f32
    %543 = vector.broadcast %cst_196 : f32 to vector<8x256xf32>
    %544 = arith.addf %543, %542 : vector<8x256xf32>
    %545 = arith.mulf %534, %544 : vector<8x256xf32>
    %cst_197 = arith.constant dense<0.000000e+00> : vector<8x128xf32>
    %546 = tpu.matmul %545, %331, %cst_197 {dimension_numbers = #tpu.dot_dimension_numbers<[1], [0], [0], [1], [0, 0, 1, 1], [], []>} : vector<8x256xf32>, vector<256x128xf32>, vector<8x128xf32> -> vector<8x128xf32>
    %547 = vector.broadcast %333 : vector<1x128xf32> to vector<8x128xf32>
    %548 = arith.addf %546, %547 : vector<8x128xf32>
    %549 = arith.addf %548, %529 : vector<8x128xf32>
    %cst_198 = arith.constant dense<0.000000e+00> : vector<8xf32>
    %550 = vector.multi_reduction <add>, %549, %cst_198 [1] : vector<8x128xf32> to vector<8xf32>
    %551 = vector.shape_cast %550 : vector<8xf32> to vector<8x1xf32>
    %cst_199 = arith.constant 1.280000e+02 : f32
    %552 = vector.broadcast %cst_199 : f32 to vector<8x1xf32>
    %553 = arith.divf %551, %552 : vector<8x1xf32>
    %554 = vector.broadcast %553 : vector<8x1xf32> to vector<8x128xf32>
    %555 = arith.subf %549, %554 : vector<8x128xf32>
    %556 = vector.broadcast %553 : vector<8x1xf32> to vector<8x128xf32>
    %557 = arith.subf %549, %556 : vector<8x128xf32>
    %558 = arith.mulf %555, %557 : vector<8x128xf32>
    %cst_200 = arith.constant dense<0.000000e+00> : vector<8xf32>
    %559 = vector.multi_reduction <add>, %558, %cst_200 [1] : vector<8x128xf32> to vector<8xf32>
    %560 = vector.shape_cast %559 : vector<8xf32> to vector<8x1xf32>
    %cst_201 = arith.constant 1.280000e+02 : f32
    %561 = vector.broadcast %cst_201 : f32 to vector<8x1xf32>
    %562 = arith.divf %560, %561 : vector<8x1xf32>
    %563 = vector.broadcast %553 : vector<8x1xf32> to vector<8x128xf32>
    %564 = arith.subf %549, %563 : vector<8x128xf32>
    %cst_202 = arith.constant 1.000000e-07 : f32
    %565 = vector.broadcast %cst_202 : f32 to vector<8x1xf32>
    %566 = arith.addf %562, %565 : vector<8x1xf32>
    %567 = math.rsqrt %566 : vector<8x1xf32>
    %568 = vector.broadcast %567 : vector<8x1xf32> to vector<8x128xf32>
    %569 = arith.mulf %564, %568 : vector<8x128xf32>
    %570 = vector.broadcast %335 : vector<1x128xf32> to vector<8x128xf32>
    %571 = arith.mulf %569, %570 : vector<8x128xf32>
    %572 = vector.broadcast %337 : vector<1x128xf32> to vector<8x128xf32>
    %573 = arith.addf %571, %572 : vector<8x128xf32>
    %c0_203 = arith.constant 0 : index
    %c0_204 = arith.constant 0 : index
    %574 = vector.load %arg17[%c0_203, %c0_204] : memref<128x128xf32, #tpu.memory_space<vmem>>, vector<128x128xf32>
    %c0_205 = arith.constant 0 : index
    %c0_206 = arith.constant 0 : index
    %575 = vector.load %arg18[%c0_205, %c0_206] : memref<1x128xf32, #tpu.memory_space<vmem>>, vector<1x128xf32>
    %c0_207 = arith.constant 0 : index
    %c0_208 = arith.constant 0 : index
    %576 = vector.load %arg19[%c0_207, %c0_208] : memref<1x128xf32, #tpu.memory_space<vmem>>, vector<1x128xf32>
    %c0_209 = arith.constant 0 : index
    %c0_210 = arith.constant 0 : index
    %577 = vector.load %arg20[%c0_209, %c0_210] : memref<1x1xf32, #tpu.memory_space<vmem>>, vector<1x1xf32>
    %c0_211 = arith.constant 0 : index
    %c0_212 = arith.constant 0 : index
    %578 = vector.load %arg21[%c0_211, %c0_212] : memref<128x1xf32, #tpu.memory_space<vmem>>, vector<128x1xf32>
    %c0_213 = arith.constant 0 : index
    %c0_214 = arith.constant 0 : index
    %579 = vector.load %arg22[%c0_213, %c0_214] : memref<1x1xf32, #tpu.memory_space<vmem>>, vector<1x1xf32>
    %cst_215 = arith.constant dense<0.000000e+00> : vector<8x128xf32>
    %580 = tpu.matmul %455, %574, %cst_215 {dimension_numbers = #tpu.dot_dimension_numbers<[1], [0], [0], [1], [0, 0, 1, 1], [], []>} : vector<8x128xf32>, vector<128x128xf32>, vector<8x128xf32> -> vector<8x128xf32>
    %581 = vector.broadcast %575 : vector<1x128xf32> to vector<8x128xf32>
    %582 = arith.addf %580, %581 : vector<8x128xf32>
    %583 = math.tanh %582 : vector<8x128xf32>
    %584 = vector.broadcast %576 : vector<1x128xf32> to vector<8x128xf32>
    %585 = arith.mulf %583, %584 : vector<8x128xf32>
    %cst_216 = arith.constant dense<0.000000e+00> : vector<8xf32>
    %586 = vector.multi_reduction <add>, %585, %cst_216 [1] : vector<8x128xf32> to vector<8xf32>
    %587 = vector.shape_cast %586 : vector<8xf32> to vector<8x1xf32>
    %588 = vector.broadcast %577 : vector<1x1xf32> to vector<8x1xf32>
    %589 = arith.addf %587, %588 : vector<8x1xf32>
    %cst_217 = arith.constant dense<0xFF800000> : vector<1xf32>
    %590 = vector.multi_reduction <maximumf>, %589, %cst_217 [0] : vector<8x1xf32> to vector<1xf32>
    %591 = vector.shape_cast %590 : vector<1xf32> to vector<1x1xf32>
    %592 = vector.broadcast %591 : vector<1x1xf32> to vector<8x1xf32>
    %593 = arith.subf %589, %592 : vector<8x1xf32>
    %594 = math.exp %593 : vector<8x1xf32>
    %cst_218 = arith.constant dense<0.000000e+00> : vector<1xf32>
    %595 = vector.multi_reduction <add>, %594, %cst_218 [0] : vector<8x1xf32> to vector<1xf32>
    %596 = vector.shape_cast %595 : vector<1xf32> to vector<1x1xf32>
    %597 = tpu.reciprocal %596 {approx = true} : vector<1x1xf32> -> vector<1x1xf32>
    %598 = vector.broadcast %597 : vector<1x1xf32> to vector<8x1xf32>
    %599 = arith.mulf %594, %598 : vector<8x1xf32>
    %600 = vector.broadcast %599 : vector<8x1xf32> to vector<8x128xf32>
    %601 = arith.mulf %600, %455 : vector<8x128xf32>
    %cst_219 = arith.constant dense<0.000000e+00> : vector<128xf32>
    %602 = vector.multi_reduction <add>, %601, %cst_219 [0] : vector<8x128xf32> to vector<128xf32>
    %603 = vector.shape_cast %602 : vector<128xf32> to vector<1x128xf32>
    %cst_220 = arith.constant dense<0.000000e+00> : vector<1x1xf32>
    %604 = tpu.matmul %603, %578, %cst_220 {dimension_numbers = #tpu.dot_dimension_numbers<[1], [0], [0], [1], [0, 0, 1, 1], [], []>} : vector<1x128xf32>, vector<128x1xf32>, vector<1x1xf32> -> vector<1x1xf32>
    %605 = arith.addf %604, %579 : vector<1x1xf32>
    %c0_221 = arith.constant 0 : index
    %c0_222 = arith.constant 0 : index
    %606 = vector.load %arg23[%c0_221, %c0_222] : memref<2x1xf32, #tpu.memory_space<vmem>>, vector<1x1xf32>
    tpu.vector_store %arg23[%c0_221, %c0_222], %605 {strides = array<i32>} : memref<2x1xf32, #tpu.memory_space<vmem>>, vector<1x1xf32>,
    %cst_223 = arith.constant dense<0.000000e+00> : vector<8x128xf32>
    %607 = tpu.matmul %573, %574, %cst_223 {dimension_numbers = #tpu.dot_dimension_numbers<[1], [0], [0], [1], [0, 0, 1, 1], [], []>} : vector<8x128xf32>, vector<128x128xf32>, vector<8x128xf32> -> vector<8x128xf32>
    %608 = vector.broadcast %575 : vector<1x128xf32> to vector<8x128xf32>
    %609 = arith.addf %607, %608 : vector<8x128xf32>
    %610 = math.tanh %609 : vector<8x128xf32>
    %611 = vector.broadcast %576 : vector<1x128xf32> to vector<8x128xf32>
    %612 = arith.mulf %610, %611 : vector<8x128xf32>
    %cst_224 = arith.constant dense<0.000000e+00> : vector<8xf32>
    %613 = vector.multi_reduction <add>, %612, %cst_224 [1] : vector<8x128xf32> to vector<8xf32>
    %614 = vector.shape_cast %613 : vector<8xf32> to vector<8x1xf32>
    %615 = vector.broadcast %577 : vector<1x1xf32> to vector<8x1xf32>
    %616 = arith.addf %614, %615 : vector<8x1xf32>
    %cst_225 = arith.constant dense<0xFF800000> : vector<1xf32>
    %617 = vector.multi_reduction <maximumf>, %616, %cst_225 [0] : vector<8x1xf32> to vector<1xf32>
    %618 = vector.shape_cast %617 : vector<1xf32> to vector<1x1xf32>
    %619 = vector.broadcast %618 : vector<1x1xf32> to vector<8x1xf32>
    %620 = arith.subf %616, %619 : vector<8x1xf32>
    %621 = math.exp %620 : vector<8x1xf32>
    %cst_226 = arith.constant dense<0.000000e+00> : vector<1xf32>
    %622 = vector.multi_reduction <add>, %621, %cst_226 [0] : vector<8x1xf32> to vector<1xf32>
    %623 = vector.shape_cast %622 : vector<1xf32> to vector<1x1xf32>
    %624 = tpu.reciprocal %623 {approx = true} : vector<1x1xf32> -> vector<1x1xf32>
    %625 = vector.broadcast %624 : vector<1x1xf32> to vector<8x1xf32>
    %626 = arith.mulf %621, %625 : vector<8x1xf32>
    %627 = vector.broadcast %626 : vector<8x1xf32> to vector<8x128xf32>
    %628 = arith.mulf %627, %573 : vector<8x128xf32>
    %cst_227 = arith.constant dense<0.000000e+00> : vector<128xf32>
    %629 = vector.multi_reduction <add>, %628, %cst_227 [0] : vector<8x128xf32> to vector<128xf32>
    %630 = vector.shape_cast %629 : vector<128xf32> to vector<1x128xf32>
    %cst_228 = arith.constant dense<0.000000e+00> : vector<1x1xf32>
    %631 = tpu.matmul %630, %578, %cst_228 {dimension_numbers = #tpu.dot_dimension_numbers<[1], [0], [0], [1], [0, 0, 1, 1], [], []>} : vector<1x128xf32>, vector<128x1xf32>, vector<1x1xf32> -> vector<1x1xf32>
    %632 = arith.addf %631, %579 : vector<1x1xf32>
    %c1_229 = arith.constant 1 : index
    %c0_230 = arith.constant 0 : index
    %633 = vector.load %arg23[%c1_229, %c0_230] : memref<2x1xf32, #tpu.memory_space<vmem>>, vector<1x1xf32>
    tpu.vector_store %arg23[%c1_229, %c0_230], %632 {strides = array<i32>} : memref<2x1xf32, #tpu.memory_space<vmem>>, vector<1x1xf32>,
    return
  }
  func.func @transform_0(%arg0: i32) -> (i32, i32) {
    %c0_i32 = arith.constant 0 : i32
    %c0_i32_0 = arith.constant 0 : i32
    %c0_i32_1 = arith.constant 0 : i32
    return %c0_i32, %c0_i32_0 : i32, i32
  }
  func.func @transform_1(%arg0: i32) -> (i32, i32) {
    %c0_i32 = arith.constant 0 : i32
    %c0_i32_0 = arith.constant 0 : i32
    %c0_i32_1 = arith.constant 0 : i32
    return %c0_i32, %c0_i32_0 : i32, i32
  }
  func.func @transform_2(%arg0: i32) -> (i32, i32) {
    %c0_i32 = arith.constant 0 : i32
    %c0_i32_0 = arith.constant 0 : i32
    %c0_i32_1 = arith.constant 0 : i32
    return %c0_i32, %c0_i32_0 : i32, i32
  }
  func.func @transform_3(%arg0: i32) -> (i32, i32) {
    %c0_i32 = arith.constant 0 : i32
    %c0_i32_0 = arith.constant 0 : i32
    %c0_i32_1 = arith.constant 0 : i32
    return %c0_i32, %c0_i32_0 : i32, i32
  }
  func.func @transform_4(%arg0: i32) -> (i32, i32, i32) {
    %c0_i32 = arith.constant 0 : i32
    %c0_i32_0 = arith.constant 0 : i32
    %c0_i32_1 = arith.constant 0 : i32
    %c0_i32_2 = arith.constant 0 : i32
    return %c0_i32, %c0_i32_0, %c0_i32_1 : i32, i32, i32
  }
  func.func @transform_5(%arg0: i32) -> (i32, i32, i32) {
    %c0_i32 = arith.constant 0 : i32
    %c0_i32_0 = arith.constant 0 : i32
    %c0_i32_1 = arith.constant 0 : i32
    %c0_i32_2 = arith.constant 0 : i32
    return %c0_i32, %c0_i32_0, %c0_i32_1 : i32, i32, i32
  }
  func.func @transform_6(%arg0: i32) -> (i32, i32, i32) {
    %c0_i32 = arith.constant 0 : i32
    %c0_i32_0 = arith.constant 0 : i32
    %c0_i32_1 = arith.constant 0 : i32
    %c0_i32_2 = arith.constant 0 : i32
    return %c0_i32, %c0_i32_0, %c0_i32_1 : i32, i32, i32
  }
  func.func @transform_7(%arg0: i32) -> (i32, i32, i32) {
    %c0_i32 = arith.constant 0 : i32
    %c0_i32_0 = arith.constant 0 : i32
    %c0_i32_1 = arith.constant 0 : i32
    %c0_i32_2 = arith.constant 0 : i32
    return %c0_i32, %c0_i32_0, %c0_i32_1 : i32, i32, i32
  }
  func.func @transform_8(%arg0: i32) -> (i32, i32, i32) {
    %c0_i32 = arith.constant 0 : i32
    %c0_i32_0 = arith.constant 0 : i32
    %c0_i32_1 = arith.constant 0 : i32
    %c0_i32_2 = arith.constant 0 : i32
    return %c0_i32, %c0_i32_0, %c0_i32_1 : i32, i32, i32
  }
  func.func @transform_9(%arg0: i32) -> (i32, i32, i32) {
    %c0_i32 = arith.constant 0 : i32
    %c0_i32_0 = arith.constant 0 : i32
    %c0_i32_1 = arith.constant 0 : i32
    %c0_i32_2 = arith.constant 0 : i32
    return %c0_i32, %c0_i32_0, %c0_i32_1 : i32, i32, i32
  }
  func.func @transform_10(%arg0: i32) -> (i32, i32, i32) {
    %c0_i32 = arith.constant 0 : i32
    %c0_i32_0 = arith.constant 0 : i32
    %c0_i32_1 = arith.constant 0 : i32
    %c0_i32_2 = arith.constant 0 : i32
    return %c0_i32, %c0_i32_0, %c0_i32_1 : i32, i32, i32
  }
  func.func @transform_11(%arg0: i32) -> (i32, i32, i32) {
    %c0_i32 = arith.constant 0 : i32
    %c0_i32_0 = arith.constant 0 : i32
    %c0_i32_1 = arith.constant 0 : i32
    %c0_i32_2 = arith.constant 0 : i32
    return %c0_i32, %c0_i32_0, %c0_i32_1 : i32, i32, i32
  }
  func.func @transform_12(%arg0: i32) -> (i32, i32, i32) {
    %c0_i32 = arith.constant 0 : i32
    %c0_i32_0 = arith.constant 0 : i32
    %c0_i32_1 = arith.constant 0 : i32
    %c0_i32_2 = arith.constant 0 : i32
    return %c0_i32, %c0_i32_0, %c0_i32_1 : i32, i32, i32
  }
  func.func @transform_13(%arg0: i32) -> (i32, i32, i32) {
    %c0_i32 = arith.constant 0 : i32
    %c0_i32_0 = arith.constant 0 : i32
    %c0_i32_1 = arith.constant 0 : i32
    %c0_i32_2 = arith.constant 0 : i32
    return %c0_i32, %c0_i32_0, %c0_i32_1 : i32, i32, i32
  }
  func.func @transform_14(%arg0: i32) -> (i32, i32, i32) {
    %c0_i32 = arith.constant 0 : i32
    %c0_i32_0 = arith.constant 0 : i32
    %c0_i32_1 = arith.constant 0 : i32
    %c0_i32_2 = arith.constant 0 : i32
    return %c0_i32, %c0_i32_0, %c0_i32_1 : i32, i32, i32
  }
  func.func @transform_15(%arg0: i32) -> (i32, i32, i32) {
    %c0_i32 = arith.constant 0 : i32
    %c0_i32_0 = arith.constant 0 : i32
    %c0_i32_1 = arith.constant 0 : i32
    %c0_i32_2 = arith.constant 0 : i32
    return %c0_i32, %c0_i32_0, %c0_i32_1 : i32, i32, i32
  }
  func.func @transform_16(%arg0: i32) -> (i32, i32) {
    %c0_i32 = arith.constant 0 : i32
    %c0_i32_0 = arith.constant 0 : i32
    %c0_i32_1 = arith.constant 0 : i32
    return %c0_i32, %c0_i32_0 : i32, i32
  }
  func.func @transform_17(%arg0: i32) -> (i32, i32) {
    %c0_i32 = arith.constant 0 : i32
    %c0_i32_0 = arith.constant 0 : i32
    %c0_i32_1 = arith.constant 0 : i32
    return %c0_i32, %c0_i32_0 : i32, i32
  }
  func.func @transform_18(%arg0: i32) -> (i32, i32) {
    %c0_i32 = arith.constant 0 : i32
    %c0_i32_0 = arith.constant 0 : i32
    %c0_i32_1 = arith.constant 0 : i32
    return %c0_i32, %c0_i32_0 : i32, i32
  }
  func.func @transform_19(%arg0: i32) -> (i32, i32) {
    %c0_i32 = arith.constant 0 : i32
    %c0_i32_0 = arith.constant 0 : i32
    %c0_i32_1 = arith.constant 0 : i32
    return %c0_i32, %c0_i32_0 : i32, i32
  }
  func.func @transform_20(%arg0: i32) -> (i32, i32) {
    %c0_i32 = arith.constant 0 : i32
    %c0_i32_0 = arith.constant 0 : i32
    %c0_i32_1 = arith.constant 0 : i32
    return %c0_i32, %c0_i32_0 : i32, i32
  }
  func.func @transform_21(%arg0: i32) -> (i32, i32) {
    %c0_i32 = arith.constant 0 : i32
    %c0_i32_0 = arith.constant 0 : i32
    %c0_i32_1 = arith.constant 0 : i32
    return %c0_i32, %c0_i32_0 : i32, i32
  }
  func.func @transform_22(%arg0: i32) -> (i32, i32) {
    %c0_i32 = arith.constant 0 : i32
    %c0_i32_0 = arith.constant 0 : i32
    %c0_i32_1 = arith.constant 0 : i32
    return %c0_i32, %c0_i32_0 : i32, i32
  }
}

</mosaic_0001>

<bundles_post_ra>
// kernel: forward.1
= control target key start
LH: loop header
LB: loop body
LE: loop exit
PB: predicated region body
PF: predicated region fallthrough
CT: control target
= control target key end

     0   :  { %s4296_s0 = inlined_call_operand.vmem [shape: f32[16,128], index: 0, kind: input, shape index: {}]   ;;  %s4297_s1 = inlined_call_operand.vmem [shape: f32[2,8], index: 1, kind: input, shape index: {}]   ;;  %s4298_s2 = inlined_call_operand.vmem [shape: f32[1,128], index: 2, kind: input, shape index: {}]   ;;  %s4299_s3 = inlined_call_operand.vmem [shape: f32[1,128], index: 3, kind: input, shape index: {}]   ;;  %s4300_s4 = inlined_call_operand.hbm [shape: f32[2,128,384], index: 4, kind: input, shape index: {}]   ;;  %s4301_s5 = inlined_call_operand.vmem [shape: f32[2,1,384], index: 5, kind: input, shape index: {}]   ;;  %s4302_s6 = inlined_call_operand.vmem [shape: f32[2,128,128], index: 6, kind: input, shape index: {}]   ;;  %s4303_s7 = inlined_call_operand.vmem [shape: f32[2,1,128], index: 7, kind: input, shape index: {}]   ;;  %s4304_s8 = inlined_call_operand.vmem [shape: f32[2,1,128], index: 8, kind: input, shape index: {}]   ;;  %s4305_s9 = inlined_call_operand.vmem [shape: f32[2,1,128], index: 9, kind: input, shape index: {}]   ;;  %s4306_s10 = inlined_call_operand.hbm [shape: f32[2,128,256], index: 10, kind: input, shape index: {}]   ;;  %s4307_s11 = inlined_call_operand.vmem [shape: f32[2,1,256], index: 11, kind: input, shape index: {}]   ;;  %s4308_s12 = inlined_call_operand.hbm [shape: f32[2,256,128], index: 12, kind: input, shape index: {}]   ;;  %s4309_s13 = inlined_call_operand.vmem [shape: f32[2,1,128], index: 13, kind: input, shape index: {}]   ;;  %s4310_s14 = inlined_call_operand.vmem [shape: f32[2,1,128], index: 14, kind: input, shape index: {}]   ;;  %s4311_s15 = inlined_call_operand.vmem [shape: f32[2,1,128], index: 15, kind: input, shape index: {}]   ;;  %s4312_s16 = inlined_call_operand.vmem [shape: f32[128,128], index: 16, kind: input, shape index: {}]   ;;  %s4313_s17 = inlined_call_operand.vmem [shape: f32[1,128], index: 17, kind: input, shape index: {}]   ;;  %s4314_s18 = inlined_call_operand.vmem [shape: f32[1,128], index: 18, kind: input, shape index: {}]   ;;  %s4315_s19 = inlined_call_operand.<no memory space> [shape: f32[1,1], index: 19, kind: input, shape index: {}]   ;;  %s4316_s20 = inlined_call_operand.vmem [shape: f32[128,1], index: 20, kind: input, shape index: {}]   ;;  %s4317_s22 = inlined_call_operand.vmem [shape: f32[2,1], index: 22, kind: output, shape index: {}]   ;;  %s4318_s21 = inlined_call_operand.<no memory space> [shape: f32[1,1], index: 21, kind: input, shape index: {}]  }
   0x1   :  { %4438 = sst [smem:[#allocation66_spill]] %s4296_s0  ;;  %v27_v0 = vstv %s4315_s19  ;;  %v29_v1 = vstv %s4318_s21 }
   0x2   :  { %4439 = sst [smem:[#allocation67_spill]] %s4297_s1  ;;  %28 = vst [vmem:[#allocation2] sm:$0x1] %v27_v0 }
   0x3   :  { %4440 = sst [smem:[#allocation68_spill]] %s4298_s2  ;;  %30 = vst [vmem:[#allocation3] sm:$0x1] %v29_v1 }
   0x4   :  { %4441 = sst [smem:[#allocation69_spill]] %s4299_s3 }
   0x5   :  { %4442 = sst [smem:[#allocation70_spill]] %s4300_s4 }
   0x6   :  { %4443 = sst [smem:[#allocation71_spill]] %s4301_s5 }
   0x7   :  { %4444 = sst [smem:[#allocation72_spill]] %s4302_s6 }
   0x8   :  { %31 = vsyncpa [#allocation5], 0 }
   0x9   :  { %32 = vsyncpa [#allocation7], 0  ;;  %s68_s23 = sshll.u32 %s4306_s10, 4  ;;  %s2512_s1 = smov [#allocation6]   ;;  %s69_s23 = int_to_ptr.hbm [resolvable:$true] %s68_s23 }
   0xa   :  { %s70_s5 = sshll.u32 %s2512_s1, 4  ;;  %s4445_s25 = sld [smem:[#allocation70_spill]]  ;;  %s71_s5 = int_to_ptr.vmem [resolvable:$true] %s70_s5 }
   0xb   :  { %s2513_s26 = smov 256   ;;  %s2514_s2 = smov 16  }
   0xc   :  { %76 = dma.hbm_to_vmem [thread:$0]  %s69_s23, 8192, %s71_s5, [#allocation7], %s2513_s26, %s2513_s26, %s2514_s2  }
   0xd   :  { %s2515_s21 = smov [#allocation4]   ;;  %s2516_s3 = smov 384  }
   0xe   :  { %s47_s27 = sshll.u32 %s2515_s21, 4  ;;  %s2517_s28 = smov 24   ;;  %s48_s27 = int_to_ptr.vmem [resolvable:$true] %s47_s27 }
   0xf   :  { %s83_s30 = sshll.u32 %s4308_s12, 4  ;;  %s2518_s4 = smov [#allocation8]   ;;  %s84_s30 = int_to_ptr.hbm [resolvable:$true] %s83_s30 }
  0x10   :  { %s45_s19 = sshll.u32 %s4445_s25, 4  ;;  %s85_s0 = sshll.u32 %s2518_s4, 4  ;;  %s46_s19 = int_to_ptr.hbm [resolvable:$true] %s45_s19  ;;  %s86_s0 = int_to_ptr.vmem [resolvable:$true] %s85_s0 }
  0x11   :  { %53 = dma.hbm_to_vmem [thread:$0]  %s46_s19, 12288, %s48_s27, [#allocation5], %s2516_s3, %s2516_s3, %s2517_s28  }
  0x12   :  { %s2519_s1 = smov 128   ;;  %s2520_s24 = smov 8  }
  0x13   :  { %91 = dma.hbm_to_vmem [thread:$0]  %s84_s30, 8192, %s86_s0, [#allocation7], %s2519_s1, %s2519_s1, %s2520_s24  }
  0x14   :  { %2508 = dma.done.wait [#allocation5], 12288  }
  0x15   :  { %2509 = vsyncadd [#allocation5], 4294955008 }
  0x16   :  { %2510 = dma.done.wait [#allocation7], 16384  }
  0x17   :  { %2511 = vsyncadd [#allocation7], 4294950912  ;;  %s4446_s6 = sld [smem:[#allocation66_spill]]  ;;  %v2521_v3 = vmov 128.0   ;;  %v2657_v4 = vld [vmem:[#allocation4 + $0x168] sm:$0xff]  ;;  %v2659_v5 = vld [vmem:[#allocation4 + $0x170] sm:$0xff] }
  0x18   :  { %2354 = vrcp.f32 %v2521_v3  ;;  %v2661_v6 = vld [vmem:[#allocation4 + $0x178] sm:$0xff]  ;;  %327 = vmatpush.msra.mxu0 %v2657_v4  ;;  %347 = vmatpush.msra.mxu1 %v2659_v5  ;;  %v2665_v7 = vld [vmem:[#allocation4 + $0x150] sm:$0xff]  ;;  %v2669_v9 = vld [vmem:[#allocation4 + $0x160] sm:$0xff]  ;;  %s4450_s19 = sld [smem:[#allocation68_spill]]  ;;  %vm387_vm4 = vcmask 523264   ;;  %s2522_s29 = smov 64  }
  0x19   :  { %v2667_v8 = vld [vmem:[#allocation4 + $0x158] sm:$0xff]  ;;  %367 = vmatpush.msra.mxu2 %v2661_v6  ;;  %v2684_v21 = vld [vmem:[#allocation4 + $0x140] sm:$0xff]  ;;  %v2686_v22 = vld [vmem:[#allocation4 + $0x148] sm:$0xff]  ;;  %s4451_s21 = sld [smem:[#allocation69_spill]]  ;;  %vm417_vm5 = vcmask 64512  }
  0x1a   :  { %328 = vmatpush.msra.mxu0 %v2665_v7  ;;  %348 = vmatpush.msra.mxu1 %v2667_v8  ;;  %v2682_v20 = vld [vmem:[#allocation4 + $0x138] sm:$0xff]  ;;  %v2691_v23 = vld [vmem:[#allocation4 + $0x120] sm:$0xff]  ;;  %v2693_v24 = vld [vmem:[#allocation4 + $0x128] sm:$0xff]  ;;  %s4452_s28 = sld [smem:[#allocation71_spill]] }
  0x1b   :  { %368 = vmatpush.msra.mxu2 %v2669_v9  ;;  %v2695_v25 = vld [vmem:[#allocation4 + $0x130] sm:$0xff]  ;;  %v2700_v26 = vld [vmem:[#allocation4 + $0x108] sm:$0xff]  ;;  %v2704_v28 = vld [vmem:[#allocation4 + $0x118] sm:$0xff]  ;;  %s4454_s4 = sld [smem:[#allocation67_spill]] }
  0x1c   :  { %329 = vmatpush.msra.mxu0 %v2682_v20  ;;  %349 = vmatpush.msra.mxu1 %v2684_v21  ;;  %v2702_v27 = vld [vmem:[#allocation4 + $0x110] sm:$0xff]  ;;  %v2711_v30 = vld [vmem:[#allocation4 + $0xf8] sm:$0xff]  ;;  %v2713_v31 = vld [vmem:[#allocation4 + $0x100] sm:$0xff]  ;;  %s4457_s24 = sld [smem:[#allocation72_spill]] }
  0x1d   :  { %v122_v2 = vld [vmem:[%s4446_s6] sm:$0xff]  ;;  %369 = vmatpush.msra.mxu2 %v2686_v22  ;;  %v2709_v29 = vld [vmem:[#allocation4 + $0xf0] sm:$0xff]  ;;  %v2722_v34 = vld [vmem:[#allocation4 + $0xe8] sm:$0xff] }
  0x1e   :  { %127 = vadd.xlane.f32.xlu0 %v122_v2  ;;  %v2355_v10 = vpop.eup %2354  ;;  %330 = vmatpush.msra.mxu0 %v2691_v23  ;;  %v2718_v32 = vld [vmem:[#allocation4 + $0xd8] sm:$0xff]  ;;  %v2720_v33 = vld [vmem:[#allocation4 + $0xe0] sm:$0xff]  ;;  %v2729_v36 = vld [vmem:[#allocation4 + $0xc8] sm:$0xff] }
  0x1f   :  { %v130_v11 = vmul.f32 128.0, %v2355_v10  ;;  %vm134_vm0 = vweird.f32 %v2355_v10  ;;  %350 = vmatpush.msra.mxu1 %v2693_v24  ;;  %370 = vmatpush.msra.mxu2 %v2695_v25  ;;  %v2727_v35 = vld [vmem:[#allocation4 + $0xc0] sm:$0xff]  ;;  %v2731_v37 = vld [vmem:[#allocation4 + $0xd0] sm:$0xff]  ;;  %v2736_v38 = vld [vmem:[#allocation4 + $0xa8] sm:$0xff] }
  0x20   :  { %331 = vmatpush.msra.mxu0 %v2700_v26  ;;  %v2738_v39 = vld [vmem:[#allocation4 + $0xb0] sm:$0xff]  ;;  %v2740_v40 = vld [vmem:[#allocation4 + $0xb8] sm:$0xff]  ;;  %v2749_v43 = vld [vmem:[#allocation4 + $0xa0] sm:$0xff] }
  0x21   :  { %v131_v12 = vsub.f32 1.0, %v130_v11  ;;  %351 = vmatpush.msra.mxu1 %v2702_v27  ;;  %371 = vmatpush.msra.mxu2 %v2704_v28  ;;  %v2745_v41 = vld [vmem:[#allocation4 + $0x90] sm:$0xff]  ;;  %v2747_v42 = vld [vmem:[#allocation4 + $0x98] sm:$0xff]  ;;  %v2756_v45 = vld [vmem:[#allocation4 + $0x80] sm:$0xff] }
  0x22   :  { %332 = vmatpush.msra.mxu0 %v2709_v29  ;;  %v2754_v44 = vld [vmem:[#allocation4 + $0x78] sm:$0xff]  ;;  %v2758_v46 = vld [vmem:[#allocation4 + $0x88] sm:$0xff]  ;;  %v2763_v47 = vld [vmem:[#allocation4 + $0x60] sm:$0xff] }
  0x23   :  { %v132_v13 = vmul.f32 %v2355_v10, %v131_v12  ;;  %352 = vmatpush.msra.mxu1 %v2711_v30  ;;  %372 = vmatpush.msra.mxu2 %v2713_v31  ;;  %v2765_v48 = vld [vmem:[#allocation4 + $0x68] sm:$0xff]  ;;  %v2767_v49 = vld [vmem:[#allocation4 + $0x70] sm:$0xff]  ;;  %v2776_v52 = vld [vmem:[#allocation4 + $0x58] sm:$0xff] }
  0x24   :  { %333 = vmatpush.msra.mxu0 %v2718_v32  ;;  %v2772_v50 = vld [vmem:[#allocation4 + $0x48] sm:$0xff]  ;;  %v2774_v51 = vld [vmem:[#allocation4 + $0x50] sm:$0xff]  ;;  %v2783_v54 = vld [vmem:[#allocation4 + $0x38] sm:$0xff] }
  0x25   :  { %v133_v14 = vadd.f32 %v2355_v10, %v132_v13  ;;  %353 = vmatpush.msra.mxu1 %v2720_v33  ;;  %373 = vmatpush.msra.mxu2 %v2722_v34  ;;  %v2781_v53 = vld [vmem:[#allocation4 + $0x30] sm:$0xff]  ;;  %v2785_v55 = vld [vmem:[#allocation4 + $0x40] sm:$0xff]  ;;  %v2789_v56 = vld [vmem:[#allocation4 + $0x18] sm:$0xff] }
  0x26   :  { %334 = vmatpush.msra.mxu0 %v2727_v35  ;;  %v2791_v57 = vld [vmem:[#allocation4 + $0x20] sm:$0xff]  ;;  %v2793_v58 = vld [vmem:[#allocation4 + $0x28] sm:$0xff]  ;;  %v2802_v61 = vld [vmem:[#allocation4 + $0x10] sm:$0xff] }
  0x27   :  { %v2675_v15 = vsel %vm134_vm0, %v2355_v10, %v133_v14  ;;  %354 = vmatpush.msra.mxu1 %v2729_v36  ;;  %374 = vmatpush.msra.mxu2 %v2731_v37  ;;  %4448 = vst [vmem:[#allocation12_spill] sm:$0xff] %v2793_v58  ;;  %v2796_v59 = vld [vmem:[#allocation4] sm:$0xff]  ;;  %v2798_v60 = vld [vmem:[#allocation4 + $0x8] sm:$0xff]  ;;  %v2812_v13 = vld [vmem:[%s4450_s19] ss:$0 sm:$0xff] }
  0x28   :  { %4447 = vst [vmem:[#allocation11_spill] sm:$0xff] %v2675_v15  ;;  %335 = vmatpush.msra.mxu0 %v2736_v38 }
  0x29   :  { %355 = vmatpush.msra.mxu1 %v2738_v39  ;;  %375 = vmatpush.msra.mxu2 %v2740_v40  ;;  %4449 = vst [vmem:[#allocation13_spill] sm:$0xff] %v2802_v61 }
  0x2a   :  { %336 = vmatpush.msra.mxu0 %v2745_v41 }
  0x2b   :  { %356 = vmatpush.msra.mxu1 %v2747_v42  ;;  %376 = vmatpush.msra.mxu2 %v2749_v43 }
  0x2c   :  { %337 = vmatpush.msra.mxu0 %v2754_v44 }
  0x2d   :  { %357 = vmatpush.msra.mxu1 %v2756_v45  ;;  %377 = vmatpush.msra.mxu2 %v2758_v46 }
  0x2e   :  { %338 = vmatpush.msra.mxu0 %v2763_v47 }
  0x2f   :  { %358 = vmatpush.msra.mxu1 %v2765_v48  ;;  %378 = vmatpush.msra.mxu2 %v2767_v49 }
  0x30   :  { %339 = vmatpush.msra.mxu0 %v2772_v50 }
  0x31   :  { %359 = vmatpush.msra.mxu1 %v2774_v51  ;;  %379 = vmatpush.msra.mxu2 %v2776_v52 }
  0x32   :  { %340 = vmatpush.msra.mxu0 %v2781_v53 }
  0x33   :  { %360 = vmatpush.msra.mxu1 %v2783_v54  ;;  %380 = vmatpush.msra.mxu2 %v2785_v55 }
  0x34   :  { %341 = vmatpush.msra.mxu0 %v2789_v56 }
  0x35   :  { %361 = vmatpush.msra.mxu1 %v2791_v57  ;;  %381 = vmatpush.msra.mxu2 %v2793_v58 }
  0x36   :  { %342 = vmatpush.msra.mxu0 %v2796_v59 }
  0x37   :  { %362 = vmatpush.msra.mxu1 %v2798_v60  ;;  %382 = vmatpush.msra.mxu2 %v2802_v61  ;;  %v2883_v61 = vld [vmem:[%s4457_s24 + $0x18] sm:$0xff] }
  0x38   :  { %4462 = vst [vmem:[#allocation21_spill] sm:$0xff] %v2883_v61 }
  0x91   :  { %v128_v16 = vpop.xlane.xlu0 %127 }
  0x92   :  { %v136_v17 = vmul.f32 %v2675_v15, %v128_v16 }
  0x94   :  { %v2678_v18 = vsub.f32 %v122_v2, %v136_v17  ;;  %v2818_v17 = vld [vmem:[%s4451_s21] ss:$0 sm:$0xff] }
  0x96   :  { %v138_v19 = vmul.f32 %v2678_v18, %v2678_v18 }
  0x98   :  { %139 = vadd.xlane.f32.xlu0 %v138_v19 }
 0x10b   :  { %v140_v62 = vpop.xlane.xlu0 %139 }
 0x10c   :  { %v141_v63 = vmul.f32 %v140_v62, %v2675_v15 }
 0x10e   :  { %v142_v0 = vadd.f32 1e-07, %v141_v63 }
 0x110   :  { %2356 = vrsqrt.f32 %v142_v0  ;;  %vm149_vm2 = vweird.f32 %v142_v0 }
 0x116   :  { %v2357_v1 = vpop.eup %2356 }
 0x117   :  { %v144_v2 = vmul.f32 %v2357_v1, %v142_v0  ;;  %vm150_vm1 = vweird.f32 %v2357_v1 }
 0x118   :  { %vm151_vm3 = vmor %vm149_vm2, %vm150_vm1 }
 0x119   :  { %v145_v3 = vmul.f32 %v2357_v1, %v144_v2 }
 0x11b   :  { %v146_v10 = vmul.f32 0.5, %v145_v3 }
 0x11d   :  { %v147_v11 = vsub.f32 1.5, %v146_v10 }
 0x11f   :  { %v148_v12 = vmul.f32 %v2357_v1, %v147_v11 }
 0x121   :  { %v152_v14 = vsel %vm151_vm3, %v2357_v1, %v148_v12 }
 0x122   :  { %v153_v16 = vmul.f32 %v152_v14, %v2678_v18  ;;  %v2830_v18 = vld [vmem:[%s4452_s28] sm:$0x7] }
 0x123   :  { %4453 = vst [vmem:[#allocation14_spill] sm:$0xff] %v2830_v18  ;;  %v4322_v63 = vperm.slane %v2830_v18, 1  ;;  %v4323_v0 = vperm.slane %v2830_v18, 0  ;;  %v4324_v11 = vperm.slane %v2830_v18, 2 }
 0x124   :  { %v157_v19 = vmul.f32 %v2812_v13, %v153_v16 }
 0x126   :  { %v2822_v62 = vadd.f32 %v2818_v17, %v157_v19 }
 0x128   :  { %343 = vmatmul.f32.vlgmr.msra.gmra.mxu0 %v2822_v62  ;;  %363 = vmatmul.f32.vlgmr.msra.gmra.mxu1 %v2822_v62 }
 0x129   :  { %383 = vmatmul.f32.vlgmr.msra.gmra.mxu2 %v2822_v62 }
 0x1a5   :  { %v364_v1 = vpop.f32.mrf.mxu1  ;;  %v344_v2 = vpop.f32.mrf.mxu0 }
 0x1a6   :  { %v365_v3 = vadd.f32 %v364_v1, %v4322_v63  ;;  %v345_v10 = vadd.f32 %v344_v2, %v4323_v0  ;;  %v2849_v2 = vld [vmem:[%s4454_s4] sm:$0x3] }
 0x1a7   :  { %4455 = vst [vmem:[#allocation15_spill] sm:$0xff] %v2849_v2 }
 0x1a8   :  { %481 = vrot.lane.b32.xlu2 %v365_v3, %s2522_s29  ;;  %2267 = vmatpush.xpose.msk.msra.mxu3 %vm387_vm4, %v365_v3  ;;  %v2852_v3 = vperm.slane %v2849_v2, 0 }
 0x1aa   :  { %4456 = vst [vmem:[#allocation16_spill] sm:$0xff] %v2852_v3 }
 0x1ab   :  { %2268 = vmatmul.msk.f32.vlgmr.msra.gmra.mxu3 %vm387_vm4, %v345_v10 }
 0x1ac   :  { %v384_v12 = vpop.f32.mrf.mxu2 }
 0x1ad   :  { %v385_v14 = vadd.f32 %v384_v12, %v4324_v11 }
 0x1af   :  { %447 = vmatpush.msrb.mxu3 %v385_v14 }
 0x1b0   :  { %479 = vrot.lane.b32.xlu2 %v345_v10, %s2522_s29 }
 0x1b8   :  { %521 = vrot.lane.b32.xlu2 %v385_v14, %s2522_s29  ;;  %v2859_v14 = vld [vmem:[%s4457_s24 + $0x38] sm:$0xff] }
 0x1b9   :  { %4458 = vst [vmem:[#allocation17_spill] sm:$0xff] %v2859_v14  ;;  %463 = vmatpush.msra.mxu3 %v2859_v14  ;;  %v2878_v14 = vld [vmem:[%s4457_s24 + $0x20] sm:$0xff] }
 0x1ba   :  { %4461 = vst [vmem:[#allocation20_spill] sm:$0xff] %v2878_v14 }
 0x202   :  { %v482_v16 = vpop.permute.xlu2 %481 }
 0x20a   :  { %v480_v19 = vpop.permute.xlu2 %479 }
 0x212   :  { %v522_v1 = vpop.permute.xlu2 %521 }
 0x213   :  { %542 = vmatpush.msrb.mxu2 %v522_v1  ;;  %v2864_v1 = vld [vmem:[%s4457_s24 + $0x30] sm:$0xff] }
 0x214   :  { %4459 = vst [vmem:[#allocation18_spill] sm:$0xff] %v2864_v1  ;;  %464 = vmatpush.msra.mxu3 %v2864_v1 }
 0x22e   :  { %v411_v63 = vpop.f32.mrf.mxu3 }
 0x22f   :  { %v414_v0 = vmul.f32 0.125, %v411_v63  ;;  %v2870_v63 = vld [vmem:[%s4457_s24 + $0x28] sm:$0xff] }
 0x230   :  { %4460 = vst [vmem:[#allocation19_spill] sm:$0xff] %v2870_v63  ;;  %465 = vmatpush.msra.mxu3 %v2870_v63 }
 0x231   :  { %v416_v12 = vadd.f32 %v2852_v3, %v414_v0 }
 0x232   :  { %466 = vmatpush.msra.mxu3 %v2878_v14 }
 0x233   :  { %v418_v10 = vsel %vm417_vm5, %v416_v12, -inf }
 0x234   :  { %419 = vmax.xlane.f32.xlu1 %v418_v10  ;;  %467 = vmatpush.msra.mxu3 %v2883_v61 }
 0x2a7   :  { %v420_v0 = vpop.xlane.xlu1 %419 }
 0x2a8   :  { %v421_v10 = vsub.f32 %v416_v12, %v420_v0  ;;  %v2901_v12 = vld [vmem:[%s4457_s24] sm:$0xff] }
 0x2a9   :  { %4465 = vst [vmem:[#allocation24_spill] sm:$0xff] %v2901_v12 }
 0x2aa   :  { %v422_v11 = vmul.f32 1.442695, %v421_v10 }
 0x2ac   :  { %2358 = vpow2.f32 %v422_v11  ;;  %v2889_v11 = vld [vmem:[%s4457_s24 + $0x10] sm:$0xff] }
 0x2ad   :  { %4463 = vst [vmem:[#allocation22_spill] sm:$0xff] %v2889_v11  ;;  %468 = vmatpush.msra.mxu3 %v2889_v11 }
 0x2b2   :  { %v2359_v2 = vpop.eup %2358 }
 0x2b3   :  { %v424_v18 = vsel %vm417_vm5, %v2359_v2, 0.0 }
 0x2b4   :  { %425 = vadd.xlane.f32.xlu1 %v424_v18  ;;  %v2895_v18 = vld [vmem:[%s4457_s24 + $0x8] sm:$0xff] }
 0x2b5   :  { %4464 = vst [vmem:[#allocation23_spill] sm:$0xff] %v2895_v18  ;;  %469 = vmatpush.msra.mxu3 %v2895_v18 }
 0x2b7   :  { %470 = vmatpush.msra.mxu3 %v2901_v12 }
 0x327   :  { %v426_v0 = vpop.xlane.xlu1 %425 }
 0x328   :  { %2360 = vrcp.f32 %v426_v0 }
 0x32e   :  { %v2361_v10 = vpop.eup %2360 }
 0x32f   :  { %v428_v61 = vmul.f32 %v2361_v10, %v2359_v2 }
 0x331   :  { %2269 = vmatmul.msk.f32.vlgmr.msrb.gmra.mxu3 %vm417_vm5, %v428_v61 }
 0x332   :  { %2271 = vmatpush.xpose.msk.msrb.mxu3 %vm387_vm4, %v482_v16 }
 0x3b4   :  { %v449_v14 = vpop.f32.mrf.mxu3 }
 0x3b5   :  { %2270 = vmatmul.msk.f32.vlgmr.msra.gmra.mxu3 %vm387_vm4, %v449_v14  ;;  %v2920_v14 = vld [vmem:[%s4457_s24 + $0x70] sm:$0xff] }
 0x3b6   :  { %4467 = vst [vmem:[#allocation26_spill] sm:$0xff] %v2920_v14 }
 0x3bd   :  { %2272 = vmatmul.msk.f32.vlgmr.msrb.gmra.mxu3 %vm387_vm4, %v480_v19  ;;  %v2915_v19 = vld [vmem:[%s4457_s24 + $0x78] sm:$0xff] }
 0x3be   :  { %4466 = vst [vmem:[#allocation25_spill] sm:$0xff] %v2915_v19  ;;  %558 = vmatpush.msrb.mxu1 %v2915_v19  ;;  %v2981_v19 = vld [vmem:[#allocation6 + $0xe0] sm:$0xff] }
 0x3c0   :  { %559 = vmatpush.msrb.mxu1 %v2920_v14  ;;  %v2979_v14 = vld [vmem:[#allocation6 + $0xf8] sm:$0xff] }
 0x3c1   :  { %4475 = vst [vmem:[#allocation34_spill] sm:$0xff] %v2979_v14  ;;  %625 = vmatpush.msra.mxu3 %v2979_v14  ;;  %v3022_v14 = vld [vmem:[#allocation6 + $0x80] sm:$0xff] }
 0x3c2   :  { %4485 = vst [vmem:[#allocation44_spill] sm:$0xff] %v3022_v14 }
 0x438   :  { %v472_v11 = vpop.f32.mrf.mxu3 }
 0x440   :  { %v504_v63 = vpop.f32.mrf.mxu3 }
 0x441   :  { %v507_v1 = vmul.f32 0.125, %v504_v63  ;;  %v2938_v63 = vld [vmem:[%s4457_s24 + $0x58] sm:$0xff] }
 0x442   :  { %4470 = vst [vmem:[#allocation29_spill] sm:$0xff] %v2938_v63 }
 0x443   :  { %v508_v18 = vadd.f32 %v507_v1, %v2852_v3  ;;  %v2932_v1 = vld [vmem:[%s4457_s24 + $0x60] sm:$0xff]  ;;  %v123_v3 = vld [vmem:[%s4446_s6 + $0x8] sm:$0xff] }
 0x444   :  { %4469 = vst [vmem:[#allocation28_spill] sm:$0xff] %v2932_v1 }
 0x445   :  { %v509_v12 = vsel %vm417_vm5, %v508_v18, -inf }
 0x446   :  { %510 = vmax.xlane.f32.xlu0 %v509_v12  ;;  %v2950_v12 = vld [vmem:[%s4457_s24 + $0x48] sm:$0xff] }
 0x447   :  { %4472 = vst [vmem:[#allocation31_spill] sm:$0xff] %v2950_v12 }
 0x4b9   :  { %v511_v0 = vpop.xlane.xlu0 %510 }
 0x4ba   :  { %v512_v58 = vsub.f32 %v508_v18, %v511_v0  ;;  %v2944_v18 = vld [vmem:[%s4457_s24 + $0x50] sm:$0xff] }
 0x4bb   :  { %4471 = vst [vmem:[#allocation30_spill] sm:$0xff] %v2944_v18 }
 0x4bc   :  { %v513_v2 = vmul.f32 1.442695, %v512_v58  ;;  %v2926_v58 = vld [vmem:[%s4457_s24 + $0x68] sm:$0xff] }
 0x4bd   :  { %4468 = vst [vmem:[#allocation27_spill] sm:$0xff] %v2926_v58  ;;  %560 = vmatpush.msrb.mxu1 %v2926_v58  ;;  %v2977_v58 = vld [vmem:[#allocation6 + $0xf0] sm:$0xff] }
 0x4be   :  { %2362 = vpow2.f32 %v513_v2  ;;  %605 = vmatpush.msra.mxu2 %v2977_v58 }
 0x4bf   :  { %561 = vmatpush.msrb.mxu1 %v2932_v1 }
 0x4c0   :  { %606 = vmatpush.msra.mxu2 %v2981_v19 }
 0x4c1   :  { %562 = vmatpush.msrb.mxu1 %v2938_v63 }
 0x4c3   :  { %563 = vmatpush.msrb.mxu1 %v2944_v18 }
 0x4c4   :  { %v2363_v61 = vpop.eup %2362 }
 0x4c5   :  { %v515_v16 = vsel %vm417_vm5, %v2363_v61, 0.0  ;;  %564 = vmatpush.msrb.mxu1 %v2950_v12 }
 0x4c6   :  { %516 = vadd.xlane.f32.xlu1 %v515_v16  ;;  %v2958_v16 = vld [vmem:[%s4457_s24 + $0x40] sm:$0xff] }
 0x4c7   :  { %4473 = vst [vmem:[#allocation32_spill] sm:$0xff] %v2958_v16  ;;  %565 = vmatpush.msrb.mxu1 %v2958_v16 }
 0x4ce   :  { %162 = vadd.xlane.f32.xlu1 %v123_v3 }
 0x539   :  { %v517_v10 = vpop.xlane.xlu1 %516 }
 0x53a   :  { %2364 = vrcp.f32 %v517_v10 }
 0x540   :  { %v2365_v0 = vpop.eup %2364 }
 0x541   :  { %v519_v2 = vmul.f32 %v2365_v0, %v2363_v61  ;;  %v2968_v61 = vld [vmem:[%s4303_s7] ss:$0 sm:$0xff]  ;;  %v163_v10 = vpop.xlane.xlu1 %162 }
 0x542   :  { %4474 = vst [vmem:[#allocation33_spill] sm:$0xff] %v2968_v61  ;;  %v478_v0 = vadd.f32 %v2968_v61, %v472_v11  ;;  %v164_v16 = vmul.f32 %v163_v10, %v2675_v15  ;;  %v2985_v10 = vld [vmem:[#allocation6 + $0xe8] sm:$0xff]  ;;  %v3006_v61 = vld [vmem:[#allocation6 + $0xb8] sm:$0xff] }
 0x543   :  { %2273 = vmatmul.msk.f32.vlgmr.msrb.gmra.mxu2 %vm417_vm5, %v519_v2  ;;  %4476 = vst [vmem:[#allocation35_spill] sm:$0xff] %v2985_v10  ;;  %626 = vmatpush.msra.mxu3 %v2985_v10  ;;  %v3018_v10 = vld [vmem:[#allocation6 + $0x98] sm:$0xff] }
 0x544   :  { %v2973_v1 = vsub.f32 %v123_v3, %v164_v16  ;;  %v2988_v3 = vld [vmem:[#allocation6 + $0xd0] sm:$0xff]  ;;  %4480 = vst [vmem:[#allocation39_spill] sm:$0xff] %v3006_v61 }
 0x545   :  { %607 = vmatpush.msra.mxu2 %v2988_v3  ;;  %4484 = vst [vmem:[#allocation43_spill] sm:$0xff] %v3018_v10 }
 0x5c6   :  { %v544_v18 = vpop.f32.mrf.mxu2 }
 0x5c7   :  { %2274 = vmatmul.msk.f32.vlgmr.msrb.gmra.mxu1 %vm387_vm4, %v544_v18  ;;  %v166_v18 = vmul.f32 %v2973_v1, %v2973_v1 }
 0x644   :  { %v567_v2 = vpop.f32.mrf.mxu1 }
 0x645   :  { %v570_v12 = vadd.f32 %v567_v2, %v478_v0  ;;  %v2996_v0 = vld [vmem:[#allocation6 + $0xc0] sm:$0xff]  ;;  %v2998_v2 = vld [vmem:[#allocation6 + $0xc8] sm:$0xff] }
 0x646   :  { %4478 = vst [vmem:[#allocation37_spill] sm:$0xff] %v2998_v2  ;;  %608 = vmatpush.msra.mxu2 %v2996_v0 }
 0x647   :  { %v571_v63 = vadd.f32 %v570_v12, %v2822_v62  ;;  %v2990_v12 = vld [vmem:[#allocation6 + $0xd8] sm:$0xff] }
 0x648   :  { %4477 = vst [vmem:[#allocation36_spill] sm:$0xff] %v2990_v12  ;;  %627 = vmatpush.msra.mxu3 %v2990_v12  ;;  %v3016_v12 = vld [vmem:[#allocation6 + $0x90] sm:$0xff] }
 0x649   :  { %572 = vadd.xlane.f32.xlu0 %v571_v63  ;;  %4483 = vst [vmem:[#allocation42_spill] sm:$0xff] %v3016_v12 }
 0x64a   :  { %628 = vmatpush.msra.mxu3 %v2998_v2  ;;  %v3024_v2 = vld [vmem:[#allocation6 + $0x88] sm:$0xff] }
 0x64b   :  { %4486 = vst [vmem:[#allocation45_spill] sm:$0xff] %v3024_v2 }
 0x64c   :  { %629 = vmatpush.msra.mxu3 %v3006_v61  ;;  %v3034_v61 = vld [vmem:[#allocation6 + $0x60] sm:$0xff] }
 0x651   :  { %167 = vadd.xlane.f32.xlu0 %v166_v18 }
 0x6bc   :  { %v573_v11 = vpop.xlane.xlu0 %572 }
 0x6bd   :  { %v574_v62 = vmul.f32 %v573_v11, %v2675_v15  ;;  %v3004_v11 = vld [vmem:[#allocation6 + $0xb0] sm:$0xff] }
 0x6be   :  { %4479 = vst [vmem:[#allocation38_spill] sm:$0xff] %v3004_v11  ;;  %609 = vmatpush.msra.mxu2 %v3004_v11  ;;  %v3030_v11 = vld [vmem:[#allocation6 + $0x78] sm:$0xff] }
 0x6bf   :  { %v2994_v16 = vsub.f32 %v571_v63, %v574_v62  ;;  %v3010_v63 = vld [vmem:[#allocation6 + $0xa0] sm:$0xff]  ;;  %v3012_v62 = vld [vmem:[#allocation6 + $0xa8] sm:$0xff]  ;;  %4488 = vst [vmem:[#allocation47_spill] sm:$0xff] %v3030_v11 }
 0x6c0   :  { %4481 = vst [vmem:[#allocation40_spill] sm:$0xff] %v3010_v63  ;;  %610 = vmatpush.msra.mxu2 %v3010_v63  ;;  %630 = vmatpush.msra.mxu3 %v3012_v62  ;;  %v3036_v63 = vld [vmem:[#allocation6 + $0x68] sm:$0xff] }
 0x6c1   :  { %v576_v18 = vmul.f32 %v2994_v16, %v2994_v16  ;;  %4482 = vst [vmem:[#allocation41_spill] sm:$0xff] %v3012_v62  ;;  %v3040_v62 = vld [vmem:[#allocation6 + $0x50] sm:$0xff] }
 0x6c2   :  { %611 = vmatpush.msra.mxu2 %v3016_v12  ;;  %631 = vmatpush.msra.mxu3 %v3018_v10  ;;  %4489 = vst [vmem:[#allocation48_spill] sm:$0xff] %v3036_v63  ;;  %v3042_v12 = vld [vmem:[#allocation6 + $0x58] sm:$0xff]  ;;  %v3046_v10 = vld [vmem:[#allocation6 + $0x40] sm:$0xff] }
 0x6c3   :  { %577 = vadd.xlane.f32.xlu2 %v576_v18  ;;  %v3028_v18 = vld [vmem:[#allocation6 + $0x70] sm:$0xff]  ;;  %4490 = vst [vmem:[#allocation49_spill] sm:$0xff] %v3040_v62 }
 0x6c4   :  { %4487 = vst [vmem:[#allocation46_spill] sm:$0xff] %v3028_v18  ;;  %612 = vmatpush.msra.mxu2 %v3022_v14  ;;  %632 = vmatpush.msra.mxu3 %v3024_v2  ;;  %v3048_v14 = vld [vmem:[#allocation6 + $0x48] sm:$0xff]  ;;  %v3052_v2 = vld [vmem:[#allocation6 + $0x30] sm:$0xff] }
 0x6c5   :  { %4491 = vst [vmem:[#allocation50_spill] sm:$0xff] %v3042_v12 }
 0x6c6   :  { %613 = vmatpush.msra.mxu2 %v3028_v18  ;;  %633 = vmatpush.msra.mxu3 %v3030_v11  ;;  %4492 = vst [vmem:[#allocation51_spill] sm:$0xff] %v3048_v14  ;;  %v3054_v18 = vld [vmem:[#allocation6 + $0x38] sm:$0xff]  ;;  %v3062_v11 = vld [vmem:[#allocation6 + $0x28] sm:$0xff] }
 0x6c7   :  { %4493 = vst [vmem:[#allocation52_spill] sm:$0xff] %v3052_v2 }
 0x6c8   :  { %614 = vmatpush.msra.mxu2 %v3034_v61  ;;  %634 = vmatpush.msra.mxu3 %v3036_v63  ;;  %4494 = vst [vmem:[#allocation53_spill] sm:$0xff] %v3054_v18  ;;  %v3060_v63 = vld [vmem:[#allocation6 + $0x20] sm:$0xff] }
 0x6c9   :  { %4495 = vst [vmem:[#allocation54_spill] sm:$0xff] %v3062_v11 }
 0x6ca   :  { %615 = vmatpush.msra.mxu2 %v3040_v62  ;;  %635 = vmatpush.msra.mxu3 %v3042_v12  ;;  %v3066_v12 = vld [vmem:[#allocation6 + $0x10] sm:$0xff]  ;;  %v3068_v62 = vld [vmem:[#allocation6 + $0x18] sm:$0xff] }
 0x6cb   :  { %4496 = vst [vmem:[#allocation55_spill] sm:$0xff] %v3068_v62 }
 0x6cc   :  { %616 = vmatpush.msra.mxu2 %v3046_v10  ;;  %636 = vmatpush.msra.mxu3 %v3048_v14  ;;  %v3072_v14 = vld [vmem:[#allocation6] sm:$0xff] }
 0x6ce   :  { %617 = vmatpush.msra.mxu2 %v3052_v2  ;;  %637 = vmatpush.msra.mxu3 %v3054_v18  ;;  %v3074_v2 = vld [vmem:[#allocation6 + $0x8] sm:$0xff] }
 0x6cf   :  { %4497 = vst [vmem:[#allocation56_spill] sm:$0xff] %v3074_v2 }
 0x6d0   :  { %618 = vmatpush.msra.mxu2 %v3060_v63  ;;  %638 = vmatpush.msra.mxu3 %v3062_v11 }
 0x6d2   :  { %619 = vmatpush.msra.mxu2 %v3066_v12  ;;  %639 = vmatpush.msra.mxu3 %v3068_v62 }
 0x6d4   :  { %620 = vmatpush.msra.mxu2 %v3072_v14  ;;  %640 = vmatpush.msra.mxu3 %v3074_v2  ;;  %v168_v2 = vpop.xlane.xlu0 %167 }
 0x6d6   :  { %735 = vmatpush.msrb.mxu2 %v2657_v4  ;;  %755 = vmatpush.msrb.mxu3 %v2659_v5  ;;  %v169_v4 = vmul.f32 %v168_v2, %v2675_v15 }
 0x6d8   :  { %736 = vmatpush.msrb.mxu2 %v2665_v7  ;;  %756 = vmatpush.msrb.mxu3 %v2667_v8  ;;  %v3095_v5 = vadd.f32 1e-07, %v169_v4  ;;  %v3220_v4 = vld [vmem:[#allocation8 + $0x8] sm:$0xff] }
 0x6da   :  { %737 = vmatpush.msrb.mxu2 %v2682_v20  ;;  %757 = vmatpush.msrb.mxu3 %v2684_v21  ;;  %2366 = vrsqrt.f32 %v3095_v5  ;;  %vm177_vm6 = vweird.f32 %v3095_v5 }
 0x6dc   :  { %738 = vmatpush.msrb.mxu2 %v2691_v23  ;;  %758 = vmatpush.msrb.mxu3 %v2693_v24  ;;  %v3119_v24 = vld [vmem:[#allocation8 + $0x78] sm:$0xff] }
 0x6dd   :  { %666 = vmatpush.msrb.mxu0 %v3119_v24 }
 0x6de   :  { %739 = vmatpush.msrb.mxu2 %v2700_v26  ;;  %759 = vmatpush.msrb.mxu3 %v2702_v27  ;;  %v3121_v26 = vld [vmem:[#allocation8 + $0x70] sm:$0xff]  ;;  %v3124_v27 = vld [vmem:[#allocation8 + $0x68] sm:$0xff] }
 0x6df   :  { %667 = vmatpush.msrb.mxu0 %v3121_v26 }
 0x6e0   :  { %740 = vmatpush.msrb.mxu2 %v2709_v29  ;;  %760 = vmatpush.msrb.mxu3 %v2711_v30  ;;  %v3108_v8 = vpop.eup %2366  ;;  %v3126_v29 = vld [vmem:[#allocation8 + $0xf8] sm:$0xff]  ;;  %v3128_v30 = vld [vmem:[#allocation8 + $0xf0] sm:$0xff] }
 0x6e1   :  { %v172_v23 = vmul.f32 %v3108_v8, %v3095_v5  ;;  %686 = vmatpush.msra.mxu1 %v3126_v29  ;;  %668 = vmatpush.msrb.mxu0 %v3124_v27  ;;  %vm178_vm7 = vweird.f32 %v3108_v8 }
 0x6e2   :  { %741 = vmatpush.msrb.mxu2 %v2718_v32  ;;  %761 = vmatpush.msrb.mxu3 %v2720_v33  ;;  %v3133_v33 = vld [vmem:[#allocation8 + $0x60] sm:$0xff]  ;;  %vm3170_vm9 = vmor %vm177_vm6, %vm178_vm7 }
 0x6e3   :  { %v173_v32 = vmul.f32 %v3108_v8, %v172_v23  ;;  %687 = vmatpush.msra.mxu1 %v3128_v30  ;;  %669 = vmatpush.msrb.mxu0 %v3133_v33  ;;  %v3183_v23 = vld [vmem:[#allocation8 + $0xb8] sm:$0xff] }
 0x6e4   :  { %742 = vmatpush.msrb.mxu2 %v2727_v35  ;;  %762 = vmatpush.msrb.mxu3 %v2729_v36  ;;  %v3135_v35 = vld [vmem:[#allocation8 + $0xe8] sm:$0xff] }
 0x6e5   :  { %688 = vmatpush.msra.mxu1 %v3135_v35 }
 0x6e6   :  { %743 = vmatpush.msrb.mxu2 %v2736_v38  ;;  %763 = vmatpush.msrb.mxu3 %v2738_v39  ;;  %v3139_v38 = vld [vmem:[#allocation8 + $0x58] sm:$0xff]  ;;  %v3141_v39 = vld [vmem:[#allocation8 + $0xe0] sm:$0xff] }
 0x6e7   :  { %670 = vmatpush.msrb.mxu0 %v3139_v38  ;;  %689 = vmatpush.msra.mxu1 %v3141_v39 }
 0x6e8   :  { %744 = vmatpush.msrb.mxu2 %v2745_v41  ;;  %764 = vmatpush.msrb.mxu3 %v2747_v42  ;;  %v174_v41 = vmul.f32 0.5, %v173_v32 }
 0x6ea   :  { %745 = vmatpush.msrb.mxu2 %v2754_v44  ;;  %765 = vmatpush.msrb.mxu3 %v2756_v45  ;;  %v3145_v44 = vld [vmem:[#allocation8 + $0x50] sm:$0xff]  ;;  %v3147_v45 = vld [vmem:[#allocation8 + $0xd8] sm:$0xff] }
 0x6eb   :  { %671 = vmatpush.msrb.mxu0 %v3145_v44  ;;  %690 = vmatpush.msra.mxu1 %v3147_v45 }
 0x6ec   :  { %746 = vmatpush.msrb.mxu2 %v2763_v47  ;;  %766 = vmatpush.msrb.mxu3 %v2765_v48  ;;  %v3151_v48 = vld [vmem:[#allocation8 + $0x48] sm:$0xff] }
 0x6ed   :  { %672 = vmatpush.msrb.mxu0 %v3151_v48 }
 0x6ee   :  { %747 = vmatpush.msrb.mxu2 %v2772_v50  ;;  %767 = vmatpush.msrb.mxu3 %v2774_v51  ;;  %v3153_v50 = vld [vmem:[#allocation8 + $0xd0] sm:$0xff]  ;;  %v175_v51 = vsub.f32 1.5, %v174_v41  ;;  %v3191_v41 = vld [vmem:[%s4305_s9] ss:$0 sm:$0xff] }
 0x6ef   :  { %691 = vmatpush.msra.mxu1 %v3153_v50  ;;  %4501 = vst [vmem:[#allocation58_spill] sm:$0xff] %v3191_v41 }
 0x6f0   :  { %748 = vmatpush.msrb.mxu2 %v2781_v53  ;;  %768 = vmatpush.msrb.mxu3 %v2783_v54  ;;  %v3159_v54 = vld [vmem:[#allocation8 + $0x40] sm:$0xff]  ;;  %v176_v2 = vmul.f32 %v3108_v8, %v175_v51 }
 0x6f1   :  { %673 = vmatpush.msrb.mxu0 %v3159_v54 }
 0x6f2   :  { %749 = vmatpush.msrb.mxu2 %v2789_v56  ;;  %769 = vmatpush.msrb.mxu3 %v2791_v57  ;;  %v3161_v56 = vld [vmem:[#allocation8 + $0xc8] sm:$0xff]  ;;  %v180_v51 = vsel %vm3170_vm9, %v3108_v8, %v176_v2  ;;  %v3216_v8 = vld [vmem:[#allocation8 + $0x10] sm:$0xff] }
 0x6f3   :  { %692 = vmatpush.msra.mxu1 %v3161_v56 }
 0x6f4   :  { %750 = vmatpush.msrb.mxu2 %v2796_v59  ;;  %770 = vmatpush.msrb.mxu3 %v2798_v60  ;;  %v3165_v59 = vld [vmem:[#allocation8 + $0x38] sm:$0xff]  ;;  %v3167_v60 = vld [vmem:[#allocation8 + $0xc0] sm:$0xff] }
 0x6f5   :  { %674 = vmatpush.msrb.mxu0 %v3165_v59  ;;  %693 = vmatpush.msra.mxu1 %v3167_v60 }
 0x6f7   :  { %694 = vmatpush.msra.mxu1 %v3183_v23 }
 0x736   :  { %v578_v7 = vpop.xlane.xlu2 %577 }
 0x737   :  { %v579_v20 = vmul.f32 %v578_v7, %v2675_v15  ;;  %v3177_v7 = vld [vmem:[%s4304_s8] ss:$0 sm:$0xff] }
 0x738   :  { %4500 = vst [vmem:[#allocation57_spill] sm:$0xff] %v3177_v7  ;;  %v4505_v15 = vld [vmem:[#allocation14_spill] sm:$0xff] }
 0x739   :  { %v580_v21 = vadd.f32 1e-07, %v579_v20  ;;  %v3181_v20 = vld [vmem:[#allocation8 + $0x30] sm:$0xff]  ;;  %v4507_v11 = vperm.slane %v4505_v15, 1 }
 0x73a   :  { %675 = vmatpush.msrb.mxu0 %v3181_v20 }
 0x73b   :  { %2368 = vrsqrt.f32 %v580_v21  ;;  %vm587_vm10 = vweird.f32 %v580_v21 }
 0x741   :  { %v2369_v36 = vpop.eup %2368 }
 0x742   :  { %v582_v42 = vmul.f32 %v2369_v36, %v580_v21  ;;  %vm588_vm8 = vweird.f32 %v2369_v36 }
 0x743   :  { %vm589_vm11 = vmor %vm587_vm10, %vm588_vm8 }
 0x744   :  { %v583_v47 = vmul.f32 %v2369_v36, %v582_v42  ;;  %v3193_v42 = vld [vmem:[#allocation8 + $0x28] sm:$0xff] }
 0x745   :  { %676 = vmatpush.msrb.mxu0 %v3193_v42 }
 0x746   :  { %v584_v53 = vmul.f32 0.5, %v583_v47  ;;  %v3195_v47 = vld [vmem:[#allocation8 + $0xb0] sm:$0xff] }
 0x747   :  { %695 = vmatpush.msra.mxu1 %v3195_v47 }
 0x748   :  { %v585_v57 = vsub.f32 1.5, %v584_v53  ;;  %v181_v53 = vmul.f32 %v180_v51, %v2973_v1  ;;  %v3244_v51 = vld [vmem:[#allocation8 + $0x90] sm:$0xff] }
 0x74a   :  { %v586_v5 = vmul.f32 %v2369_v36, %v585_v57  ;;  %v182_v2 = vmul.f32 %v2812_v13, %v181_v53  ;;  %v3236_v13 = vld [vmem:[#allocation8 + $0xa0] sm:$0xff] }
 0x74c   :  { %v590_v32 = vsel %vm589_vm11, %v2369_v36, %v586_v5  ;;  %v3211_v5 = vld [vmem:[#allocation8 + $0x18] sm:$0xff]  ;;  %v3225_v1 = vadd.f32 %v2818_v17, %v182_v2 }
 0x74d   :  { %v591_v21 = vmul.f32 %v590_v32, %v2994_v16  ;;  %v3203_v16 = vld [vmem:[#allocation8 + $0x20] sm:$0xff]  ;;  %v3240_v17 = vld [vmem:[#allocation8 + $0x98] sm:$0xff] }
 0x74e   :  { %677 = vmatpush.msrb.mxu0 %v3203_v16  ;;  %v3229_v32 = vld [vmem:[#allocation8] sm:$0xff] }
 0x74f   :  { %v595_v36 = vmul.f32 %v3177_v7, %v591_v21  ;;  %4502 = vst [vmem:[#allocation59_spill] sm:$0xff] %v3229_v32  ;;  %v3231_v21 = vld [vmem:[#allocation8 + $0xa8] sm:$0xff] }
 0x750   :  { %678 = vmatpush.msrb.mxu0 %v3211_v5  ;;  %696 = vmatpush.msra.mxu1 %v3231_v21 }
 0x751   :  { %v3209_v57 = vadd.f32 %v3191_v41, %v595_v36  ;;  %v3247_v36 = vld [vmem:[#allocation8 + $0x88] sm:$0xff] }
 0x752   :  { %679 = vmatpush.msrb.mxu0 %v3216_v8  ;;  %697 = vmatpush.msra.mxu1 %v3236_v13 }
 0x753   :  { %621 = vmatmul.f32.vlgmr.msra.gmra.mxu2 %v3209_v57  ;;  %641 = vmatmul.f32.vlgmr.msra.gmra.mxu3 %v3209_v57 }
 0x754   :  { %680 = vmatpush.msrb.mxu0 %v3220_v4  ;;  %698 = vmatpush.msra.mxu1 %v3240_v17 }
 0x756   :  { %681 = vmatpush.msrb.mxu0 %v3229_v32  ;;  %699 = vmatpush.msra.mxu1 %v3244_v51 }
 0x758   :  { %775 = vmatpush.msra.mxu0 %v2661_v6  ;;  %700 = vmatpush.msra.mxu1 %v3247_v36  ;;  %v3251_v6 = vld [vmem:[#allocation8 + $0x80] sm:$0xff] }
 0x75a   :  { %776 = vmatpush.msra.mxu0 %v2669_v9  ;;  %701 = vmatpush.msra.mxu1 %v3251_v6  ;;  %v3265_v9 = vld [vmem:[%s4307_s11] sm:$0x3] }
 0x75b   :  { %751 = vmatmul.f32.vlgmr.msrb.gmra.mxu2 %v3225_v1  ;;  %771 = vmatmul.f32.vlgmr.msrb.gmra.mxu3 %v3225_v1 }
 0x75c   :  { %777 = vmatpush.msra.mxu0 %v2686_v22  ;;  %v601_v22 = vperm.slane %v3265_v9, 0 }
 0x75e   :  { %778 = vmatpush.msra.mxu0 %v2695_v25  ;;  %v4377_v25 = vperm.slane %v3265_v9, 1 }
 0x760   :  { %779 = vmatpush.msra.mxu0 %v2704_v28  ;;  %v4503_v28 = vld [vmem:[#allocation12_spill] sm:$0xff] }
 0x762   :  { %780 = vmatpush.msra.mxu0 %v2713_v31 }
 0x764   :  { %781 = vmatpush.msra.mxu0 %v2722_v34 }
 0x766   :  { %782 = vmatpush.msra.mxu0 %v2731_v37  ;;  %v4504_v37 = vld [vmem:[#allocation13_spill] sm:$0xff] }
 0x768   :  { %783 = vmatpush.msra.mxu0 %v2740_v40 }
 0x76a   :  { %784 = vmatpush.msra.mxu0 %v2749_v43 }
 0x76c   :  { %785 = vmatpush.msra.mxu0 %v2758_v46 }
 0x76e   :  { %786 = vmatpush.msra.mxu0 %v2767_v49 }
 0x770   :  { %787 = vmatpush.msra.mxu0 %v2776_v52 }
 0x772   :  { %788 = vmatpush.msra.mxu0 %v2785_v55 }
 0x774   :  { %789 = vmatpush.msra.mxu0 %v4503_v28  ;;  %v4506_v28 = vperm.slane %v4505_v15, 0 }
 0x776   :  { %790 = vmatpush.msra.mxu0 %v4504_v37 }
 0x7d6   :  { %v622_v31 = vpop.f32.mrf.mxu2  ;;  %v642_v34 = vpop.f32.mrf.mxu3 }
 0x7d7   :  { %v623_v40 = vadd.f32 %v622_v31, %v601_v22  ;;  %v643_v43 = vadd.f32 %v642_v34, %v4377_v25 }
 0x7d9   :  { %v647_v46 = vmul.f32 0.044715, %v623_v40  ;;  %v648_v49 = vmul.f32 0.044715, %v643_v43 }
 0x7db   :  { %v650_v52 = vmul.f32 %v648_v49, %v643_v43  ;;  %v649_v55 = vmul.f32 %v647_v46, %v623_v40 }
 0x7dd   :  { %v652_v53 = vmul.f32 %v650_v52, %v643_v43  ;;  %v651_v2 = vmul.f32 %v649_v55, %v623_v40  ;;  %v645_v52 = vmul.f32 0.5, %v623_v40 }
 0x7de   :  { %v752_v41 = vpop.f32.mrf.mxu2  ;;  %v772_v7 = vpop.f32.mrf.mxu3 }
 0x7df   :  { %v753_v62 = vadd.f32 %v752_v41, %v4506_v28  ;;  %v773_v37 = vadd.f32 %v772_v7, %v4507_v11  ;;  %v653_v18 = vadd.f32 %v651_v2, %v623_v40  ;;  %v654_v32 = vadd.f32 %v652_v53, %v643_v43  ;;  %v4508_v7 = vld [vmem:[#allocation25_spill] sm:$0xff]  ;;  %v4509_v53 = vld [vmem:[#allocation26_spill] sm:$0xff]  ;;  %v4514_v2 = vld [vmem:[#allocation31_spill] sm:$0xff] }
 0x7e0   :  { %v646_v41 = vmul.f32 0.5, %v643_v43  ;;  %v4512_v40 = vld [vmem:[#allocation29_spill] sm:$0xff]  ;;  %v4513_v43 = vld [vmem:[#allocation30_spill] sm:$0xff] }
 0x7e1   :  { %884 = vrot.lane.b32.xlu1 %v773_v37, %s2522_s29  ;;  %2275 = vmatpush.xpose.msk.msrb.mxu1 %vm387_vm4, %v773_v37  ;;  %v655_v31 = vmul.f32 0.7978846, %v653_v18  ;;  %v656_v34 = vmul.f32 0.7978846, %v654_v32  ;;  %v4510_v18 = vld [vmem:[#allocation27_spill] sm:$0xff]  ;;  %v4511_v32 = vld [vmem:[#allocation28_spill] sm:$0xff] }
 0x7e2   :  { %882 = vrot.lane.b32.xlu0 %v753_v62, %s2522_s29  ;;  %v4529_v37 = vld [vmem:[#allocation20_spill] sm:$0xff] }
 0x7e3   :  { %2370 = vtanh.f32 %v655_v31  ;;  %v4530_v31 = vld [vmem:[#allocation21_spill] sm:$0xff] }
 0x7e4   :  { %2372 = vtanh.f32 %v656_v34  ;;  %v4531_v34 = vld [vmem:[#allocation22_spill] sm:$0xff] }
 0x7e9   :  { %v2371_v46 = vpop.eup %2370 }
 0x7ea   :  { %v2373_v49 = vpop.eup %2372  ;;  %v659_v55 = vadd.f32 1.0, %v2371_v46  ;;  %v4532_v46 = vld [vmem:[#allocation23_spill] sm:$0xff] }
 0x7eb   :  { %v660_v28 = vadd.f32 1.0, %v2373_v49  ;;  %v4533_v49 = vld [vmem:[#allocation24_spill] sm:$0xff] }
 0x7ec   :  { %v661_v25 = vmul.f32 %v659_v55, %v645_v52 }
 0x7ed   :  { %v662_v11 = vmul.f32 %v660_v28, %v646_v41 }
 0x7ee   :  { %682 = vmatmul.f32.vlgmr.msrb.gmra.mxu0 %v661_v25  ;;  %v4515_v25 = vld [vmem:[#allocation32_spill] sm:$0xff] }
 0x7ef   :  { %702 = vmatmul.f32.vlgmr.msra.gmra.mxu1 %v662_v11  ;;  %961 = vmatpush.msrb.mxu0 %v4508_v7 }
 0x7f1   :  { %962 = vmatpush.msrb.mxu0 %v4509_v53 }
 0x7f3   :  { %963 = vmatpush.msrb.mxu0 %v4510_v18 }
 0x7f5   :  { %964 = vmatpush.msrb.mxu0 %v4511_v32 }
 0x7f6   :  { %791 = vmatmul.f32.vlgmr.msra.gmra.mxu0 %v3225_v1 }
 0x7f7   :  { %2276 = vmatmul.msk.f32.vlgmr.msrb.gmra.mxu1 %vm387_vm4, %v753_v62  ;;  %965 = vmatpush.msrb.mxu0 %v4512_v40 }
 0x7f9   :  { %966 = vmatpush.msrb.mxu0 %v4513_v43 }
 0x7fb   :  { %967 = vmatpush.msrb.mxu0 %v4514_v2 }
 0x7fd   :  { %968 = vmatpush.msrb.mxu0 %v4515_v25 }
 0x7ff   :  { %1075 = vmatpush.msra.mxu0 %v3126_v29 }
 0x801   :  { %1076 = vmatpush.msra.mxu0 %v3128_v30  ;;  %v4516_v30 = vld [vmem:[#allocation38_spill] sm:$0xff] }
 0x803   :  { %1077 = vmatpush.msra.mxu0 %v3135_v35  ;;  %v4517_v35 = vld [vmem:[#allocation40_spill] sm:$0xff] }
 0x805   :  { %1078 = vmatpush.msra.mxu0 %v3141_v39  ;;  %v4518_v39 = vld [vmem:[#allocation42_spill] sm:$0xff] }
 0x807   :  { %1079 = vmatpush.msra.mxu0 %v3147_v45  ;;  %v4519_v45 = vld [vmem:[#allocation44_spill] sm:$0xff] }
 0x809   :  { %1080 = vmatpush.msra.mxu0 %v3153_v50  ;;  %v4520_v50 = vld [vmem:[#allocation46_spill] sm:$0xff] }
 0x80b   :  { %1081 = vmatpush.msra.mxu0 %v3161_v56 }
 0x80d   :  { %1082 = vmatpush.msra.mxu0 %v3167_v60  ;;  %v4523_v60 = vld [vmem:[#allocation15_spill] sm:$0xff] }
 0x80f   :  { %1083 = vmatpush.msra.mxu0 %v3183_v23  ;;  %v3328_v23 = vperm.slane %v4523_v60, 1  ;;  %v4551_v60 = vld [vmem:[#allocation33_spill] sm:$0xff] }
 0x811   :  { %1084 = vmatpush.msra.mxu0 %v3195_v47  ;;  %4524 = vst [vmem:[#allocation12_spill] sm:$0xff] %v3328_v23  ;;  %v4525_v47 = vperm.slane %v4505_v15, 2 }
 0x813   :  { %1085 = vmatpush.msra.mxu0 %v3231_v21 }
 0x815   :  { %1086 = vmatpush.msra.mxu0 %v3236_v13 }
 0x817   :  { %1087 = vmatpush.msra.mxu0 %v3240_v17 }
 0x819   :  { %1088 = vmatpush.msra.mxu0 %v3244_v51 }
 0x81b   :  { %1089 = vmatpush.msra.mxu0 %v3247_v36  ;;  %v4527_v36 = vld [vmem:[#allocation18_spill] sm:$0xff] }
 0x81d   :  { %1090 = vmatpush.msra.mxu0 %v3251_v6  ;;  %v4528_v6 = vld [vmem:[#allocation19_spill] sm:$0xff] }
 0x853   :  { %v885_v62 = vpop.permute.xlu1 %884 }
 0x854   :  { %2279 = vmatpush.xpose.msk.msra.mxu2 %vm387_vm4, %v885_v62  ;;  %v883_v29 = vpop.permute.xlu0 %882 }
 0x857   :  { %2280 = vmatmul.msk.f32.vlgmr.msra.gmra.mxu2 %vm387_vm4, %v883_v29 }
 0x858   :  { %997 = vmatpush.msrb.mxu2 %v2977_v58  ;;  %v4521_v58 = vld [vmem:[#allocation49_spill] sm:$0xff] }
 0x85a   :  { %998 = vmatpush.msrb.mxu2 %v2981_v19 }
 0x85c   :  { %999 = vmatpush.msrb.mxu2 %v2988_v3  ;;  %v4522_v3 = vld [vmem:[#allocation52_spill] sm:$0xff] }
 0x85e   :  { %1000 = vmatpush.msrb.mxu2 %v2996_v0 }
 0x860   :  { %1001 = vmatpush.msrb.mxu2 %v4516_v30 }
 0x862   :  { %1002 = vmatpush.msrb.mxu2 %v4517_v35  ;;  %v4545_v35 = vld [vmem:[#allocation50_spill] sm:$0xff] }
 0x864   :  { %1003 = vmatpush.msrb.mxu2 %v4518_v39 }
 0x866   :  { %1004 = vmatpush.msrb.mxu2 %v4519_v45  ;;  %v4546_v45 = vld [vmem:[#allocation51_spill] sm:$0xff] }
 0x868   :  { %1005 = vmatpush.msrb.mxu2 %v4520_v50  ;;  %v4547_v50 = vld [vmem:[#allocation53_spill] sm:$0xff] }
 0x86a   :  { %1006 = vmatpush.msrb.mxu2 %v3034_v61  ;;  %v3333_v61 = vld [vmem:[%s4309_s13] ss:$0 sm:$0xff] }
 0x86b   :  { %v683_v56 = vpop.f32.mrf.mxu0 }
 0x86c   :  { %1007 = vmatpush.msrb.mxu2 %v4521_v58  ;;  %v703_v19 = vpop.f32.mrf.mxu1  ;;  %v684_v17 = vadd.f32 %v3333_v61, %v683_v56  ;;  %v4548_v58 = vld [vmem:[#allocation54_spill] sm:$0xff]  ;;  %v4549_v56 = vld [vmem:[#allocation55_spill] sm:$0xff] }
 0x86e   :  { %1008 = vmatpush.msrb.mxu2 %v3046_v10  ;;  %v704_v15 = vadd.f32 %v703_v19, %v684_v17  ;;  %v4550_v19 = vld [vmem:[#allocation56_spill] sm:$0xff] }
 0x870   :  { %1009 = vmatpush.msrb.mxu2 %v4522_v3 }
 0x872   :  { %1010 = vmatpush.msrb.mxu2 %v3060_v63 }
 0x873   :  { %v792_v0 = vpop.f32.mrf.mxu0 }
 0x874   :  { %1011 = vmatpush.msrb.mxu2 %v3066_v12  ;;  %v793_v21 = vadd.f32 %v792_v0, %v4525_v47  ;;  %v818_v13 = vpop.f32.mrf.mxu1  ;;  %v4526_v12 = vld [vmem:[#allocation17_spill] sm:$0xff] }
 0x875   :  { %v821_v10 = vmul.f32 0.125, %v818_v13 }
 0x876   :  { %1012 = vmatpush.msrb.mxu2 %v3072_v14  ;;  %853 = vmatpush.msra.mxu1 %v793_v21  ;;  %v3347_v14 = vadd.f32 %v704_v15, %v3209_v57 }
 0x877   :  { %v823_v63 = vadd.f32 %v3328_v23, %v821_v10 }
 0x878   :  { %869 = vmatpush.msrb.mxu1 %v4526_v12 }
 0x879   :  { %v824_v51 = vsel %vm417_vm5, %v823_v63, -inf }
 0x87a   :  { %870 = vmatpush.msrb.mxu1 %v4527_v36  ;;  %825 = vmax.xlane.f32.xlu0 %v824_v51 }
 0x87c   :  { %871 = vmatpush.msrb.mxu1 %v4528_v6 }
 0x87e   :  { %872 = vmatpush.msrb.mxu1 %v4529_v37 }
 0x880   :  { %873 = vmatpush.msrb.mxu1 %v4530_v31 }
 0x882   :  { %874 = vmatpush.msrb.mxu1 %v4531_v34  ;;  %707 = vadd.xlane.f32.xlu0 %v3347_v14  ;;  %v3407_v34 = vld [vmem:[#allocation4 + $0x2e8] sm:$0xff] }
 0x883   :  { %1273 = vmatpush.msra.mxu2 %v3407_v34 }
 0x884   :  { %875 = vmatpush.msrb.mxu1 %v4532_v46  ;;  %v3415_v46 = vld [vmem:[#allocation4 + $0x2d8] sm:$0xff] }
 0x886   :  { %876 = vmatpush.msrb.mxu1 %v4533_v49  ;;  %v3419_v49 = vld [vmem:[#allocation4 + $0x2b8] sm:$0xff] }
 0x8da   :  { %v907_v52 = vpop.f32.mrf.mxu2 }
 0x8db   :  { %v910_v55 = vmul.f32 0.125, %v907_v52  ;;  %v3421_v52 = vld [vmem:[#allocation4 + $0x2c0] sm:$0xff] }
 0x8dd   :  { %v911_v41 = vadd.f32 %v910_v55, %v3328_v23  ;;  %v3425_v55 = vld [vmem:[#allocation4 + $0x2a0] sm:$0xff] }
 0x8df   :  { %v912_v28 = vsel %vm417_vm5, %v911_v41, -inf }
 0x8e0   :  { %913 = vmax.xlane.f32.xlu1 %v912_v28  ;;  %v3431_v28 = vld [vmem:[#allocation4 + $0x288] sm:$0xff] }
 0x8ed   :  { %v826_v11 = vpop.xlane.xlu0 %825 }
 0x8ee   :  { %v827_v7 = vsub.f32 %v823_v63, %v826_v11  ;;  %v4552_v63 = vld [vmem:[#allocation11_spill] sm:$0xff]  ;;  %v3433_v11 = vld [vmem:[#allocation4 + $0x290] sm:$0xff] }
 0x8f0   :  { %v828_v53 = vmul.f32 1.442695, %v827_v7 }
 0x8f2   :  { %2374 = vpow2.f32 %v828_v53  ;;  %v3437_v53 = vld [vmem:[#allocation4 + $0x270] sm:$0xff] }
 0x8f8   :  { %v2375_v57 = vpop.eup %2374 }
 0x8f9   :  { %v830_v18 = vsel %vm417_vm5, %v2375_v57, 0.0 }
 0x8fa   :  { %831 = vadd.xlane.f32.xlu2 %v830_v18  ;;  %v3443_v18 = vld [vmem:[#allocation4 + $0x258] sm:$0xff] }
 0x953   :  { %v914_v32 = vpop.xlane.xlu1 %913 }
 0x954   :  { %v915_v40 = vsub.f32 %v911_v41, %v914_v32  ;;  %v3427_v41 = vld [vmem:[#allocation4 + $0x2a8] sm:$0xff]  ;;  %v3445_v32 = vld [vmem:[#allocation4 + $0x260] sm:$0xff] }
 0x956   :  { %v916_v43 = vmul.f32 1.442695, %v915_v40 }
 0x958   :  { %2376 = vpow2.f32 %v916_v43  ;;  %v3450_v43 = vld [vmem:[#allocation4 + $0x240] sm:$0xff] }
 0x95e   :  { %v2377_v2 = vpop.eup %2376 }
 0x95f   :  { %v918_v25 = vsel %vm417_vm5, %v2377_v2, 0.0 }
 0x960   :  { %919 = vadd.xlane.f32.xlu2 %v918_v25  ;;  %v3456_v25 = vld [vmem:[#allocation4 + $0x228] sm:$0xff] }
 0x96d   :  { %v832_v62 = vpop.xlane.xlu2 %831 }
 0x96e   :  { %2378 = vrcp.f32 %v832_v62  ;;  %v3458_v62 = vld [vmem:[#allocation4 + $0x230] sm:$0xff] }
 0x974   :  { %v2379_v29 = vpop.eup %2378 }
 0x975   :  { %v834_v30 = vmul.f32 %v2379_v29, %v2375_v57  ;;  %v3439_v57 = vld [vmem:[#allocation4 + $0x278] sm:$0xff] }
 0x977   :  { %2277 = vmatmul.msk.f32.vlgmr.msra.gmra.mxu1 %vm417_vm5, %v834_v30  ;;  %v3462_v30 = vld [vmem:[#allocation4 + $0x210] sm:$0xff] }
 0x978   :  { %924 = vrot.lane.b32.xlu2 %v793_v21, %s2522_s29  ;;  %1055 = vmatpush.msra.mxu1 %v3119_v24  ;;  %v4534_v24 = vld [vmem:[#allocation59_spill] sm:$0xff]  ;;  %v708_v21 = vpop.xlane.xlu0 %707 }
 0x979   :  { %v709_v12 = vmul.f32 %v708_v21, %v4552_v63 }
 0x97a   :  { %1056 = vmatpush.msra.mxu1 %v3121_v26 }
 0x97b   :  { %v3398_v51 = vsub.f32 %v3347_v14, %v709_v12  ;;  %v3413_v14 = vld [vmem:[#allocation4 + $0x2d0] sm:$0xff] }
 0x97c   :  { %1057 = vmatpush.msra.mxu1 %v3124_v27  ;;  %1274 = vmatpush.msra.mxu2 %v3413_v14 }
 0x97d   :  { %v711_v36 = vmul.f32 %v3398_v51, %v3398_v51 }
 0x97e   :  { %1058 = vmatpush.msra.mxu1 %v3133_v33  ;;  %1275 = vmatpush.msra.mxu2 %v3419_v49 }
 0x980   :  { %1059 = vmatpush.msra.mxu1 %v3139_v38  ;;  %1276 = vmatpush.msra.mxu2 %v3425_v55 }
 0x982   :  { %1060 = vmatpush.msra.mxu1 %v3145_v44  ;;  %v4535_v44 = vld [vmem:[#allocation34_spill] sm:$0xff]  ;;  %1277 = vmatpush.msra.mxu2 %v3431_v28 }
 0x984   :  { %1061 = vmatpush.msra.mxu1 %v3151_v48  ;;  %v4536_v48 = vld [vmem:[#allocation35_spill] sm:$0xff]  ;;  %1278 = vmatpush.msra.mxu2 %v3437_v53 }
 0x986   :  { %1062 = vmatpush.msra.mxu1 %v3159_v54  ;;  %v4537_v54 = vld [vmem:[#allocation36_spill] sm:$0xff]  ;;  %1279 = vmatpush.msra.mxu2 %v3443_v18 }
 0x988   :  { %1063 = vmatpush.msra.mxu1 %v3165_v59  ;;  %v4538_v59 = vld [vmem:[#allocation37_spill] sm:$0xff]  ;;  %1280 = vmatpush.msra.mxu2 %v3450_v43 }
 0x98a   :  { %1064 = vmatpush.msra.mxu1 %v3181_v20  ;;  %v4539_v20 = vld [vmem:[#allocation39_spill] sm:$0xff]  ;;  %1281 = vmatpush.msra.mxu2 %v3456_v25 }
 0x98c   :  { %1065 = vmatpush.msra.mxu1 %v3193_v42  ;;  %v4540_v42 = vld [vmem:[#allocation41_spill] sm:$0xff]  ;;  %1282 = vmatpush.msra.mxu2 %v3462_v30 }
 0x98e   :  { %1066 = vmatpush.msra.mxu1 %v3203_v16  ;;  %v4541_v16 = vld [vmem:[#allocation43_spill] sm:$0xff] }
 0x990   :  { %1067 = vmatpush.msra.mxu1 %v3211_v5  ;;  %v4542_v5 = vld [vmem:[#allocation45_spill] sm:$0xff] }
 0x992   :  { %1068 = vmatpush.msra.mxu1 %v3216_v8  ;;  %v4543_v8 = vld [vmem:[#allocation47_spill] sm:$0xff] }
 0x994   :  { %1069 = vmatpush.msra.mxu1 %v3220_v4  ;;  %v4544_v4 = vld [vmem:[#allocation48_spill] sm:$0xff] }
 0x996   :  { %1070 = vmatpush.msra.mxu1 %v4534_v24  ;;  %v3464_v24 = vld [vmem:[#allocation4 + $0x218] sm:$0xff] }
 0x9d3   :  { %v920_v26 = vpop.xlane.xlu2 %919 }
 0x9d4   :  { %2380 = vrcp.f32 %v920_v26  ;;  %v3466_v26 = vld [vmem:[#allocation4 + $0x1f8] sm:$0xff] }
 0x9d5   :  { %1283 = vmatpush.msra.mxu2 %v3466_v26 }
 0x9da   :  { %v2381_v27 = vpop.eup %2380 }
 0x9db   :  { %v922_v33 = vmul.f32 %v2381_v27, %v2377_v2  ;;  %v925_v38 = vpop.permute.xlu2 %924  ;;  %v3452_v2 = vld [vmem:[#allocation4 + $0x248] sm:$0xff]  ;;  %v3468_v27 = vld [vmem:[#allocation4 + $0x200] sm:$0xff] }
 0x9dc   :  { %945 = vmatpush.msra.mxu3 %v925_v38  ;;  %v3474_v38 = vld [vmem:[#allocation4 + $0x1e8] sm:$0xff] }
 0x9dd   :  { %2281 = vmatmul.msk.f32.vlgmr.msra.gmra.mxu3 %vm417_vm5, %v922_v33  ;;  %v3472_v33 = vld [vmem:[#allocation4 + $0x1e0] sm:$0xff] }
 0x9de   :  { %1017 = vmatpush.msrb.mxu3 %v4535_v44  ;;  %1284 = vmatpush.msra.mxu2 %v3472_v33  ;;  %v3480_v44 = vld [vmem:[#allocation4 + $0x1c8] sm:$0xff] }
 0x9e0   :  { %1018 = vmatpush.msrb.mxu3 %v4536_v48  ;;  %v3482_v48 = vld [vmem:[#allocation4 + $0x1d0] sm:$0xff]  ;;  %1285 = vmatpush.msra.mxu2 %v3480_v44 }
 0x9e2   :  { %1019 = vmatpush.msrb.mxu3 %v4537_v54  ;;  %v3484_v54 = vld [vmem:[#allocation4 + $0x1b0] sm:$0xff] }
 0x9e3   :  { %1286 = vmatpush.msra.mxu2 %v3484_v54 }
 0x9e4   :  { %1020 = vmatpush.msrb.mxu3 %v4538_v59  ;;  %v3486_v59 = vld [vmem:[#allocation4 + $0x1b8] sm:$0xff] }
 0x9e6   :  { %1021 = vmatpush.msrb.mxu3 %v4539_v20 }
 0x9e8   :  { %1022 = vmatpush.msrb.mxu3 %v4540_v42  ;;  %v3490_v42 = vld [vmem:[#allocation4 + $0x198] sm:$0xff] }
 0x9e9   :  { %1287 = vmatpush.msra.mxu2 %v3490_v42 }
 0x9ea   :  { %1023 = vmatpush.msrb.mxu3 %v4541_v16  ;;  %v3492_v16 = vld [vmem:[#allocation4 + $0x1a0] sm:$0xff] }
 0x9ec   :  { %1024 = vmatpush.msrb.mxu3 %v4542_v5 }
 0x9ee   :  { %1025 = vmatpush.msrb.mxu3 %v4543_v8 }
 0x9f0   :  { %1026 = vmatpush.msrb.mxu3 %v4544_v4  ;;  %v3497_v4 = vld [vmem:[#allocation4 + $0x180] sm:$0xff] }
 0x9f1   :  { %1288 = vmatpush.msra.mxu2 %v3497_v4 }
 0x9f2   :  { %1027 = vmatpush.msrb.mxu3 %v4545_v35  ;;  %v3499_v35 = vld [vmem:[#allocation4 + $0x188] sm:$0xff] }
 0x9f4   :  { %v855_v39 = vpop.f32.mrf.mxu1  ;;  %1028 = vmatpush.msrb.mxu3 %v4546_v45 }
 0x9f5   :  { %2278 = vmatmul.msk.f32.vlgmr.msrb.gmra.mxu1 %vm387_vm4, %v855_v39 }
 0x9f6   :  { %1029 = vmatpush.msrb.mxu3 %v4547_v50 }
 0x9f8   :  { %1030 = vmatpush.msrb.mxu3 %v4548_v58 }
 0x9fa   :  { %1031 = vmatpush.msrb.mxu3 %v4549_v56 }
 0x9fc   :  { %1032 = vmatpush.msrb.mxu3 %v4550_v19 }
 0xa60   :  { %v947_v3 = vpop.f32.mrf.mxu3 }
 0xa61   :  { %2282 = vmatmul.msk.f32.vlgmr.msrb.gmra.mxu0 %vm387_vm4, %v947_v3 }
 0xa72   :  { %v878_v0 = vpop.f32.mrf.mxu1 }
 0xa73   :  { %v881_v47 = vadd.f32 %v4551_v60, %v878_v0 }
 0xade   :  { %v970_v13 = vpop.f32.mrf.mxu0 }
 0xadf   :  { %v973_v10 = vadd.f32 %v970_v13, %v881_v47 }
 0xae1   :  { %v974_v17 = vadd.f32 %v973_v10, %v3225_v1  ;;  %v3409_v1 = vld [vmem:[#allocation4 + $0x2f0] sm:$0xff] }
 0xae2   :  { %1293 = vmatpush.msra.mxu3 %v3409_v1 }
 0xae3   :  { %975 = vadd.xlane.f32.xlu1 %v974_v17 }
 0xae4   :  { %1294 = vmatpush.msra.mxu3 %v3415_v46 }
 0xae6   :  { %1295 = vmatpush.msra.mxu3 %v3421_v52 }
 0xae8   :  { %1296 = vmatpush.msra.mxu3 %v3427_v41 }
 0xaea   :  { %1297 = vmatpush.msra.mxu3 %v3433_v11 }
 0xaeb   :  { %712 = vadd.xlane.f32.xlu1 %v711_v36  ;;  %v4553_v36 = vld [vmem:[#allocation57_spill] sm:$0xff] }
 0xaec   :  { %1298 = vmatpush.msra.mxu3 %v3439_v57 }
 0xaee   :  { %1299 = vmatpush.msra.mxu3 %v3445_v32 }
 0xaf0   :  { %1300 = vmatpush.msra.mxu3 %v3452_v2 }
 0xaf2   :  { %1301 = vmatpush.msra.mxu3 %v3458_v62 }
 0xaf4   :  { %1302 = vmatpush.msra.mxu3 %v3464_v24 }
 0xaf6   :  { %1303 = vmatpush.msra.mxu3 %v3468_v27 }
 0xaf8   :  { %1304 = vmatpush.msra.mxu3 %v3474_v38 }
 0xafa   :  { %1305 = vmatpush.msra.mxu3 %v3482_v48 }
 0xafc   :  { %1306 = vmatpush.msra.mxu3 %v3486_v59 }
 0xafe   :  { %1307 = vmatpush.msra.mxu3 %v3492_v16 }
 0xb00   :  { %1308 = vmatpush.msra.mxu3 %v3499_v35 }
 0xb56   :  { %v976_v6 = vpop.xlane.xlu1 %975 }
 0xb57   :  { %v977_v15 = vmul.f32 %v976_v6, %v4552_v63 }
 0xb59   :  { %v3403_v37 = vsub.f32 %v974_v17, %v977_v15 }
 0xb5b   :  { %v979_v31 = vmul.f32 %v3403_v37, %v3403_v37 }
 0xb5d   :  { %980 = vadd.xlane.f32.xlu2 %v979_v31  ;;  %v4554_v31 = vld [vmem:[#allocation58_spill] sm:$0xff] }
 0xb5e   :  { %v713_v7 = vpop.xlane.xlu1 %712 }
 0xb5f   :  { %v714_v40 = vmul.f32 %v713_v7, %v4552_v63 }
 0xb61   :  { %v715_v29 = vadd.f32 1e-07, %v714_v40  ;;  %v3514_v40 = vld [vmem:[%s4310_s14] ss:$0 sm:$0xff] }
 0xb63   :  { %2382 = vrsqrt.f32 %v715_v29  ;;  %vm722_vm0 = vweird.f32 %v715_v29 }
 0xb69   :  { %v2383_v5 = vpop.eup %2382 }
 0xb6a   :  { %v717_v45 = vmul.f32 %v2383_v5, %v715_v29  ;;  %vm723_vm13 = vweird.f32 %v2383_v5 }
 0xb6b   :  { %vm724_vm1 = vmor %vm722_vm0, %vm723_vm13 }
 0xb6c   :  { %v718_v50 = vmul.f32 %v2383_v5, %v717_v45  ;;  %v3541_v45 = vld [vmem:[#allocation4 + $0x298] sm:$0xff] }
 0xb6e   :  { %v719_v56 = vmul.f32 0.5, %v718_v50  ;;  %v3543_v50 = vld [vmem:[#allocation4 + $0x280] sm:$0xff] }
 0xb70   :  { %v720_v0 = vsub.f32 1.5, %v719_v56  ;;  %v3549_v56 = vld [vmem:[#allocation4 + $0x250] sm:$0xff] }
 0xb71   :  { %4556 = vst [vmem:[#allocation14_spill] sm:$0xff] %v3549_v56 }
 0xb72   :  { %v721_v21 = vmul.f32 %v2383_v5, %v720_v0  ;;  %v3558_v0 = vld [vmem:[#allocation4 + $0x208] sm:$0xff] }
 0xb73   :  { %4559 = vst [vmem:[#allocation27_spill] sm:$0xff] %v3558_v0 }
 0xb74   :  { %v725_v17 = vsel %vm724_vm1, %v2383_v5, %v721_v21  ;;  %v3532_v5 = vld [vmem:[#allocation4 + $0x2e0] sm:$0xff] }
 0xb75   :  { %v726_v15 = vmul.f32 %v725_v17, %v3398_v51  ;;  %v3567_v21 = vld [vmem:[#allocation4 + $0x1c0] sm:$0xff] }
 0xb76   :  { %4562 = vst [vmem:[#allocation30_spill] sm:$0xff] %v3567_v21 }
 0xb77   :  { %v730_v29 = vmul.f32 %v3514_v40, %v726_v15 }
 0xbd0   :  { %v981_v20 = vpop.xlane.xlu2 %980 }
 0xbd1   :  { %v982_v8 = vmul.f32 %v981_v20, %v4552_v63  ;;  %v3529_v20 = vld [vmem:[#allocation4 + $0x2f8] sm:$0xff] }
 0xbd2   :  { %1313 = vmatpush.msrb.mxu1 %v3529_v20 }
 0xbd3   :  { %v983_v39 = vadd.f32 1e-07, %v982_v8  ;;  %v3535_v8 = vld [vmem:[#allocation4 + $0x2c8] sm:$0xff] }
 0xbd4   :  { %1314 = vmatpush.msrb.mxu1 %v3532_v5 }
 0xbd5   :  { %2384 = vrsqrt.f32 %v983_v39  ;;  %vm990_vm14 = vweird.f32 %v983_v39 }
 0xbd6   :  { %1315 = vmatpush.msrb.mxu1 %v3535_v8 }
 0xbdb   :  { %v2385_v58 = vpop.eup %2384 }
 0xbdc   :  { %v985_v19 = vmul.f32 %v2385_v58, %v983_v39  ;;  %vm991_vm12 = vweird.f32 %v2385_v58  ;;  %v3538_v39 = vld [vmem:[#allocation4 + $0x2b0] sm:$0xff] }
 0xbdd   :  { %vm992_vm15 = vmor %vm990_vm14, %vm991_vm12  ;;  %1316 = vmatpush.msrb.mxu1 %v3538_v39  ;;  %vm2130_vm14 = vcmask 7168  }
 0xbde   :  { %v986_v3 = vmul.f32 %v2385_v58, %v985_v19  ;;  %v3552_v19 = vld [vmem:[#allocation4 + $0x238] sm:$0xff] }
 0xbdf   :  { %1317 = vmatpush.msrb.mxu1 %v3541_v45  ;;  %4557 = vst [vmem:[#allocation25_spill] sm:$0xff] %v3552_v19 }
 0xbe0   :  { %v987_v60 = vmul.f32 0.5, %v986_v3  ;;  %v3555_v3 = vld [vmem:[#allocation4 + $0x220] sm:$0xff] }
 0xbe1   :  { %1318 = vmatpush.msrb.mxu1 %v3543_v50  ;;  %4558 = vst [vmem:[#allocation26_spill] sm:$0xff] %v3555_v3 }
 0xbe2   :  { %v988_v47 = vsub.f32 1.5, %v987_v60  ;;  %v3561_v60 = vld [vmem:[#allocation4 + $0x1f0] sm:$0xff] }
 0xbe3   :  { %4560 = vst [vmem:[#allocation28_spill] sm:$0xff] %v3561_v60 }
 0xbe4   :  { %v989_v13 = vmul.f32 %v2385_v58, %v988_v47  ;;  %v3565_v47 = vld [vmem:[#allocation4 + $0x1d8] sm:$0xff] }
 0xbe5   :  { %4561 = vst [vmem:[#allocation29_spill] sm:$0xff] %v3565_v47 }
 0xbe6   :  { %v993_v10 = vsel %vm992_vm15, %v2385_v58, %v989_v13  ;;  %v3547_v58 = vld [vmem:[#allocation4 + $0x268] sm:$0xff] }
 0xbe7   :  { %v994_v12 = vmul.f32 %v993_v10, %v3403_v37  ;;  %v3522_v37 = vld [vmem:[%s4311_s15] ss:$0 sm:$0xff]  ;;  %4555 = vst [vmem:[#allocation13_spill] sm:$0xff] %v3547_v58  ;;  %1319 = vmatpush.msrb.mxu1 %v3547_v58  ;;  %v3570_v13 = vld [vmem:[#allocation4 + $0x1a8] sm:$0xff]  ;;  %v3573_v10 = vld [vmem:[#allocation4 + $0x190] sm:$0xff] }
 0xbe8   :  { %v3525_v51 = vadd.f32 %v3522_v37, %v730_v29  ;;  %4563 = vst [vmem:[#allocation31_spill] sm:$0xff] %v3570_v13 }
 0xbe9   :  { %v995_v6 = vmul.f32 %v4553_v36, %v994_v12  ;;  %1320 = vmatpush.msrb.mxu1 %v3549_v56  ;;  %4564 = vst [vmem:[#allocation32_spill] sm:$0xff] %v3573_v10 }
 0xbeb   :  { %v3509_v7 = vadd.f32 %v4554_v31, %v995_v6  ;;  %1321 = vmatpush.msrb.mxu1 %v3552_v19  ;;  %v4565_v6 = vperm.slane %v3265_v9, 1  ;;  %v3584_v31 = vld [vmem:[%s4452_s28 + $0x3] sm:$0x7] }
 0xbed   :  { %1013 = vmatmul.f32.vlgmr.msrb.gmra.mxu2 %v3509_v7  ;;  %1033 = vmatmul.f32.vlgmr.msrb.gmra.mxu3 %v3509_v7 }
 0xbee   :  { %1322 = vmatpush.msrb.mxu1 %v3555_v3 }
 0xbf0   :  { %1323 = vmatpush.msrb.mxu1 %v3558_v0 }
 0xbf2   :  { %1324 = vmatpush.msrb.mxu1 %v3561_v60  ;;  %v4392_v60 = vperm.slane %v3584_v31, 1 }
 0xbf4   :  { %1325 = vmatpush.msrb.mxu1 %v3565_v47 }
 0xbf5   :  { %1289 = vmatmul.f32.vlgmr.msra.gmra.mxu2 %v3525_v51  ;;  %1309 = vmatmul.f32.vlgmr.msra.gmra.mxu3 %v3525_v51 }
 0xbf6   :  { %1326 = vmatpush.msrb.mxu1 %v3567_v21 }
 0xbf8   :  { %1327 = vmatpush.msrb.mxu1 %v3570_v13  ;;  %v4389_v13 = vperm.slane %v3584_v31, 0 }
 0xbfa   :  { %1328 = vmatpush.msrb.mxu1 %v3573_v10 }
 0xc70   :  { %v1014_v12 = vpop.f32.mrf.mxu2  ;;  %v1034_v17 = vpop.f32.mrf.mxu3 }
 0xc71   :  { %v1015_v36 = vadd.f32 %v1014_v12, %v601_v22  ;;  %v1035_v15 = vadd.f32 %v1034_v17, %v4565_v6 }
 0xc73   :  { %v1039_v29 = vmul.f32 0.044715, %v1015_v36  ;;  %v1040_v23 = vmul.f32 0.044715, %v1035_v15  ;;  %v1037_v19 = vmul.f32 0.5, %v1015_v36 }
 0xc75   :  { %v1041_v21 = vmul.f32 %v1039_v29, %v1015_v36  ;;  %v1042_v47 = vmul.f32 %v1040_v23, %v1035_v15 }
 0xc77   :  { %v1043_v10 = vmul.f32 %v1041_v21, %v1015_v36  ;;  %v1044_v0 = vmul.f32 %v1042_v47, %v1035_v15 }
 0xc78   :  { %v1290_v3 = vpop.f32.mrf.mxu2  ;;  %v1310_v22 = vpop.f32.mrf.mxu3 }
 0xc79   :  { %v1291_v9 = vadd.f32 %v1290_v3, %v4389_v13  ;;  %v1311_v12 = vadd.f32 %v1310_v22, %v4392_v60  ;;  %v1045_v17 = vadd.f32 %v1043_v10, %v1015_v36  ;;  %v1046_v6 = vadd.f32 %v1044_v0, %v1035_v15  ;;  %v3715_v60 = vld [vmem:[%s4303_s7 + $0x1] ss:$0 sm:$0xff] }
 0xc7a   :  { %v1038_v3 = vmul.f32 0.5, %v1035_v15  ;;  %4575 = vst [vmem:[#allocation17_spill] sm:$0xff] %v3715_v60 }
 0xc7b   :  { %1424 = vrot.lane.b32.xlu0 %v1311_v12, %s2522_s29  ;;  %2307 = vmatpush.xpose.msk.msrb.mxu0 %vm387_vm4, %v1311_v12  ;;  %v1047_v23 = vmul.f32 0.7978846, %v1045_v17  ;;  %v1048_v29 = vmul.f32 0.7978846, %v1046_v6  ;;  %v4566_v6 = vld [vmem:[#allocation16_spill] sm:$0xff] }
 0xc7c   :  { %1422 = vrot.lane.b32.xlu1 %v1291_v9, %s2522_s29 }
 0xc7d   :  { %2386 = vtanh.f32 %v1047_v23 }
 0xc7e   :  { %2388 = vtanh.f32 %v1048_v29 }
 0xc83   :  { %v2387_v47 = vpop.eup %2386 }
 0xc84   :  { %v2389_v21 = vpop.eup %2388  ;;  %v1051_v56 = vadd.f32 1.0, %v2387_v47 }
 0xc85   :  { %v1052_v13 = vadd.f32 1.0, %v2389_v21 }
 0xc86   :  { %v1053_v58 = vmul.f32 %v1051_v56, %v1037_v19  ;;  %v4391_v56 = vperm.slane %v3584_v31, 2 }
 0xc87   :  { %v1054_v22 = vmul.f32 %v1052_v13, %v1038_v3 }
 0xc88   :  { %1071 = vmatmul.f32.vlgmr.msra.gmra.mxu1 %v1053_v58 }
 0xc89   :  { %1091 = vmatmul.f32.vlgmr.msra.gmra.mxu0 %v1054_v22 }
 0xc90   :  { %1329 = vmatmul.f32.vlgmr.msrb.gmra.mxu1 %v3525_v51 }
 0xc91   :  { %2308 = vmatmul.msk.f32.vlgmr.msrb.gmra.mxu0 %vm387_vm4, %v1291_v9 }
 0xced   :  { %v1425_v0 = vpop.permute.xlu0 %1424 }
 0xcee   :  { %2311 = vmatpush.xpose.msk.msrb.mxu2 %vm387_vm4, %v1425_v0  ;;  %v1423_v10 = vpop.permute.xlu1 %1422 }
 0xcf1   :  { %2312 = vmatmul.msk.f32.vlgmr.msrb.gmra.mxu2 %vm387_vm4, %v1423_v10 }
 0xd05   :  { %v1072_v12 = vpop.f32.mrf.mxu1 }
 0xd06   :  { %v1073_v36 = vadd.f32 %v3333_v61, %v1072_v12  ;;  %v1092_v17 = vpop.f32.mrf.mxu0 }
 0xd08   :  { %v3600_v15 = vadd.f32 %v1092_v17, %v1073_v36 }
 0xd0d   :  { %v1330_v58 = vpop.f32.mrf.mxu1 }
 0xd0e   :  { %v1331_v19 = vadd.f32 %v1330_v58, %v4391_v56  ;;  %v1356_v13 = vpop.f32.mrf.mxu0  ;;  %v3694_v56 = vld [vmem:[%s4457_s24 + $0xd0] sm:$0xff] }
 0xd0f   :  { %v1359_v9 = vmul.f32 0.125, %v1356_v13 }
 0xd10   :  { %1390 = vmatpush.msra.mxu0 %v1331_v19 }
 0xd11   :  { %v1360_v23 = vadd.f32 %v1359_v9, %v4566_v6 }
 0xd13   :  { %v1361_v29 = vsel %vm417_vm5, %v1360_v23, -inf }
 0xd14   :  { %1362 = vmax.xlane.f32.xlu1 %v1361_v29 }
 0xd74   :  { %v1447_v47 = vpop.f32.mrf.mxu2 }
 0xd75   :  { %v1450_v21 = vmul.f32 0.125, %v1447_v47 }
 0xd77   :  { %v1451_v61 = vadd.f32 %v1450_v21, %v4566_v6 }
 0xd79   :  { %v1452_v3 = vsel %vm417_vm5, %v1451_v61, -inf }
 0xd7a   :  { %1453 = vmax.xlane.f32.xlu0 %v1452_v3  ;;  %v3627_v3 = vld [vmem:[%s4457_s24 + $0xa8] sm:$0xff] }
 0xd7b   :  { %4569 = vst [vmem:[#allocation42_spill] sm:$0xff] %v3627_v3 }
 0xd87   :  { %v1363_v22 = vpop.xlane.xlu1 %1362 }
 0xd88   :  { %v1364_v0 = vsub.f32 %v1360_v23, %v1363_v22  ;;  %v3616_v23 = vld [vmem:[%s4457_s24 + $0xb8] sm:$0xff] }
 0xd89   :  { %4567 = vst [vmem:[#allocation38_spill] sm:$0xff] %v3616_v23  ;;  %1406 = vmatpush.msrb.mxu0 %v3616_v23  ;;  %v3639_v22 = vld [vmem:[%s4457_s24 + $0x98] sm:$0xff] }
 0xd8a   :  { %v1365_v10 = vmul.f32 1.442695, %v1364_v0  ;;  %4571 = vst [vmem:[#allocation46_spill] sm:$0xff] %v3639_v22  ;;  %v3645_v0 = vld [vmem:[%s4457_s24 + $0x90] sm:$0xff]  ;;  %v3757_v23 = vld [vmem:[#allocation6 + $0x198] sm:$0xff] }
 0xd8b   :  { %4572 = vst [vmem:[#allocation49_spill] sm:$0xff] %v3645_v0 }
 0xd8c   :  { %2390 = vpow2.f32 %v1365_v10  ;;  %v3651_v10 = vld [vmem:[%s4457_s24 + $0x88] sm:$0xff]  ;;  %4588 = vst [vmem:[#allocation39_spill] sm:$0xff] %v3757_v23 }
 0xd8d   :  { %4573 = vst [vmem:[#allocation52_spill] sm:$0xff] %v3651_v10 }
 0xd92   :  { %v2391_v12 = vpop.eup %2390 }
 0xd93   :  { %v1367_v36 = vsel %vm417_vm5, %v2391_v12, 0.0 }
 0xd94   :  { %1368 = vadd.xlane.f32.xlu2 %v1367_v36  ;;  %v3658_v36 = vld [vmem:[%s4457_s24 + $0x80] sm:$0xff] }
 0xd95   :  { %4574 = vst [vmem:[#allocation15_spill] sm:$0xff] %v3658_v36 }
 0xded   :  { %v1454_v17 = vpop.xlane.xlu0 %1453 }
 0xdee   :  { %v1455_v58 = vsub.f32 %v1451_v61, %v1454_v17  ;;  %v3621_v61 = vld [vmem:[%s4457_s24 + $0xb0] sm:$0xff]  ;;  %v3664_v17 = vld [vmem:[%s4457_s24 + $0xf8] sm:$0xff] }
 0xdef   :  { %4568 = vst [vmem:[#allocation40_spill] sm:$0xff] %v3621_v61  ;;  %1407 = vmatpush.msrb.mxu0 %v3621_v61  ;;  %1501 = vmatpush.msra.mxu1 %v3664_v17  ;;  %v3725_v61 = vld [vmem:[#allocation6 + $0x1e0] sm:$0xff] }
 0xdf0   :  { %v1456_v13 = vmul.f32 1.442695, %v1455_v58  ;;  %v3669_v58 = vld [vmem:[%s4457_s24 + $0xf0] sm:$0xff]  ;;  %4577 = vst [vmem:[#allocation19_spill] sm:$0xff] %v3725_v61 }
 0xdf1   :  { %1408 = vmatpush.msrb.mxu0 %v3627_v3  ;;  %1502 = vmatpush.msra.mxu1 %v3669_v58  ;;  %v3721_v3 = vld [vmem:[#allocation6 + $0x1f0] sm:$0xff] }
 0xdf2   :  { %2392 = vpow2.f32 %v1456_v13  ;;  %v3675_v13 = vld [vmem:[%s4457_s24 + $0xe8] sm:$0xff]  ;;  %1548 = vmatpush.msra.mxu2 %v3721_v3 }
 0xdf3   :  { %1503 = vmatpush.msra.mxu1 %v3675_v13 }
 0xdf4   :  { %1549 = vmatpush.msra.mxu2 %v3725_v61  ;;  %v3790_v61 = vld [vmem:[#allocation6 + $0x148] sm:$0xff] }
 0xdf5   :  { %4597 = vst [vmem:[#allocation54_spill] sm:$0xff] %v3790_v61 }
 0xdf8   :  { %v2393_v9 = vpop.eup %2392 }
 0xdf9   :  { %v1458_v29 = vsel %vm417_vm5, %v2393_v9, 0.0 }
 0xdfa   :  { %1459 = vadd.xlane.f32.xlu2 %v1458_v29  ;;  %v3681_v29 = vld [vmem:[%s4457_s24 + $0xe0] sm:$0xff] }
 0xdfb   :  { %1504 = vmatpush.msra.mxu1 %v3681_v29 }
 0xe07   :  { %v1369_v6 = vpop.xlane.xlu2 %1368 }
 0xe08   :  { %2394 = vrcp.f32 %v1369_v6 }
 0xe0e   :  { %v2395_v47 = vpop.eup %2394 }
 0xe0f   :  { %v1371_v21 = vmul.f32 %v2395_v47, %v2391_v12 }
 0xe11   :  { %2309 = vmatmul.msk.f32.vlgmr.msra.gmra.mxu0 %vm417_vm5, %v1371_v21 }
 0xe12   :  { %1464 = vrot.lane.b32.xlu2 %v1331_v19, %s2522_s29  ;;  %v3633_v19 = vld [vmem:[%s4457_s24 + $0xa0] sm:$0xff] }
 0xe13   :  { %4570 = vst [vmem:[#allocation44_spill] sm:$0xff] %v3633_v19  ;;  %1409 = vmatpush.msrb.mxu0 %v3633_v19  ;;  %v1095_v19 = vadd.f32 %v3600_v15, %v3509_v7  ;;  %v3737_v7 = vld [vmem:[#allocation6 + $0x1c0] sm:$0xff]  ;;  %v3739_v15 = vld [vmem:[#allocation6 + $0x1c8] sm:$0xff] }
 0xe14   :  { %4581 = vst [vmem:[#allocation23_spill] sm:$0xff] %v3737_v7 }
 0xe15   :  { %1410 = vmatpush.msrb.mxu0 %v3639_v22  ;;  %4582 = vst [vmem:[#allocation24_spill] sm:$0xff] %v3739_v15 }
 0xe17   :  { %1411 = vmatpush.msrb.mxu0 %v3645_v0 }
 0xe19   :  { %1412 = vmatpush.msrb.mxu0 %v3651_v10 }
 0xe1b   :  { %1413 = vmatpush.msrb.mxu0 %v3658_v36 }
 0xe6d   :  { %v1460_v12 = vpop.xlane.xlu2 %1459 }
 0xe6e   :  { %2396 = vrcp.f32 %v1460_v12  ;;  %v3687_v12 = vld [vmem:[%s4457_s24 + $0xd8] sm:$0xff] }
 0xe6f   :  { %1505 = vmatpush.msra.mxu1 %v3687_v12 }
 0xe71   :  { %1506 = vmatpush.msra.mxu1 %v3694_v56 }
 0xe74   :  { %v2397_v6 = vpop.eup %2396 }
 0xe75   :  { %v1462_v47 = vmul.f32 %v2397_v6, %v2393_v9  ;;  %v1465_v21 = vpop.permute.xlu2 %1464  ;;  %v3700_v9 = vld [vmem:[%s4457_s24 + $0xc8] sm:$0xff] }
 0xe76   :  { %1485 = vmatpush.msrb.mxu3 %v1465_v21  ;;  %1507 = vmatpush.msra.mxu1 %v3700_v9 }
 0xe77   :  { %2313 = vmatmul.msk.f32.vlgmr.msrb.gmra.mxu3 %vm417_vm5, %v1462_v47  ;;  %v3708_v47 = vld [vmem:[%s4457_s24 + $0xc0] sm:$0xff] }
 0xe78   :  { %1508 = vmatpush.msra.mxu1 %v3708_v47 }
 0xe8e   :  { %v1392_v6 = vpop.f32.mrf.mxu0 }
 0xe8f   :  { %2310 = vmatmul.msk.f32.vlgmr.msrb.gmra.mxu0 %vm387_vm4, %v1392_v6 }
 0xefa   :  { %v1487_v21 = vpop.f32.mrf.mxu3 }
 0xefb   :  { %2314 = vmatmul.msk.f32.vlgmr.msra.gmra.mxu1 %vm387_vm4, %v1487_v21  ;;  %v3723_v21 = vld [vmem:[#allocation6 + $0x1f8] sm:$0xff] }
 0xefc   :  { %4576 = vst [vmem:[#allocation18_spill] sm:$0xff] %v3723_v21  ;;  %1568 = vmatpush.msra.mxu3 %v3723_v21  ;;  %v3751_v21 = vld [vmem:[#allocation6 + $0x1a8] sm:$0xff] }
 0xefd   :  { %4586 = vst [vmem:[#allocation36_spill] sm:$0xff] %v3751_v21 }
 0xf0c   :  { %v1415_v36 = vpop.f32.mrf.mxu0 }
 0xf0d   :  { %v1421_v10 = vadd.f32 %v3715_v60, %v1415_v36  ;;  %v3729_v36 = vld [vmem:[#allocation6 + $0x1e8] sm:$0xff]  ;;  %v3749_v60 = vld [vmem:[#allocation6 + $0x1a0] sm:$0xff] }
 0xf0e   :  { %4578 = vst [vmem:[#allocation20_spill] sm:$0xff] %v3729_v36  ;;  %1569 = vmatpush.msra.mxu3 %v3729_v36  ;;  %v3755_v36 = vld [vmem:[#allocation6 + $0x190] sm:$0xff] }
 0xf0f   :  { %4585 = vst [vmem:[#allocation35_spill] sm:$0xff] %v3749_v60 }
 0xf10   :  { %4587 = vst [vmem:[#allocation37_spill] sm:$0xff] %v3755_v36 }
 0xf78   :  { %v1510_v0 = vpop.f32.mrf.mxu1 }
 0xf79   :  { %v1513_v6 = vadd.f32 %v1510_v0, %v1421_v10  ;;  %v3731_v0 = vld [vmem:[#allocation6 + $0x1d0] sm:$0xff] }
 0xf7a   :  { %4579 = vst [vmem:[#allocation21_spill] sm:$0xff] %v3731_v0  ;;  %1550 = vmatpush.msra.mxu2 %v3731_v0  ;;  %v3743_v10 = vld [vmem:[#allocation6 + $0x1b0] sm:$0xff]  ;;  %v3782_v0 = vld [vmem:[#allocation6 + $0x158] sm:$0xff] }
 0xf7b   :  { %v1514_v22 = vadd.f32 %v1513_v6, %v3525_v51  ;;  %v3733_v51 = vld [vmem:[#allocation6 + $0x1d8] sm:$0xff]  ;;  %4583 = vst [vmem:[#allocation59_spill] sm:$0xff] %v3743_v10 }
 0xf7c   :  { %4580 = vst [vmem:[#allocation22_spill] sm:$0xff] %v3733_v51  ;;  %1570 = vmatpush.msra.mxu3 %v3733_v51  ;;  %v3745_v6 = vld [vmem:[#allocation6 + $0x1b8] sm:$0xff]  ;;  %1551 = vmatpush.msra.mxu2 %v3737_v7  ;;  %v3761_v51 = vld [vmem:[#allocation6 + $0x180] sm:$0xff]  ;;  %v3763_v7 = vld [vmem:[#allocation6 + $0x188] sm:$0xff] }
 0xf7d   :  { %1515 = vadd.xlane.f32.xlu0 %v1514_v22  ;;  %4584 = vst [vmem:[#allocation34_spill] sm:$0xff] %v3745_v6 }
 0xf7e   :  { %1571 = vmatpush.msra.mxu3 %v3739_v15  ;;  %1552 = vmatpush.msra.mxu2 %v3743_v10  ;;  %4589 = vst [vmem:[#allocation41_spill] sm:$0xff] %v3761_v51  ;;  %v3767_v15 = vld [vmem:[#allocation6 + $0x170] sm:$0xff]  ;;  %v3769_v10 = vld [vmem:[#allocation6 + $0x178] sm:$0xff] }
 0xf7f   :  { %4590 = vst [vmem:[#allocation43_spill] sm:$0xff] %v3763_v7 }
 0xf80   :  { %1572 = vmatpush.msra.mxu3 %v3745_v6  ;;  %1553 = vmatpush.msra.mxu2 %v3749_v60  ;;  %4591 = vst [vmem:[#allocation45_spill] sm:$0xff] %v3767_v15  ;;  %v3773_v6 = vld [vmem:[#allocation6 + $0x160] sm:$0xff]  ;;  %v3775_v60 = vld [vmem:[#allocation6 + $0x168] sm:$0xff] }
 0xf81   :  { %4592 = vst [vmem:[#allocation47_spill] sm:$0xff] %v3769_v10 }
 0xf82   :  { %1573 = vmatpush.msra.mxu3 %v3751_v21  ;;  %1554 = vmatpush.msra.mxu2 %v3755_v36  ;;  %4593 = vst [vmem:[#allocation48_spill] sm:$0xff] %v3773_v6 }
 0xf83   :  { %4594 = vst [vmem:[#allocation50_spill] sm:$0xff] %v3775_v60 }
 0xf84   :  { %1574 = vmatpush.msra.mxu3 %v3757_v23  ;;  %1555 = vmatpush.msra.mxu2 %v3761_v51  ;;  %v3780_v23 = vld [vmem:[#allocation6 + $0x150] sm:$0xff]  ;;  %4596 = vst [vmem:[#allocation53_spill] sm:$0xff] %v3782_v0  ;;  %v3788_v51 = vld [vmem:[#allocation6 + $0x140] sm:$0xff] }
 0xf85   :  { %1096 = vadd.xlane.f32.xlu0 %v1095_v19  ;;  %4595 = vst [vmem:[#allocation51_spill] sm:$0xff] %v3780_v23 }
 0xf86   :  { %1575 = vmatpush.msra.mxu3 %v3763_v7  ;;  %1556 = vmatpush.msra.mxu2 %v3767_v15  ;;  %v3798_v15 = vld [vmem:[#allocation6 + $0x138] sm:$0xff] }
 0xf87   :  { %4598 = vst [vmem:[#allocation55_spill] sm:$0xff] %v3798_v15 }
 0xf88   :  { %1576 = vmatpush.msra.mxu3 %v3769_v10  ;;  %1557 = vmatpush.msra.mxu2 %v3773_v6  ;;  %v3796_v10 = vld [vmem:[#allocation6 + $0x130] sm:$0xff]  ;;  %v3811_v6 = vld [vmem:[#allocation6 + $0x128] sm:$0xff] }
 0xf89   :  { %4599 = vst [vmem:[#allocation56_spill] sm:$0xff] %v3811_v6 }
 0xf8a   :  { %1577 = vmatpush.msra.mxu3 %v3775_v60  ;;  %1558 = vmatpush.msra.mxu2 %v3780_v23  ;;  %v3809_v23 = vld [vmem:[#allocation6 + $0x120] sm:$0xff] }
 0xf8c   :  { %1578 = vmatpush.msra.mxu3 %v3782_v0  ;;  %1559 = vmatpush.msra.mxu2 %v3788_v51 }
 0xf8e   :  { %1579 = vmatpush.msra.mxu3 %v3790_v61  ;;  %1560 = vmatpush.msra.mxu2 %v3796_v10  ;;  %v3817_v61 = vld [vmem:[#allocation6 + $0x118] sm:$0xff] }
 0xf8f   :  { %4600 = vst [vmem:[#allocation33_spill] sm:$0xff] %v3817_v61 }
 0xf90   :  { %1580 = vmatpush.msra.mxu3 %v3798_v15  ;;  %1561 = vmatpush.msra.mxu2 %v3809_v23 }
 0xf92   :  { %1581 = vmatpush.msra.mxu3 %v3811_v6 }
 0xf94   :  { %1582 = vmatpush.msra.mxu3 %v3817_v61 }
 0xff0   :  { %v1516_v21 = vpop.xlane.xlu0 %1515 }
 0xff1   :  { %v1517_v36 = vmul.f32 %v1516_v21, %v4552_v63 }
 0xff3   :  { %v3786_v7 = vsub.f32 %v1514_v22, %v1517_v36 }
 0xff5   :  { %v1519_v21 = vmul.f32 %v3786_v7, %v3786_v7 }
 0xff7   :  { %1520 = vadd.xlane.f32.xlu1 %v1519_v21  ;;  %v3815_v21 = vld [vmem:[#allocation6 + $0x110] sm:$0xff] }
 0xff8   :  { %v1097_v22 = vpop.xlane.xlu0 %1096  ;;  %1562 = vmatpush.msra.mxu2 %v3815_v21 }
 0xff9   :  { %v1098_v36 = vmul.f32 %v1097_v22, %v4552_v63  ;;  %v3823_v22 = vld [vmem:[#allocation6 + $0x108] sm:$0xff] }
 0xffa   :  { %4601 = vst [vmem:[#allocation57_spill] sm:$0xff] %v3823_v22  ;;  %1583 = vmatpush.msra.mxu3 %v3823_v22 }
 0xffb   :  { %v3805_v0 = vsub.f32 %v1095_v19, %v1098_v36  ;;  %v3821_v19 = vld [vmem:[#allocation6 + $0x100] sm:$0xff]  ;;  %v3917_v36 = vld [vmem:[#allocation8 + $0x1b8] sm:$0xff] }
 0xffc   :  { %1563 = vmatpush.msra.mxu2 %v3821_v19  ;;  %1698 = vmatpush.msrb.mxu3 %v3409_v1 }
 0xffd   :  { %v1100_v60 = vmul.f32 %v3805_v0, %v3805_v0 }
 0xffe   :  { %1678 = vmatpush.msrb.mxu2 %v3407_v34  ;;  %1699 = vmatpush.msrb.mxu3 %v3415_v46  ;;  %v3860_v46 = vld [vmem:[#allocation8 + $0x178] sm:$0xff] }
 0xfff   :  { %1101 = vadd.xlane.f32.xlu2 %v1100_v60  ;;  %1609 = vmatpush.msra.mxu0 %v3860_v46  ;;  %v3915_v60 = vld [vmem:[#allocation8 + $0x130] sm:$0xff] }
0x1000   :  { %1679 = vmatpush.msrb.mxu2 %v3413_v14  ;;  %1700 = vmatpush.msrb.mxu3 %v3421_v52  ;;  %v3865_v52 = vld [vmem:[#allocation8 + $0x168] sm:$0xff] }
0x1002   :  { %1680 = vmatpush.msrb.mxu2 %v3419_v49  ;;  %1701 = vmatpush.msrb.mxu3 %v3427_v41  ;;  %v3862_v49 = vld [vmem:[#allocation8 + $0x170] sm:$0xff] }
0x1003   :  { %v3869_v41 = vld [vmem:[#allocation8 + $0x1f0] sm:$0xff]  ;;  %1610 = vmatpush.msra.mxu0 %v3862_v49 }
0x1004   :  { %1681 = vmatpush.msrb.mxu2 %v3425_v55  ;;  %1702 = vmatpush.msrb.mxu3 %v3433_v11  ;;  %v3867_v55 = vld [vmem:[#allocation8 + $0x1f8] sm:$0xff] }
0x1005   :  { %1629 = vmatpush.msrb.mxu1 %v3867_v55  ;;  %1611 = vmatpush.msra.mxu0 %v3865_v52 }
0x1006   :  { %1682 = vmatpush.msrb.mxu2 %v3431_v28  ;;  %1703 = vmatpush.msrb.mxu3 %v3439_v57  ;;  %v3876_v57 = vld [vmem:[#allocation8 + $0x1e8] sm:$0xff] }
0x1007   :  { %1630 = vmatpush.msrb.mxu1 %v3869_v41 }
0x1008   :  { %1683 = vmatpush.msrb.mxu2 %v3437_v53  ;;  %1704 = vmatpush.msrb.mxu3 %v3445_v32  ;;  %v3874_v53 = vld [vmem:[#allocation8 + $0x160] sm:$0xff] }
0x1009   :  { %1612 = vmatpush.msra.mxu0 %v3874_v53  ;;  %1631 = vmatpush.msrb.mxu1 %v3876_v57 }
0x100a   :  { %1684 = vmatpush.msrb.mxu2 %v3443_v18  ;;  %1705 = vmatpush.msrb.mxu3 %v3452_v2  ;;  %v3882_v2 = vld [vmem:[#allocation8 + $0x1e0] sm:$0xff] }
0x100b   :  { %1632 = vmatpush.msrb.mxu1 %v3882_v2 }
0x100c   :  { %1685 = vmatpush.msrb.mxu2 %v3450_v43  ;;  %1706 = vmatpush.msrb.mxu3 %v3458_v62  ;;  %v3880_v43 = vld [vmem:[#allocation8 + $0x158] sm:$0xff]  ;;  %v3886_v62 = vld [vmem:[#allocation8 + $0x150] sm:$0xff] }
0x100d   :  { %1613 = vmatpush.msra.mxu0 %v3880_v43 }
0x100e   :  { %1686 = vmatpush.msrb.mxu2 %v3456_v25  ;;  %1707 = vmatpush.msrb.mxu3 %v3464_v24 }
0x100f   :  { %1614 = vmatpush.msra.mxu0 %v3886_v62 }
0x1010   :  { %1687 = vmatpush.msrb.mxu2 %v3462_v30  ;;  %1708 = vmatpush.msrb.mxu3 %v3468_v27  ;;  %v3888_v30 = vld [vmem:[#allocation8 + $0x1d8] sm:$0xff]  ;;  %v3894_v27 = vld [vmem:[#allocation8 + $0x1d0] sm:$0xff] }
0x1011   :  { %1633 = vmatpush.msrb.mxu1 %v3888_v30 }
0x1012   :  { %1688 = vmatpush.msrb.mxu2 %v3466_v26  ;;  %1709 = vmatpush.msrb.mxu3 %v3474_v38  ;;  %v3892_v26 = vld [vmem:[#allocation8 + $0x148] sm:$0xff]  ;;  %v3898_v38 = vld [vmem:[#allocation8 + $0x140] sm:$0xff] }
0x1013   :  { %1615 = vmatpush.msra.mxu0 %v3892_v26  ;;  %1634 = vmatpush.msrb.mxu1 %v3894_v27 }
0x1014   :  { %1689 = vmatpush.msrb.mxu2 %v3472_v33  ;;  %1710 = vmatpush.msrb.mxu3 %v3482_v48 }
0x1015   :  { %1616 = vmatpush.msra.mxu0 %v3898_v38 }
0x1016   :  { %1690 = vmatpush.msrb.mxu2 %v3480_v44  ;;  %1711 = vmatpush.msrb.mxu3 %v3486_v59  ;;  %v3900_v44 = vld [vmem:[#allocation8 + $0x1c8] sm:$0xff]  ;;  %v3904_v59 = vld [vmem:[#allocation8 + $0x138] sm:$0xff] }
0x1017   :  { %1635 = vmatpush.msrb.mxu1 %v3900_v44  ;;  %1617 = vmatpush.msra.mxu0 %v3904_v59 }
0x1018   :  { %1691 = vmatpush.msrb.mxu2 %v3484_v54  ;;  %1712 = vmatpush.msrb.mxu3 %v3492_v16 }
0x1019   :  { %1618 = vmatpush.msra.mxu0 %v3915_v60 }
0x101a   :  { %1692 = vmatpush.msrb.mxu2 %v3490_v42  ;;  %1713 = vmatpush.msrb.mxu3 %v3499_v35  ;;  %v3906_v42 = vld [vmem:[#allocation8 + $0x1c0] sm:$0xff]  ;;  %v3911_v35 = vld [vmem:[%s4304_s8 + $0x1] ss:$0 sm:$0xff] }
0x101b   :  { %4602 = vst [vmem:[#allocation58_spill] sm:$0xff] %v3911_v35  ;;  %1636 = vmatpush.msrb.mxu1 %v3906_v42 }
0x101c   :  { %1693 = vmatpush.msrb.mxu2 %v3497_v4 }
0x101d   :  { %1637 = vmatpush.msrb.mxu1 %v3917_v36 }
0x106a   :  { %v1521_v34 = vpop.xlane.xlu1 %1520 }
0x106b   :  { %v1522_v1 = vmul.f32 %v1521_v34, %v4552_v63 }
0x106d   :  { %v1523_v14 = vadd.f32 1e-07, %v1522_v1 }
0x106f   :  { %2398 = vrsqrt.f32 %v1523_v14  ;;  %vm1530_vm3 = vweird.f32 %v1523_v14 }
0x1072   :  { %v1102_v28 = vpop.xlane.xlu2 %1101 }
0x1073   :  { %v1103_v11 = vmul.f32 %v1102_v28, %v4552_v63  ;;  %v3925_v28 = vld [vmem:[%s4305_s9 + $0x1] ss:$0 sm:$0xff] }
0x1074   :  { %4603 = vst [vmem:[#allocation16_spill] sm:$0xff] %v3925_v28 }
0x1075   :  { %v2399_v18 = vpop.eup %2398  ;;  %v1104_v32 = vadd.f32 1e-07, %v1103_v11  ;;  %v3927_v11 = vld [vmem:[#allocation8 + $0x128] sm:$0xff] }
0x1076   :  { %v1525_v25 = vmul.f32 %v2399_v18, %v1523_v14  ;;  %vm1531_vm2 = vweird.f32 %v2399_v18  ;;  %1619 = vmatpush.msra.mxu0 %v3927_v11 }
0x1077   :  { %2400 = vrsqrt.f32 %v1104_v32  ;;  %vm1532_vm6 = vmor %vm1530_vm3, %vm1531_vm2  ;;  %vm1111_vm8 = vweird.f32 %v1104_v32  ;;  %vm2182_vm2 = vcmask 0  }
0x1078   :  { %v1526_v24 = vmul.f32 %v2399_v18, %v1525_v25  ;;  %v3929_v25 = vld [vmem:[#allocation8 + $0x1b0] sm:$0xff] }
0x1079   :  { %1638 = vmatpush.msrb.mxu1 %v3929_v25 }
0x107a   :  { %v1527_v33 = vmul.f32 0.5, %v1526_v24 }
0x107c   :  { %v1528_v48 = vsub.f32 1.5, %v1527_v33  ;;  %v3934_v33 = vld [vmem:[#allocation8 + $0x120] sm:$0xff] }
0x107d   :  { %v2401_v54 = vpop.eup %2400  ;;  %4604 = vst [vmem:[#allocation60_spill] sm:$0xff] %v3934_v33  ;;  %1620 = vmatpush.msra.mxu0 %v3934_v33 }
0x107e   :  { %v1529_v16 = vmul.f32 %v2399_v18, %v1528_v48  ;;  %v1106_v4 = vmul.f32 %v2401_v54, %v1104_v32  ;;  %vm1112_vm7 = vweird.f32 %v2401_v54 }
0x107f   :  { %vm1113_vm9 = vmor %vm1111_vm8, %vm1112_vm7 }
0x1080   :  { %v1533_v34 = vsel %vm1532_vm6, %v2399_v18, %v1529_v16  ;;  %v1107_v1 = vmul.f32 %v2401_v54, %v1106_v4  ;;  %v3941_v16 = vld [vmem:[#allocation8 + $0x118] sm:$0xff] }
0x1081   :  { %v1534_v14 = vmul.f32 %v1533_v34, %v3786_v7  ;;  %4606 = vst [vmem:[#allocation62_spill] sm:$0xff] %v3941_v16  ;;  %v3946_v34 = vld [vmem:[#allocation8 + $0x110] sm:$0xff]  ;;  %1621 = vmatpush.msra.mxu0 %v3941_v16 }
0x1082   :  { %v1108_v24 = vmul.f32 0.5, %v1107_v1  ;;  %4607 = vst [vmem:[#allocation63_spill] sm:$0xff] %v3946_v34 }
0x1083   :  { %v1538_v18 = vmul.f32 %v3911_v35, %v1534_v14  ;;  %1622 = vmatpush.msra.mxu0 %v3946_v34  ;;  %v4621_v34 = vperm.slane %v3584_v31, 1 }
0x1084   :  { %v1109_v48 = vsub.f32 1.5, %v1108_v24  ;;  %v3950_v24 = vld [vmem:[#allocation8 + $0x108] sm:$0xff] }
0x1085   :  { %v3939_v7 = vadd.f32 %v3925_v28, %v1538_v18  ;;  %4608 = vst [vmem:[#allocation64_spill] sm:$0xff] %v3950_v24  ;;  %1623 = vmatpush.msra.mxu0 %v3950_v24  ;;  %v4616_v28 = vld [vmem:[#allocation29_spill] sm:$0xff] }
0x1086   :  { %v1110_v4 = vmul.f32 %v2401_v54, %v1109_v48  ;;  %v3962_v48 = vld [vmem:[#allocation8 + $0x1a8] sm:$0xff] }
0x1087   :  { %4605 = vst [vmem:[#allocation61_spill] sm:$0xff] %v3939_v7  ;;  %1564 = vmatmul.f32.vlgmr.msra.gmra.mxu2 %v3939_v7  ;;  %1584 = vmatmul.f32.vlgmr.msra.gmra.mxu3 %v3939_v7 }
0x1088   :  { %v1114_v1 = vsel %vm1113_vm9, %v2401_v54, %v1110_v4  ;;  %v3960_v54 = vld [vmem:[#allocation8 + $0x100] sm:$0xff]  ;;  %1639 = vmatpush.msrb.mxu1 %v3962_v48  ;;  %v3978_v4 = vld [vmem:[#allocation8 + $0x188] sm:$0xff] }
0x1089   :  { %v1115_v14 = vmul.f32 %v1114_v1, %v3805_v0  ;;  %4609 = vst [vmem:[#allocation65_spill] sm:$0xff] %v3960_v54  ;;  %1624 = vmatpush.msra.mxu0 %v3960_v54  ;;  %v3975_v0 = vld [vmem:[#allocation8 + $0x190] sm:$0xff] }
0x108a   :  { %v4612_v1 = vld [vmem:[#allocation25_spill] sm:$0xff] }
0x108b   :  { %v1116_v32 = vmul.f32 %v3514_v40, %v1115_v14  ;;  %1718 = vmatpush.msrb.mxu0 %v3529_v20  ;;  %v3967_v40 = vld [vmem:[#allocation8 + $0x1a0] sm:$0xff]  ;;  %v4613_v14 = vld [vmem:[#allocation26_spill] sm:$0xff] }
0x108c   :  { %1640 = vmatpush.msrb.mxu1 %v3967_v40  ;;  %v3982_v20 = vld [vmem:[#allocation8 + $0x180] sm:$0xff] }
0x108d   :  { %v3956_v18 = vadd.f32 %v3522_v37, %v1116_v32  ;;  %1719 = vmatpush.msrb.mxu0 %v3532_v5  ;;  %v3971_v37 = vld [vmem:[#allocation8 + $0x198] sm:$0xff]  ;;  %v4610_v5 = vld [vmem:[#allocation13_spill] sm:$0xff]  ;;  %v4614_v32 = vld [vmem:[#allocation27_spill] sm:$0xff] }
0x108e   :  { %1641 = vmatpush.msrb.mxu1 %v3971_v37 }
0x108f   :  { %1694 = vmatmul.f32.vlgmr.msrb.gmra.mxu2 %v3956_v18  ;;  %1714 = vmatmul.f32.vlgmr.msrb.gmra.mxu3 %v3956_v18 }
0x1090   :  { %1720 = vmatpush.msrb.mxu0 %v3535_v8  ;;  %1642 = vmatpush.msrb.mxu1 %v3975_v0  ;;  %v4611_v8 = vld [vmem:[#allocation14_spill] sm:$0xff] }
0x1092   :  { %1721 = vmatpush.msrb.mxu0 %v3538_v39  ;;  %1643 = vmatpush.msrb.mxu1 %v3978_v4  ;;  %v4615_v39 = vld [vmem:[#allocation28_spill] sm:$0xff] }
0x1094   :  { %1722 = vmatpush.msrb.mxu0 %v3541_v45  ;;  %1644 = vmatpush.msrb.mxu1 %v3982_v20  ;;  %v3996_v45 = vld [vmem:[%s4307_s11 + $0x2] sm:$0x3] }
0x1096   :  { %1723 = vmatpush.msrb.mxu0 %v3543_v50  ;;  %v4617_v50 = vld [vmem:[#allocation30_spill] sm:$0xff] }
0x1098   :  { %1724 = vmatpush.msrb.mxu0 %v4610_v5  ;;  %v1544_v5 = vperm.slane %v3996_v45, 0 }
0x109a   :  { %1725 = vmatpush.msrb.mxu0 %v4611_v8  ;;  %v4437_v8 = vperm.slane %v3996_v45, 1 }
0x109c   :  { %1726 = vmatpush.msrb.mxu0 %v4612_v1  ;;  %v4618_v1 = vld [vmem:[#allocation31_spill] sm:$0xff] }
0x109e   :  { %1727 = vmatpush.msrb.mxu0 %v4613_v14 }
0x10a0   :  { %1728 = vmatpush.msrb.mxu0 %v4614_v32  ;;  %v4619_v32 = vld [vmem:[#allocation32_spill] sm:$0xff] }
0x10a2   :  { %1729 = vmatpush.msrb.mxu0 %v4615_v39 }
0x10a4   :  { %1730 = vmatpush.msrb.mxu0 %v4616_v28 }
0x10a6   :  { %1731 = vmatpush.msrb.mxu0 %v4617_v50 }
0x10a8   :  { %1732 = vmatpush.msrb.mxu0 %v4618_v1  ;;  %v4620_v1 = vperm.slane %v3584_v31, 0 }
0x10aa   :  { %1733 = vmatpush.msrb.mxu0 %v4619_v32 }
0x110a   :  { %v1565_v14 = vpop.f32.mrf.mxu2  ;;  %v1585_v35 = vpop.f32.mrf.mxu3 }
0x110b   :  { %v1566_v39 = vadd.f32 %v1565_v14, %v1544_v5  ;;  %v1586_v63 = vadd.f32 %v1585_v35, %v4437_v8 }
0x110d   :  { %v1590_v7 = vmul.f32 0.044715, %v1566_v39  ;;  %v1591_v28 = vmul.f32 0.044715, %v1586_v63 }
0x110f   :  { %v1592_v22 = vmul.f32 %v1590_v7, %v1566_v39  ;;  %v1593_v50 = vmul.f32 %v1591_v28, %v1586_v63  ;;  %v1588_v28 = vmul.f32 0.5, %v1566_v39 }
0x1111   :  { %v1594_v61 = vmul.f32 %v1592_v22, %v1566_v39  ;;  %v1595_v6 = vmul.f32 %v1593_v50, %v1586_v63 }
0x1112   :  { %v1695_v15 = vpop.f32.mrf.mxu2  ;;  %v1715_v54 = vpop.f32.mrf.mxu3 }
0x1113   :  { %v1696_v24 = vadd.f32 %v1695_v15, %v4620_v1  ;;  %v1716_v32 = vadd.f32 %v1715_v54, %v4621_v34  ;;  %v1596_v16 = vadd.f32 %v1594_v61, %v1566_v39  ;;  %v1597_v33 = vadd.f32 %v1595_v6, %v1586_v63  ;;  %v4622_v61 = vld [vmem:[#allocation19_spill] sm:$0xff]  ;;  %v4630_v6 = vld [vmem:[#allocation48_spill] sm:$0xff]  ;;  %v4639_v54 = vld [vmem:[#allocation49_spill] sm:$0xff] }
0x1114   :  { %v1589_v15 = vmul.f32 0.5, %v1586_v63 }
0x1115   :  { %1826 = vrot.lane.b32.xlu0 %v1716_v32, %s2522_s29  ;;  %2315 = vmatpush.xpose.msk.msra.mxu1 %vm387_vm4, %v1716_v32  ;;  %v1598_v35 = vmul.f32 0.7978846, %v1596_v16  ;;  %v1599_v14 = vmul.f32 0.7978846, %v1597_v33  ;;  %v4633_v33 = vld [vmem:[#allocation12_spill] sm:$0xff] }
0x1116   :  { %1824 = vrot.lane.b32.xlu1 %v1696_v24, %s2522_s29 }
0x1117   :  { %2402 = vtanh.f32 %v1598_v35 }
0x1118   :  { %2404 = vtanh.f32 %v1599_v14 }
0x111d   :  { %v2403_v22 = vpop.eup %2402 }
0x111e   :  { %v2405_v7 = vpop.eup %2404  ;;  %v1602_v50 = vadd.f32 1.0, %v2403_v22 }
0x111f   :  { %v1603_v1 = vadd.f32 1.0, %v2405_v7 }
0x1120   :  { %v1604_v8 = vmul.f32 %v1602_v50, %v1588_v28 }
0x1121   :  { %v1605_v34 = vmul.f32 %v1603_v1, %v1589_v15 }
0x1122   :  { %1625 = vmatmul.f32.vlgmr.msra.gmra.mxu0 %v1604_v8 }
0x1123   :  { %1645 = vmatmul.f32.vlgmr.msrb.gmra.mxu1 %v1605_v34  ;;  %1903 = vmatpush.msra.mxu0 %v3664_v17  ;;  %v4623_v17 = vld [vmem:[#allocation21_spill] sm:$0xff] }
0x1125   :  { %1904 = vmatpush.msra.mxu0 %v3669_v58  ;;  %v4624_v58 = vld [vmem:[#allocation23_spill] sm:$0xff] }
0x1127   :  { %1905 = vmatpush.msra.mxu0 %v3675_v13  ;;  %v4625_v13 = vld [vmem:[#allocation59_spill] sm:$0xff] }
0x1129   :  { %1906 = vmatpush.msra.mxu0 %v3681_v29  ;;  %v4626_v29 = vld [vmem:[#allocation35_spill] sm:$0xff] }
0x112a   :  { %1734 = vmatmul.f32.vlgmr.msrb.gmra.mxu0 %v3956_v18 }
0x112b   :  { %2316 = vmatmul.msk.f32.vlgmr.msra.gmra.mxu1 %vm387_vm4, %v1696_v24  ;;  %1907 = vmatpush.msra.mxu0 %v3687_v12  ;;  %v4627_v12 = vld [vmem:[#allocation37_spill] sm:$0xff] }
0x112d   :  { %1908 = vmatpush.msra.mxu0 %v3694_v56 }
0x112f   :  { %1909 = vmatpush.msra.mxu0 %v3700_v9  ;;  %v4628_v9 = vld [vmem:[#allocation41_spill] sm:$0xff] }
0x1131   :  { %1910 = vmatpush.msra.mxu0 %v3708_v47  ;;  %v4629_v47 = vld [vmem:[#allocation45_spill] sm:$0xff] }
0x1133   :  { %2017 = vmatpush.msrb.mxu0 %v3867_v55  ;;  %v4631_v55 = vld [vmem:[#allocation51_spill] sm:$0xff] }
0x1135   :  { %2018 = vmatpush.msrb.mxu0 %v3869_v41 }
0x1137   :  { %2019 = vmatpush.msrb.mxu0 %v3876_v57 }
0x1139   :  { %2020 = vmatpush.msrb.mxu0 %v3882_v2 }
0x113b   :  { %2021 = vmatpush.msrb.mxu0 %v3888_v30 }
0x113d   :  { %2022 = vmatpush.msrb.mxu0 %v3894_v27 }
0x113f   :  { %2023 = vmatpush.msrb.mxu0 %v3900_v44  ;;  %v4632_v44 = vperm.slane %v3584_v31, 2  ;;  %v4638_v31 = vld [vmem:[#allocation46_spill] sm:$0xff] }
0x1141   :  { %2024 = vmatpush.msrb.mxu0 %v3906_v42 }
0x1143   :  { %2025 = vmatpush.msrb.mxu0 %v3917_v36 }
0x1145   :  { %2026 = vmatpush.msrb.mxu0 %v3929_v25 }
0x1147   :  { %2027 = vmatpush.msrb.mxu0 %v3962_v48  ;;  %v4641_v48 = vld [vmem:[#allocation15_spill] sm:$0xff] }
0x1149   :  { %2028 = vmatpush.msrb.mxu0 %v3967_v40 }
0x114b   :  { %2029 = vmatpush.msrb.mxu0 %v3971_v37 }
0x114d   :  { %2030 = vmatpush.msrb.mxu0 %v3975_v0 }
0x114f   :  { %2031 = vmatpush.msrb.mxu0 %v3978_v4 }
0x1151   :  { %2032 = vmatpush.msrb.mxu0 %v3982_v20 }
0x1187   :  { %v1827_v63 = vpop.permute.xlu0 %1826 }
0x1188   :  { %2319 = vmatpush.xpose.msk.msra.mxu2 %vm387_vm4, %v1827_v63  ;;  %v1825_v56 = vpop.permute.xlu1 %1824 }
0x118b   :  { %2320 = vmatmul.msk.f32.vlgmr.msra.gmra.mxu2 %vm387_vm4, %v1825_v56  ;;  %v4650_v56 = vld [vmem:[#allocation24_spill] sm:$0xff] }
0x118c   :  { %1939 = vmatpush.msrb.mxu2 %v3721_v3  ;;  %v4055_v3 = vld [vmem:[%s4309_s13 + $0x1] ss:$0 sm:$0xff] }
0x118e   :  { %1940 = vmatpush.msrb.mxu2 %v4622_v61  ;;  %v4651_v61 = vld [vmem:[#allocation34_spill] sm:$0xff] }
0x1190   :  { %1941 = vmatpush.msrb.mxu2 %v4623_v17  ;;  %v4652_v17 = vld [vmem:[#allocation36_spill] sm:$0xff] }
0x1192   :  { %1942 = vmatpush.msrb.mxu2 %v4624_v58  ;;  %v4653_v58 = vld [vmem:[#allocation39_spill] sm:$0xff] }
0x1194   :  { %1943 = vmatpush.msrb.mxu2 %v4625_v13  ;;  %v4654_v13 = vld [vmem:[#allocation43_spill] sm:$0xff] }
0x1196   :  { %1944 = vmatpush.msrb.mxu2 %v4626_v29  ;;  %v4655_v29 = vld [vmem:[#allocation47_spill] sm:$0xff] }
0x1198   :  { %1945 = vmatpush.msrb.mxu2 %v4627_v12  ;;  %v4656_v12 = vld [vmem:[#allocation50_spill] sm:$0xff] }
0x119a   :  { %1946 = vmatpush.msrb.mxu2 %v4628_v9  ;;  %v4657_v9 = vld [vmem:[#allocation53_spill] sm:$0xff] }
0x119c   :  { %1947 = vmatpush.msrb.mxu2 %v4629_v47 }
0x119e   :  { %1948 = vmatpush.msrb.mxu2 %v4630_v6  ;;  %v4658_v6 = vld [vmem:[#allocation54_spill] sm:$0xff] }
0x119f   :  { %v1626_v41 = vpop.f32.mrf.mxu0 }
0x11a0   :  { %1949 = vmatpush.msrb.mxu2 %v4631_v55  ;;  %v1627_v57 = vadd.f32 %v4055_v3, %v1626_v41  ;;  %v1646_v2 = vpop.f32.mrf.mxu1  ;;  %v4659_v55 = vld [vmem:[#allocation55_spill] sm:$0xff]  ;;  %v4660_v41 = vld [vmem:[#allocation56_spill] sm:$0xff] }
0x11a2   :  { %1950 = vmatpush.msrb.mxu2 %v3788_v51  ;;  %v4061_v30 = vadd.f32 %v1646_v2, %v1627_v57  ;;  %v4634_v51 = vld [vmem:[#allocation38_spill] sm:$0xff]  ;;  %v4661_v57 = vld [vmem:[#allocation33_spill] sm:$0xff] }
0x11a3   :  { %v4662_v2 = vld [vmem:[#allocation57_spill] sm:$0xff] }
0x11a4   :  { %1951 = vmatpush.msrb.mxu2 %v3796_v10  ;;  %v4635_v10 = vld [vmem:[#allocation40_spill] sm:$0xff] }
0x11a6   :  { %1952 = vmatpush.msrb.mxu2 %v3809_v23  ;;  %v4636_v23 = vld [vmem:[#allocation42_spill] sm:$0xff] }
0x11a7   :  { %v1735_v27 = vpop.f32.mrf.mxu0 }
0x11a8   :  { %1953 = vmatpush.msrb.mxu2 %v3815_v21  ;;  %v1736_v42 = vadd.f32 %v1735_v27, %v4632_v44  ;;  %v1761_v36 = vpop.f32.mrf.mxu1  ;;  %v4637_v21 = vld [vmem:[#allocation44_spill] sm:$0xff] }
0x11a9   :  { %v1764_v25 = vmul.f32 0.125, %v1761_v36 }
0x11aa   :  { %1954 = vmatpush.msrb.mxu2 %v3821_v19  ;;  %1795 = vmatpush.msrb.mxu1 %v1736_v42  ;;  %v4640_v19 = vld [vmem:[#allocation52_spill] sm:$0xff] }
0x11ab   :  { %v1765_v16 = vadd.f32 %v1764_v25, %v4633_v33 }
0x11ac   :  { %1811 = vmatpush.msra.mxu1 %v4634_v51  ;;  %v4664_v51 = vld [vmem:[#allocation61_spill] sm:$0xff] }
0x11ad   :  { %v1766_v24 = vsel %vm417_vm5, %v1765_v16, -inf }
0x11ae   :  { %1812 = vmatpush.msra.mxu1 %v4635_v10  ;;  %1767 = vmax.xlane.f32.xlu1 %v1766_v24  ;;  %v1649_v24 = vadd.f32 %v4061_v30, %v4664_v51  ;;  %v2075_v30 = vld [vmem:[%s4312_s16 + $0x78] sm:$0xff] }
0x11af   :  { %2099 = vmatpush.msra.mxu2 %v2075_v30 }
0x11b0   :  { %1813 = vmatpush.msra.mxu1 %v4636_v23  ;;  %v4665_v23 = vld [vmem:[#allocation11_spill] sm:$0xff] }
0x11b2   :  { %1814 = vmatpush.msra.mxu1 %v4637_v21 }
0x11b4   :  { %1815 = vmatpush.msra.mxu1 %v4638_v31 }
0x11b6   :  { %1816 = vmatpush.msra.mxu1 %v4639_v54 }
0x11b8   :  { %1817 = vmatpush.msra.mxu1 %v4640_v19 }
0x11ba   :  { %1818 = vmatpush.msra.mxu1 %v4641_v48 }
0x120e   :  { %v1849_v40 = vpop.f32.mrf.mxu2 }
0x120f   :  { %v1852_v37 = vmul.f32 0.125, %v1849_v40 }
0x1211   :  { %v1853_v0 = vadd.f32 %v1852_v37, %v4633_v33  ;;  %v2074_v37 = vld [vmem:[%s4312_s16 + $0x70] sm:$0xff] }
0x1212   :  { %2100 = vmatpush.msra.mxu2 %v2074_v37 }
0x1213   :  { %v1854_v4 = vsel %vm417_vm5, %v1853_v0, -inf }
0x1214   :  { %1855 = vmax.xlane.f32.xlu0 %v1854_v4  ;;  %v2072_v4 = vld [vmem:[%s4312_s16 + $0x60] sm:$0xff] }
0x1221   :  { %v1768_v20 = vpop.xlane.xlu1 %1767 }
0x1222   :  { %v1769_v8 = vsub.f32 %v1765_v16, %v1768_v20  ;;  %v2071_v20 = vld [vmem:[%s4312_s16 + $0x58] sm:$0xff] }
0x1224   :  { %v1770_v39 = vmul.f32 1.442695, %v1769_v8  ;;  %v2070_v8 = vld [vmem:[%s4312_s16 + $0x50] sm:$0xff] }
0x1226   :  { %2406 = vpow2.f32 %v1770_v39  ;;  %v2069_v39 = vld [vmem:[%s4312_s16 + $0x48] sm:$0xff] }
0x122c   :  { %v2407_v32 = vpop.eup %2406 }
0x122d   :  { %v1772_v35 = vsel %vm417_vm5, %v2407_v32, 0.0 }
0x122e   :  { %1773 = vadd.xlane.f32.xlu2 %v1772_v35  ;;  %v2067_v35 = vld [vmem:[%s4312_s16 + $0x38] sm:$0xff] }
0x1287   :  { %v1856_v14 = vpop.xlane.xlu0 %1855 }
0x1288   :  { %v1857_v22 = vsub.f32 %v1853_v0, %v1856_v14  ;;  %v2073_v0 = vld [vmem:[%s4312_s16 + $0x68] sm:$0xff]  ;;  %v2066_v14 = vld [vmem:[%s4312_s16 + $0x30] sm:$0xff] }
0x1289   :  { %2101 = vmatpush.msra.mxu2 %v2073_v0 }
0x128a   :  { %v1858_v7 = vmul.f32 1.442695, %v1857_v22  ;;  %v2065_v22 = vld [vmem:[%s4312_s16 + $0x28] sm:$0xff] }
0x128b   :  { %2102 = vmatpush.msra.mxu2 %v2072_v4 }
0x128c   :  { %2408 = vpow2.f32 %v1858_v7  ;;  %v2064_v7 = vld [vmem:[%s4312_s16 + $0x20] sm:$0xff] }
0x128d   :  { %2103 = vmatpush.msra.mxu2 %v2071_v20 }
0x128f   :  { %2104 = vmatpush.msra.mxu2 %v2070_v8 }
0x1291   :  { %2105 = vmatpush.msra.mxu2 %v2069_v39 }
0x1292   :  { %v2409_v28 = vpop.eup %2408 }
0x1293   :  { %v1860_v50 = vsel %vm417_vm5, %v2409_v28, 0.0 }
0x1294   :  { %1861 = vadd.xlane.f32.xlu2 %v1860_v50  ;;  %v2062_v50 = vld [vmem:[%s4312_s16 + $0x10] sm:$0xff] }
0x12a1   :  { %v1774_v15 = vpop.xlane.xlu2 %1773 }
0x12a2   :  { %2410 = vrcp.f32 %v1774_v15 }
0x12a8   :  { %v2411_v1 = vpop.eup %2410 }
0x12a9   :  { %v1776_v34 = vmul.f32 %v2411_v1, %v2407_v32  ;;  %v2068_v32 = vld [vmem:[%s4312_s16 + $0x40] sm:$0xff]  ;;  %v2061_v1 = vld [vmem:[%s4312_s16 + $0x8] sm:$0xff] }
0x12aa   :  { %2106 = vmatpush.msra.mxu2 %v2068_v32 }
0x12ab   :  { %2317 = vmatmul.msk.f32.vlgmr.msrb.gmra.mxu1 %vm417_vm5, %v1776_v34 }
0x12ac   :  { %1866 = vrot.lane.b32.xlu2 %v1736_v42, %s2522_s29  ;;  %1997 = vmatpush.msrb.mxu1 %v3860_v46  ;;  %v4642_v46 = vld [vmem:[#allocation60_spill] sm:$0xff]  ;;  %v4663_v42 = vld [vmem:[#allocation17_spill] sm:$0xff] }
0x12ad   :  { %2107 = vmatpush.msra.mxu2 %v2067_v35 }
0x12ae   :  { %1998 = vmatpush.msrb.mxu1 %v3862_v49  ;;  %v4643_v49 = vld [vmem:[#allocation62_spill] sm:$0xff] }
0x12af   :  { %2108 = vmatpush.msra.mxu2 %v2066_v14 }
0x12b0   :  { %1999 = vmatpush.msrb.mxu1 %v3865_v52  ;;  %v4644_v52 = vld [vmem:[#allocation63_spill] sm:$0xff] }
0x12b1   :  { %2109 = vmatpush.msra.mxu2 %v2065_v22 }
0x12b2   :  { %2000 = vmatpush.msrb.mxu1 %v3874_v53  ;;  %v4645_v53 = vld [vmem:[#allocation64_spill] sm:$0xff] }
0x12b3   :  { %2110 = vmatpush.msra.mxu2 %v2064_v7 }
0x12b4   :  { %2001 = vmatpush.msrb.mxu1 %v3880_v43  ;;  %v4646_v43 = vld [vmem:[#allocation65_spill] sm:$0xff] }
0x12b6   :  { %2002 = vmatpush.msrb.mxu1 %v3886_v62 }
0x12b8   :  { %2003 = vmatpush.msrb.mxu1 %v3892_v26 }
0x12ba   :  { %2004 = vmatpush.msrb.mxu1 %v3898_v38 }
0x12bc   :  { %2005 = vmatpush.msrb.mxu1 %v3904_v59  ;;  %v4647_v59 = vld [vmem:[#allocation18_spill] sm:$0xff] }
0x12be   :  { %2006 = vmatpush.msrb.mxu1 %v3915_v60  ;;  %v4648_v60 = vld [vmem:[#allocation20_spill] sm:$0xff] }
0x12c0   :  { %2007 = vmatpush.msrb.mxu1 %v3927_v11  ;;  %v4649_v11 = vld [vmem:[#allocation22_spill] sm:$0xff] }
0x12c2   :  { %2008 = vmatpush.msrb.mxu1 %v4642_v46  ;;  %v2060_v46 = vld [vmem:[%s4312_s16] sm:$0xff] }
0x12c4   :  { %2009 = vmatpush.msrb.mxu1 %v4643_v49 }
0x12c6   :  { %2010 = vmatpush.msrb.mxu1 %v4644_v52 }
0x12c8   :  { %2011 = vmatpush.msrb.mxu1 %v4645_v53 }
0x12ca   :  { %2012 = vmatpush.msrb.mxu1 %v4646_v43 }
0x1307   :  { %v1862_v62 = vpop.xlane.xlu2 %1861 }
0x1308   :  { %2412 = vrcp.f32 %v1862_v62 }
0x130e   :  { %v2413_v26 = vpop.eup %2412 }
0x130f   :  { %v1864_v38 = vmul.f32 %v2413_v26, %v2409_v28  ;;  %v1867_v63 = vpop.permute.xlu2 %1866  ;;  %v2063_v28 = vld [vmem:[%s4312_s16 + $0x18] sm:$0xff] }
0x1310   :  { %1887 = vmatpush.msra.mxu3 %v1867_v63  ;;  %2111 = vmatpush.msra.mxu2 %v2063_v28 }
0x1311   :  { %2321 = vmatmul.msk.f32.vlgmr.msra.gmra.mxu3 %vm417_vm5, %v1864_v38 }
0x1312   :  { %1959 = vmatpush.msrb.mxu3 %v4647_v59  ;;  %2112 = vmatpush.msra.mxu2 %v2062_v50 }
0x1314   :  { %1960 = vmatpush.msrb.mxu3 %v4648_v60  ;;  %2113 = vmatpush.msra.mxu2 %v2061_v1 }
0x1316   :  { %1961 = vmatpush.msrb.mxu3 %v4649_v11  ;;  %2114 = vmatpush.msra.mxu2 %v2060_v46 }
0x1318   :  { %1962 = vmatpush.msrb.mxu3 %v4650_v56 }
0x131a   :  { %1963 = vmatpush.msrb.mxu3 %v4651_v61 }
0x131c   :  { %1964 = vmatpush.msrb.mxu3 %v4652_v17 }
0x131e   :  { %1965 = vmatpush.msrb.mxu3 %v4653_v58 }
0x1320   :  { %1966 = vmatpush.msrb.mxu3 %v4654_v13 }
0x1322   :  { %1967 = vmatpush.msrb.mxu3 %v4655_v29  ;;  %v4666_v29 = vld [vmem:[#allocation58_spill] sm:$0xff] }
0x1324   :  { %1968 = vmatpush.msrb.mxu3 %v4656_v12 }
0x1326   :  { %1969 = vmatpush.msrb.mxu3 %v4657_v9 }
0x1328   :  { %v1797_v47 = vpop.f32.mrf.mxu1  ;;  %1970 = vmatpush.msrb.mxu3 %v4658_v6 }
0x1329   :  { %2318 = vmatmul.msk.f32.vlgmr.msra.gmra.mxu1 %vm387_vm4, %v1797_v47  ;;  %v4667_v47 = vld [vmem:[#allocation16_spill] sm:$0xff] }
0x132a   :  { %1971 = vmatpush.msrb.mxu3 %v4659_v55  ;;  %2184 = vmatpush.msra.mxu1 %v2075_v30 }
0x132c   :  { %1972 = vmatpush.msrb.mxu3 %v4660_v41  ;;  %2185 = vmatpush.msra.mxu1 %v2074_v37  ;;  %v4190_v41 = vld [vmem:[%s4310_s14 + $0x1] ss:$0 sm:$0xff] }
0x132e   :  { %1973 = vmatpush.msrb.mxu3 %v4661_v57  ;;  %2186 = vmatpush.msra.mxu1 %v2073_v0 }
0x1330   :  { %1974 = vmatpush.msrb.mxu3 %v4662_v2  ;;  %2187 = vmatpush.msra.mxu1 %v2072_v4 }
0x1332   :  { %2188 = vmatpush.msra.mxu1 %v2071_v20 }
0x1334   :  { %2189 = vmatpush.msra.mxu1 %v2070_v8 }
0x1336   :  { %2190 = vmatpush.msra.mxu1 %v2069_v39 }
0x1338   :  { %2191 = vmatpush.msra.mxu1 %v2068_v32  ;;  %v4210_v32 = vld [vmem:[%s4313_s17] ss:$0 sm:$0xff] }
0x133a   :  { %2192 = vmatpush.msra.mxu1 %v2067_v35 }
0x133c   :  { %2193 = vmatpush.msra.mxu1 %v2066_v14 }
0x133e   :  { %2194 = vmatpush.msra.mxu1 %v2065_v22 }
0x1340   :  { %2195 = vmatpush.msra.mxu1 %v2064_v7 }
0x1342   :  { %2196 = vmatpush.msra.mxu1 %v2063_v28 }
0x1344   :  { %2197 = vmatpush.msra.mxu1 %v2062_v50 }
0x1346   :  { %2198 = vmatpush.msra.mxu1 %v2061_v1  ;;  %v4217_v1 = vld [vmem:[%s4314_s18] ss:$0 sm:$0xff] }
0x1348   :  { %2199 = vmatpush.msra.mxu1 %v2060_v46 }
0x1394   :  { %v1889_v27 = vpop.f32.mrf.mxu3 }
0x1395   :  { %2322 = vmatmul.msk.f32.vlgmr.msra.gmra.mxu0 %vm387_vm4, %v1889_v27  ;;  %v4196_v27 = vld [vmem:[%s4311_s15 + $0x1] ss:$0 sm:$0xff] }
0x13a6   :  { %v1820_v44 = vpop.f32.mrf.mxu1 }
0x13a7   :  { %v1823_v36 = vadd.f32 %v4663_v42, %v1820_v44 }
0x1412   :  { %v1912_v25 = vpop.f32.mrf.mxu0 }
0x1413   :  { %v1915_v33 = vadd.f32 %v1912_v25, %v1823_v36 }
0x1415   :  { %v1916_v16 = vadd.f32 %v1915_v33, %v3956_v18 }
0x1417   :  { %1917 = vadd.xlane.f32.xlu0 %v1916_v16 }
0x141f   :  { %1650 = vadd.xlane.f32.xlu0 %v1649_v24 }
0x148a   :  { %v1918_v10 = vpop.xlane.xlu0 %1917 }
0x148b   :  { %v1919_v21 = vmul.f32 %v1918_v10, %v4665_v23 }
0x148d   :  { %v4125_v31 = vsub.f32 %v1916_v16, %v1919_v21  ;;  %v4668_v16 = vperm.slane %v3996_v45, 1 }
0x148f   :  { %v1921_v54 = vmul.f32 %v4125_v31, %v4125_v31 }
0x1491   :  { %1922 = vadd.xlane.f32.xlu1 %v1921_v54 }
0x1492   :  { %v1651_v19 = vpop.xlane.xlu0 %1650 }
0x1493   :  { %v1652_v48 = vmul.f32 %v1651_v19, %v4665_v23 }
0x1495   :  { %v4130_v40 = vsub.f32 %v1649_v24, %v1652_v48 }
0x1497   :  { %v1654_v18 = vmul.f32 %v4130_v40, %v4130_v40 }
0x1499   :  { %1655 = vadd.xlane.f32.xlu0 %v1654_v18 }
0x1504   :  { %v1923_v15 = vpop.xlane.xlu1 %1922 }
0x1505   :  { %v1924_v34 = vmul.f32 %v1923_v15, %v4665_v23 }
0x1507   :  { %v1925_v49 = vadd.f32 1e-07, %v1924_v34 }
0x1509   :  { %2414 = vrsqrt.f32 %v1925_v49  ;;  %vm1932_vm5 = vweird.f32 %v1925_v49 }
0x150c   :  { %v1656_v52 = vpop.xlane.xlu0 %1655 }
0x150d   :  { %v1657_v53 = vmul.f32 %v1656_v52, %v4665_v23 }
0x150f   :  { %v2415_v43 = vpop.eup %2414  ;;  %v1658_v62 = vadd.f32 1e-07, %v1657_v53 }
0x1510   :  { %v1927_v26 = vmul.f32 %v2415_v43, %v1925_v49  ;;  %vm1933_vm4 = vweird.f32 %v2415_v43 }
0x1511   :  { %2416 = vrsqrt.f32 %v1658_v62  ;;  %vm1934_vm10 = vmor %vm1932_vm5, %vm1933_vm4  ;;  %vm1665_vm12 = vweird.f32 %v1658_v62 }
0x1512   :  { %v1928_v38 = vmul.f32 %v2415_v43, %v1927_v26 }
0x1514   :  { %v1929_v63 = vmul.f32 0.5, %v1928_v38  ;;  %v2523_v38 = vmov 0  }
0x1515   :  { %2335 = vset.pattern.permute.xlu1 %v2523_v38  ;;  %2336 = vset.pattern.permute.xlu0 %v2523_v38 }
0x1516   :  { %v1930_v59 = vsub.f32 1.5, %v1929_v63 }
0x1517   :  { %v2417_v60 = vpop.eup %2416 }
0x1518   :  { %v1931_v11 = vmul.f32 %v2415_v43, %v1930_v59  ;;  %v1660_v56 = vmul.f32 %v2417_v60, %v1658_v62  ;;  %vm1666_vm11 = vweird.f32 %v2417_v60 }
0x1519   :  { %vm1667_vm13 = vmor %vm1665_vm12, %vm1666_vm11 }
0x151a   :  { %v1935_v61 = vsel %vm1934_vm10, %v2415_v43, %v1931_v11  ;;  %v1661_v17 = vmul.f32 %v2417_v60, %v1660_v56  ;;  %v4225_v43 = vld [vmem:[#allocation2] ss:$0 sm:$0xff] }
0x151b   :  { %v1936_v58 = vmul.f32 %v1935_v61, %v4125_v31 }
0x151c   :  { %v1662_v13 = vmul.f32 0.5, %v1661_v17 }
0x151d   :  { %v1937_v12 = vmul.f32 %v4666_v29, %v1936_v58 }
0x151e   :  { %v1663_v9 = vsub.f32 1.5, %v1662_v13 }
0x151f   :  { %v1938_v6 = vadd.f32 %v4667_v47, %v1937_v12 }
0x1520   :  { %v1664_v55 = vmul.f32 %v2417_v60, %v1663_v9 }
0x1521   :  { %1955 = vmatmul.f32.vlgmr.msrb.gmra.mxu2 %v1938_v6  ;;  %1975 = vmatmul.f32.vlgmr.msrb.gmra.mxu3 %v1938_v6 }
0x1522   :  { %v1668_v57 = vsel %vm1667_vm13, %v2417_v60, %v1664_v55 }
0x1523   :  { %v1669_v2 = vmul.f32 %v1668_v57, %v4130_v40 }
0x1525   :  { %v1673_v44 = vmul.f32 %v4190_v41, %v1669_v2 }
0x1527   :  { %v4200_v42 = vadd.f32 %v4196_v27, %v1673_v44 }
0x1529   :  { %2115 = vmatmul.f32.vlgmr.msra.gmra.mxu2 %v4200_v42 }
0x15a4   :  { %v1956_v36 = vpop.f32.mrf.mxu2  ;;  %v1976_v25 = vpop.f32.mrf.mxu3 }
0x15a5   :  { %v1957_v33 = vadd.f32 %v1956_v36, %v1544_v5  ;;  %v1977_v51 = vadd.f32 %v1976_v25, %v4668_v16  ;;  %v2094_v25 = vld [vmem:[%s4316_s20 + $0x78] sm:$0xff]  ;;  %v2092_v16 = vld [vmem:[%s4316_s20 + $0x68] sm:$0xff] }
0x15a6   :  { %2162 = vmatpush.msra.mxu3 %v2094_v25  ;;  %2240 = vmatpush.msra.mxu0 %v2094_v25 }
0x15a7   :  { %v1981_v24 = vmul.f32 0.044715, %v1957_v33  ;;  %v1982_v10 = vmul.f32 0.044715, %v1977_v51  ;;  %v1979_v4 = vmul.f32 0.5, %v1957_v33  ;;  %v1980_v5 = vmul.f32 0.5, %v1977_v51 }
0x15a9   :  { %v1983_v21 = vmul.f32 %v1981_v24, %v1957_v33  ;;  %v1984_v31 = vmul.f32 %v1982_v10, %v1977_v51  ;;  %v2091_v10 = vld [vmem:[%s4316_s20 + $0x60] sm:$0xff] }
0x15ab   :  { %v1985_v54 = vmul.f32 %v1983_v21, %v1957_v33  ;;  %v1986_v19 = vmul.f32 %v1984_v31, %v1977_v51  ;;  %v2090_v31 = vld [vmem:[%s4316_s20 + $0x58] sm:$0xff] }
0x15ac   :  { %v2116_v35 = vpop.f32.mrf.mxu2 }
0x15ad   :  { %v1987_v48 = vadd.f32 %v1985_v54, %v1957_v33  ;;  %v1988_v40 = vadd.f32 %v1986_v19, %v1977_v51  ;;  %v2117_v14 = vadd.f32 %v4210_v32, %v2116_v35  ;;  %v2093_v33 = vld [vmem:[%s4316_s20 + $0x70] sm:$0xff]  ;;  %v2087_v19 = vld [vmem:[%s4316_s20 + $0x40] sm:$0xff] }
0x15ae   :  { %2163 = vmatpush.msra.mxu3 %v2093_v33  ;;  %2241 = vmatpush.msra.mxu0 %v2093_v33  ;;  %v2089_v54 = vld [vmem:[%s4316_s20 + $0x50] sm:$0xff] }
0x15af   :  { %v1989_v18 = vmul.f32 0.7978846, %v1987_v48  ;;  %v1990_v30 = vmul.f32 0.7978846, %v1988_v40  ;;  %v2086_v40 = vld [vmem:[%s4316_s20 + $0x38] sm:$0xff] }
0x15b0   :  { %2164 = vmatpush.msra.mxu3 %v2092_v16  ;;  %2242 = vmatpush.msra.mxu0 %v2092_v16 }
0x15b1   :  { %2418 = vtanh.f32 %v1989_v18 }
0x15b2   :  { %2420 = vtanh.f32 %v1990_v30  ;;  %2165 = vmatpush.msra.mxu3 %v2091_v10  ;;  %2243 = vmatpush.msra.mxu0 %v2091_v10 }
0x15b3   :  { %2422 = vtanh.f32 %v2117_v14  ;;  %v2082_v14 = vld [vmem:[%s4316_s20 + $0x18] sm:$0xff] }
0x15b4   :  { %2166 = vmatpush.msra.mxu3 %v2090_v31  ;;  %2244 = vmatpush.msra.mxu0 %v2090_v31 }
0x15b6   :  { %2167 = vmatpush.msra.mxu3 %v2089_v54  ;;  %2245 = vmatpush.msra.mxu0 %v2089_v54 }
0x15b7   :  { %v2419_v37 = vpop.eup %2418 }
0x15b8   :  { %v2421_v0 = vpop.eup %2420  ;;  %v1993_v20 = vadd.f32 1.0, %v2419_v37 }
0x15b9   :  { %v1994_v8 = vadd.f32 1.0, %v2421_v0  ;;  %v2423_v34 = vpop.eup %2422 }
0x15ba   :  { %v1995_v45 = vmul.f32 %v1993_v20, %v1979_v4  ;;  %v2123_v46 = vmul.f32 %v2423_v34, %v4217_v1  ;;  %v2085_v4 = vld [vmem:[%s4316_s20 + $0x30] sm:$0xff] }
0x15bb   :  { %v1996_v39 = vmul.f32 %v1994_v8, %v1980_v5  ;;  %v2084_v5 = vld [vmem:[%s4316_s20 + $0x28] sm:$0xff] }
0x15bc   :  { %2013 = vmatmul.f32.vlgmr.msrb.gmra.mxu1 %v1995_v45 }
0x15bd   :  { %2033 = vmatmul.f32.vlgmr.msrb.gmra.mxu0 %v1996_v39  ;;  %v2083_v39 = vld [vmem:[%s4316_s20 + $0x20] sm:$0xff] }
0x1639   :  { %v2014_v22 = vpop.f32.mrf.mxu1 }
0x163a   :  { %v2015_v7 = vadd.f32 %v4055_v3, %v2014_v22  ;;  %v2034_v28 = vpop.f32.mrf.mxu0 }
0x163c   :  { %v2035_v50 = vadd.f32 %v2034_v28, %v2015_v7  ;;  %v2081_v7 = vld [vmem:[%s4316_s20 + $0x10] sm:$0xff]  ;;  %v2080_v28 = vld [vmem:[%s4316_s20 + $0x8] sm:$0xff] }
0x163e   :  { %v2037_v15 = vadd.f32 %v2035_v50, %v1938_v6 }
0x1640   :  { %2038 = vadd.xlane.f32.xlu1 %v2037_v15 }
0x1648   :  { %2124 = vadd.xlane.f32.xlu1 %v2123_v46 }
0x16b3   :  { %v2039_v49 = vpop.xlane.xlu1 %2038 }
0x16b4   :  { %v2040_v52 = vmul.f32 %v2039_v49, %v4665_v23 }
0x16b6   :  { %v4221_v53 = vsub.f32 %v2037_v15, %v2040_v52 }
0x16b8   :  { %v2042_v3 = vmul.f32 %v4221_v53, %v4221_v53 }
0x16ba   :  { %2043 = vadd.xlane.f32.xlu2 %v2042_v3 }
0x16bb   :  { %v2125_v62 = vpop.xlane.xlu1 %2124 }
0x16bc   :  { %v2129_v26 = vadd.f32 %v4225_v43, %v2125_v62 }
0x16be   :  { %v2131_v63 = vsel %vm2130_vm14, %v2129_v26, -inf }
0x16bf   :  { %v2132_v59 = vrot.slane %v2131_v63, 4 }
0x16c1   :  { %v2133_v60 = vmax.f32 %v2131_v63, %v2132_v59  ;;  %v2095_v63 = vld [vmem:[#allocation3] sm:$0x1] }
0x16c3   :  { %v2134_v11 = vrot.slane %v2133_v60, 2 }
0x16c5   :  { %v2135_v56 = vmax.f32 %v2133_v60, %v2134_v11 }
0x16c7   :  { %v2136_v61 = vrot.slane %v2135_v56, 1 }
0x16c9   :  { %v2137_v17 = vmax.f32 %v2135_v56, %v2136_v61 }
0x16cb   :  { %v2138_v58 = vsub.f32 %v2129_v26, %v2137_v17 }
0x16cd   :  { %v2139_v13 = vmul.f32 1.442695, %v2138_v58 }
0x16cf   :  { %2424 = vpow2.f32 %v2139_v13 }
0x16d5   :  { %v2425_v29 = vpop.eup %2424 }
0x16d6   :  { %v2141_v12 = vsel %vm2130_vm14, %v2425_v29, 0.0 }
0x16d7   :  { %v2142_v9 = vrot.slane %v2141_v12, 4 }
0x16d9   :  { %v2143_v47 = vadd.f32 %v2142_v9, %v2141_v12 }
0x16db   :  { %v2144_v6 = vrot.slane %v2143_v47, 2 }
0x16dd   :  { %v2145_v55 = vadd.f32 %v2144_v6, %v2143_v47 }
0x16df   :  { %v2146_v57 = vrot.slane %v2145_v55, 1 }
0x16e1   :  { %v2147_v2 = vadd.f32 %v2146_v57, %v2145_v55 }
0x16e3   :  { %2426 = vrcp.f32 %v2147_v2 }
0x16e9   :  { %v2427_v44 = vpop.eup %2426 }
0x16ea   :  { %v2149_v36 = vmul.f32 %v2427_v44, %v2425_v29 }
0x16ec   :  { %2152 = vperm.xlu1 %2335, %v2149_v36  }
0x172d   :  { %v2044_v51 = vpop.xlane.xlu2 %2043 }
0x172e   :  { %v2045_v24 = vmul.f32 %v2044_v51, %v4665_v23  ;;  %v2088_v23 = vld [vmem:[%s4316_s20 + $0x48] sm:$0xff] }
0x172f   :  { %2168 = vmatpush.msra.mxu3 %v2088_v23  ;;  %2246 = vmatpush.msra.mxu0 %v2088_v23 }
0x1730   :  { %v2046_v21 = vadd.f32 1e-07, %v2045_v24 }
0x1731   :  { %2169 = vmatpush.msra.mxu3 %v2087_v19  ;;  %2247 = vmatpush.msra.mxu0 %v2087_v19 }
0x1732   :  { %2428 = vrsqrt.f32 %v2046_v21  ;;  %vm2053_vm0 = vweird.f32 %v2046_v21 }
0x1733   :  { %2170 = vmatpush.msra.mxu3 %v2086_v40  ;;  %2248 = vmatpush.msra.mxu0 %v2086_v40 }
0x1735   :  { %2171 = vmatpush.msra.mxu3 %v2085_v4  ;;  %2249 = vmatpush.msra.mxu0 %v2085_v4 }
0x1737   :  { %2172 = vmatpush.msra.mxu3 %v2084_v5  ;;  %2250 = vmatpush.msra.mxu0 %v2084_v5 }
0x1738   :  { %v2429_v48 = vpop.eup %2428 }
0x1739   :  { %v2048_v18 = vmul.f32 %v2429_v48, %v2046_v21  ;;  %vm2054_vm15 = vweird.f32 %v2429_v48  ;;  %2173 = vmatpush.msra.mxu3 %v2083_v39  ;;  %2251 = vmatpush.msra.mxu0 %v2083_v39 }
0x173a   :  { %vm2055_vm1 = vmor %vm2053_vm0, %vm2054_vm15 }
0x173b   :  { %v2049_v30 = vmul.f32 %v2429_v48, %v2048_v18  ;;  %2174 = vmatpush.msra.mxu3 %v2082_v14  ;;  %2252 = vmatpush.msra.mxu0 %v2082_v14 }
0x173d   :  { %v2050_v37 = vmul.f32 0.5, %v2049_v30  ;;  %2175 = vmatpush.msra.mxu3 %v2081_v7  ;;  %2253 = vmatpush.msra.mxu0 %v2081_v7 }
0x173f   :  { %v2051_v0 = vsub.f32 1.5, %v2050_v37  ;;  %2176 = vmatpush.msra.mxu3 %v2080_v28  ;;  %2254 = vmatpush.msra.mxu0 %v2080_v28 }
0x1741   :  { %v2052_v20 = vmul.f32 %v2429_v48, %v2051_v0 }
0x1743   :  { %v2056_v8 = vsel %vm2055_vm1, %v2429_v48, %v2052_v20 }
0x1744   :  { %v2057_v45 = vmul.f32 %v2056_v8, %v4221_v53 }
0x1746   :  { %v2058_v35 = vmul.f32 %v4190_v41, %v2057_v45  ;;  %v2079_v41 = vld [vmem:[%s4316_s20] sm:$0xff] }
0x1747   :  { %2177 = vmatpush.msra.mxu3 %v2079_v41  ;;  %2255 = vmatpush.msra.mxu0 %v2079_v41 }
0x1748   :  { %v2059_v22 = vadd.f32 %v4196_v27, %v2058_v35 }
0x174a   :  { %2200 = vmatmul.f32.vlgmr.msra.gmra.mxu1 %v2059_v22 }
0x175e   :  { %v2153_v27 = vpop.permute.xlu1 %2152 }
0x175f   :  { %v2155_v50 = vmul.f32 %v2153_v27, %v4200_v42 }
0x1761   :  { %v2156_v15 = vrot.slane %v2155_v50, 4 }
0x1763   :  { %v2157_v34 = vadd.f32 %v2156_v15, %v2155_v50 }
0x1765   :  { %v2158_v46 = vrot.slane %v2157_v34, 2 }
0x1767   :  { %v2159_v49 = vadd.f32 %v2158_v46, %v2157_v34 }
0x1769   :  { %v2160_v52 = vrot.slane %v2159_v49, 1 }
0x176b   :  { %v2161_v53 = vadd.f32 %v2160_v52, %v2159_v49 }
0x176d   :  { %2178 = vmatmul.f32.vlgmr.msra.gmra.mxu3 %v2161_v53 }
0x17c7   :  { %v2201_v3 = vpop.f32.mrf.mxu1 }
0x17c8   :  { %v2202_v62 = vadd.f32 %v4210_v32, %v2201_v3 }
0x17ca   :  { %2430 = vtanh.f32 %v2202_v62 }
0x17d0   :  { %v2431_v26 = vpop.eup %2430 }
0x17d1   :  { %v2205_v38 = vmul.f32 %v2431_v26, %v4217_v1 }
0x17d3   :  { %2206 = vadd.xlane.f32.xlu0 %v2205_v38 }
0x17f0   :  { %v2179_v59 = vpop.f32.mrf.mxu3 }
0x17f1   :  { %v2180_v60 = vadd.f32 %v2179_v59, %v2095_v63 }
0x17f3   :  { %2183 = vst.msk [vmem:[%s4317_s22] sm:$0x1] %vm2182_vm2, %v2180_v60 }
0x1846   :  { %v2207_v42 = vpop.xlane.xlu0 %2206 }
0x1847   :  { %v2208_v11 = vadd.f32 %v4225_v43, %v2207_v42 }
0x1849   :  { %v2209_v56 = vsel %vm2130_vm14, %v2208_v11, -inf }
0x184a   :  { %v2210_v32 = vrot.slane %v2209_v56, 4 }
0x184c   :  { %v2211_v61 = vmax.f32 %v2209_v56, %v2210_v32 }
0x184e   :  { %v2212_v17 = vrot.slane %v2211_v61, 2 }
0x1850   :  { %v2213_v58 = vmax.f32 %v2211_v61, %v2212_v17 }
0x1852   :  { %v2214_v1 = vrot.slane %v2213_v58, 1 }
0x1854   :  { %v2215_v13 = vmax.f32 %v2213_v58, %v2214_v1 }
0x1856   :  { %v2216_v29 = vsub.f32 %v2208_v11, %v2215_v13 }
0x1858   :  { %v2217_v12 = vmul.f32 1.442695, %v2216_v29 }
0x185a   :  { %2432 = vpow2.f32 %v2217_v12 }
0x1860   :  { %v2433_v9 = vpop.eup %2432 }
0x1861   :  { %v2219_v47 = vsel %vm2130_vm14, %v2433_v9, 0.0 }
0x1862   :  { %v2220_v6 = vrot.slane %v2219_v47, 4 }
0x1864   :  { %v2221_v55 = vadd.f32 %v2220_v6, %v2219_v47 }
0x1866   :  { %v2222_v57 = vrot.slane %v2221_v55, 2 }
0x1868   :  { %v2223_v2 = vadd.f32 %v2222_v57, %v2221_v55 }
0x186a   :  { %v2224_v44 = vrot.slane %v2223_v2, 1 }
0x186c   :  { %v2225_v43 = vadd.f32 %v2224_v44, %v2223_v2 }
0x186e   :  { %2434 = vrcp.f32 %v2225_v43 }
0x1874   :  { %v2435_v36 = vpop.eup %2434 }
0x1875   :  { %v2227_v25 = vmul.f32 %v2435_v36, %v2433_v9 }
0x1877   :  { %2230 = vperm.xlu0 %2336, %v2227_v25  }
0x18e9   :  { %v2231_v33 = vpop.permute.xlu0 %2230 }
0x18ea   :  { %v2233_v16 = vmul.f32 %v2231_v33, %v2059_v22 }
0x18ec   :  { %v2234_v51 = vrot.slane %v2233_v16, 4 }
0x18ee   :  { %v2235_v24 = vadd.f32 %v2234_v51, %v2233_v16 }
0x18f0   :  { %v2236_v10 = vrot.slane %v2235_v24, 2 }
0x18f2   :  { %v2237_v21 = vadd.f32 %v2236_v10, %v2235_v24 }
0x18f4   :  { %v2238_v31 = vrot.slane %v2237_v21, 1 }
0x18f6   :  { %v2239_v54 = vadd.f32 %v2238_v31, %v2237_v21 }
0x18f8   :  { %2256 = vmatmul.f32.vlgmr.msra.gmra.mxu0 %v2239_v54 }
0x1975   :  { %v2257_v23 = vpop.f32.mrf.mxu0 }
0x1976   :  { %v2258_v19 = vadd.f32 %v2257_v23, %v2095_v63 }
0x1978   :  { %2260 = vst.msk [vmem:[%s4317_s22 + $0x1] sm:$0x1] %vm2182_vm2, %v2258_v19 }
0x1979   :  { %2265 = vsyncpa [#allocation5], 1 }
0x197a   :  { %2266 = vsyncpa [#allocation7], 1 }

</bundles_post_ra>
